<compile_context>
chip_gen: v7x
topology: tpu7x:2x2x1
jax: 0.10.0
libtpu: 0.0.40
codegen_flags: <defaults>
</compile_context>

<pallas_src>
import functools

import jax
import jax.numpy as jnp
from jax.experimental import pallas as pl
from jax.experimental.pallas import tpu as pltpu

CONV_VMEM = 16 * 1024 * 1024   # conv kernels need a few MiB; leave headroom
PROJ_VMEM = 32 * 1024 * 1024   # proj y-temp can reach ~10 MiB at TM=2048


def _pick_tile(total, max_tile):
    """Largest divisor of `total` that is <= max_tile (prefer multiples of 8)."""
    if total <= max_tile:
        return total
    for t in range(max_tile, 0, -1):
        if total % t == 0 and t % 8 == 0:
            return t
    for t in range(max_tile, 0, -1):
        if total % t == 0:
            return t
    return 1  # unreachable (t=1 always divides)


def _pick_rows(out_h, out_w, cap_rows=16, cap_m=1024):
    """Rows per conv grid step: divisor of out_h, bounded M to protect vregs."""
    tr = 1
    for t in range(1, out_h + 1):
        if out_h % t == 0 and t <= cap_rows and t * out_w <= cap_m:
            tr = t
    return tr


# ---------------------------------------------------------------------------
# Kernel 1: matmul + bias + SiLU  (used for the stem via wrapper-side im2col).
# ---------------------------------------------------------------------------
def _mm_bias_silu_kernel(x_ref, w_ref, b_ref, o_ref):
    # x_ref: (1, TM, K) bf16   w_ref: (K, N) bf16   b_ref: (1, N) f32
    y = jnp.dot(x_ref[0], w_ref[...], preferred_element_type=jnp.float32)
    y = y + b_ref[...]
    o_ref[0] = (y * jax.nn.sigmoid(y)).astype(o_ref.dtype)   # SiLU in f32


def stem_conv3x3_s2(x_nhwc, w_flat, bias):
    """3x3 / stride-2 / pad-1 conv + SiLU for small Cin (wrapper-side im2col).

    x: [B,H,W,Cin] f32;  w_flat: [Kp, N] bf16 with row index tap*Cin+c
    (Kp >= 9*Cin, zero padded);  bias: [1,N] f32.  Returns [B,H/2,W/2,N] bf16.
    """
    B, H, W, C = x_nhwc.shape
    Kp, N = w_flat.shape
    assert H % 2 == 0 and W % 2 == 0 and Kp >= 9 * C
    out_h, out_w = H // 2, W // 2
    hw = out_h * out_w

    # im2col of the tiny RGB image (2.25x expansion only, done once, bf16).
    x_pad = jnp.pad(x_nhwc, ((0, 0), (1, 1), (1, 1), (0, 0))).astype(jnp.bfloat16)
    pieces = [x_pad[:, di:di + 2 * out_h:2, dj:dj + 2 * out_w:2, :]
              for di in range(3) for dj in range(3)]
    patches = jnp.stack(pieces, axis=3).reshape(B, hw, 9 * C)
    patches = jnp.pad(patches, ((0, 0), (0, 0), (0, Kp - 9 * C)))

    tm = _pick_tile(hw, 1024)
    n_m = hw // tm
    cost = pl.CostEstimate(
        flops=2 * B * hw * Kp * N,
        transcendentals=B * hw * N,
        bytes_accessed=B * hw * Kp * 2 + Kp * N * 2 + N * 4 + B * hw * N * 2)
    out = pl.pallas_call(
        _mm_bias_silu_kernel,
        out_shape=jax.ShapeDtypeStruct((B, hw, N), jnp.bfloat16),
        grid=(B, n_m),
        in_specs=[
            pl.BlockSpec((1, tm, Kp), lambda b, m: (b, m, 0)),
            pl.BlockSpec((Kp, N), lambda b, m: (0, 0)),
            pl.BlockSpec((1, N), lambda b, m: (0, 0)),
        ],
        out_specs=pl.BlockSpec((1, tm, N), lambda b, m: (b, m, 0)),
        compiler_params=pltpu.CompilerParams(
            dimension_semantics=("parallel", "parallel"),
            vmem_limit_bytes=CONV_VMEM),
        cost_estimate=cost,
    )(patches, w_flat, bias)
    return out.reshape(B, out_h, out_w, N)


# ---------------------------------------------------------------------------
# Kernel 2: 3x3 stride-2 conv (pad=1) + bias + SiLU, TR output rows per step.
#
# Input is the space-to-depth view of the padded input (no 9x expansion):
#   x_s2d[b*4 + p*2 + q, i, j, c] = x_pad[b, 2i+p, 2j+q, c]
# Output rows [r*TR, (r+1)*TR) need s2d rows [r*TR, r*TR+TR]; they arrive as a
# TR-row block plus a single 1-row halo block.  The 9 taps are concatenated
# along K into one (TR*out_w, 9*C) bf16 operand -> ONE MXU dot.
# ---------------------------------------------------------------------------
def _conv3x3_s2_kernel(xa_ref, xh_ref, w_ref, b_ref, o_ref, *, tr, out_w):
    # xa_ref: (4, tr, Wh, C) bf16   xh_ref: (4, 1, Wh, C) bf16 (halo row)
    # w_ref: (9*C, N) bf16          b_ref: (1, N) f32   o_ref: (1, tr, out_w, N)
    c = xa_ref.shape[3]
    xrows = jnp.concatenate([xa_ref[...], xh_ref[...]], axis=1)   # (4, tr+1, Wh, C)
    taps = []
    for di in range(3):                       # kernel row tap
        p, ai = di % 2, (1 if di == 2 else 0)
        for dj in range(3):                   # kernel col tap
            q, aj = dj % 2, (1 if dj == 2 else 0)
            taps.append(xrows[2 * p + q, ai:ai + tr, aj:aj + out_w, :])
    xcat = jnp.concatenate(taps, axis=-1).reshape(tr * out_w, 9 * c)   # bf16
    y = jnp.dot(xcat, w_ref[...], preferred_element_type=jnp.float32)
    y = y + b_ref[...]
    y = y * jax.nn.sigmoid(y)                                          # SiLU in f32
    o_ref[0] = y.reshape(tr, out_w, -1).astype(o_ref.dtype)


def conv3x3_s2(x_nhwc, w_flat, bias):
    """3x3 / stride-2 / pad-1 conv + SiLU.  x: [B,H,W,C] bf16, w: [9*C,N] bf16."""
    B, H, W, C = x_nhwc.shape
    N = w_flat.shape[1]
    assert w_flat.shape[0] == 9 * C and H % 2 == 0 and W % 2 == 0
    out_h, out_w = H // 2, W // 2
    Hh, Wh = H // 2 + 1, W // 2 + 1

    # Plain-JAX glue in bf16: pad + space-to-depth (pure rearrangement).
    x_pad = jnp.pad(x_nhwc, ((0, 0), (1, 1), (1, 1), (0, 0)))
    x_s2d = (x_pad.reshape(B, Hh, 2, Wh, 2, C)
             .transpose(0, 2, 4, 1, 3, 5)
             .reshape(B * 4, Hh, Wh, C))

    tr = _pick_rows(out_h, out_w)
    n_r = out_h // tr
    kernel = functools.partial(_conv3x3_s2_kernel, tr=tr, out_w=out_w)
    cost = pl.CostEstimate(
        flops=2 * B * out_h * out_w * 9 * C * N,
        transcendentals=B * out_h * out_w * N,
        bytes_accessed=B * 4 * Hh * Wh * C * 2 + 9 * C * N * 2 + N * 4
        + B * out_h * out_w * N * 2)
    out = pl.pallas_call(
        kernel,
        out_shape=jax.ShapeDtypeStruct((B, out_h, out_w, N), jnp.bfloat16),
        grid=(B, n_r),
        in_specs=[
            pl.BlockSpec((4, tr, Wh, C), lambda b, r: (b, r, 0, 0)),            # TR rows
            pl.BlockSpec((4, 1, Wh, C), lambda b, r: (b, (r + 1) * tr, 0, 0)),  # halo
            pl.BlockSpec((9 * C, N), lambda b, r: (0, 0)),                      # weights
            pl.BlockSpec((1, N), lambda b, r: (0, 0)),                          # bias
        ],
        out_specs=pl.BlockSpec((1, tr, out_w, N), lambda b, r: (b, r, 0, 0)),
        compiler_params=pltpu.CompilerParams(
            dimension_semantics=("parallel", "parallel"),
            vmem_limit_bytes=CONV_VMEM),
        cost_estimate=cost,
    )(x_s2d, x_s2d, w_flat, bias)
    return out  # [B, out_h, out_w, N] bf16


# ---------------------------------------------------------------------------
# Kernel 3: fused 1x1 proj conv (+SiLU) -> global average pool -> head MLP.
# Grid = (batch "parallel", row-tile "arbitrary"); per-batch channel sums live
# in a VMEM scratch; the head (Linear->Dropout[eval id]->Linear) runs in the
# finalize branch, so the [B, HW, 1280] feature map never touches HBM.
# ---------------------------------------------------------------------------
def _proj_gap_head_kernel(x_ref, pw_ref, pb_ref, w1_ref, b1_ref, w2_ref, b2_ref,
                          o_ref, acc_ref, *, inv_hw):
    m = pl.program_id(1)

    @pl.when(m == 0)
    def _():
        acc_ref[...] = jnp.zeros_like(acc_ref)

    x = x_ref[0]                                                       # [TM, C] bf16
    y = jnp.dot(x, pw_ref[...], preferred_element_type=jnp.float32)   # [TM, 1280]
    y = y + pb_ref[...]
    y = y * jax.nn.sigmoid(y)                                          # SiLU in f32
    acc_ref[...] += jnp.sum(y, axis=0, keepdims=True)                  # [1, 1280]

    @pl.when(m == pl.num_programs(1) - 1)
    def _():
        feat = acc_ref[...] * inv_hw                                   # GAP -> [1, 1280]
        h = jnp.dot(feat, w1_ref[...], preferred_element_type=jnp.float32) + b1_ref[...]
        # Dropout(0.4): eval-mode identity
        logits = jnp.dot(h, w2_ref[...], preferred_element_type=jnp.float32) + b2_ref[...]
        o_ref[0] = logits.astype(o_ref.dtype)


def proj_gap_head(y, pw, pb, w1, b1, w2, b2):
    """y: [B, HW, C] bf16 -> logits [B, num_classes] f32."""
    B, HW, C = y.shape
    N = pw.shape[1]          # 1280
    H1 = w1.shape[1]         # 128
    NC = w2.shape[1]         # num_classes
    TM = _pick_tile(HW, 2048)
    n_m = HW // TM

    kernel = functools.partial(_proj_gap_head_kernel, inv_hw=1.0 / HW)
    cost = pl.CostEstimate(
        flops=2 * B * HW * C * N + 2 * B * (N * H1 + H1 * NC),
        transcendentals=B * HW * N,
        bytes_accessed=B * HW * C * 2 + C * N * 2 + N * 4
        + N * H1 * 4 + H1 * 4 + H1 * NC * 4 + NC * 4 + B * NC * 4)
    out = pl.pallas_call(
        kernel,
        out_shape=jax.ShapeDtypeStruct((B, 1, NC), jnp.float32),
        grid=(B, n_m),
        in_specs=[
            pl.BlockSpec((1, TM, C), lambda b, m: (b, m, 0)),   # activation row tile
            pl.BlockSpec((C, N), lambda b, m: (0, 0)),          # proj weight (bf16)
            pl.BlockSpec((1, N), lambda b, m: (0, 0)),          # proj bias
            pl.BlockSpec((N, H1), lambda b, m: (0, 0)),         # fc1 weight
            pl.BlockSpec((1, H1), lambda b, m: (0, 0)),         # fc1 bias
            pl.BlockSpec((H1, NC), lambda b, m: (0, 0)),        # fc2 weight
            pl.BlockSpec((1, NC), lambda b, m: (0, 0)),         # fc2 bias
        ],
        out_specs=pl.BlockSpec((1, 1, NC), lambda b, m: (b, 0, 0)),
        scratch_shapes=[pltpu.VMEM((1, N), jnp.float32)],
        compiler_params=pltpu.CompilerParams(
            dimension_semantics=("parallel", "arbitrary"),
            vmem_limit_bytes=PROJ_VMEM),
        cost_estimate=cost,
    )(y, pw, pb, w1, b1, w2, b2)
    return out.reshape(B, NC)


# ---------------------------------------------------------------------------
# Deterministic synthetic parameters (BN folded).  Logical channel counts are
# stem 3->24, blk 24->48, proj 48->1280; 24/48 are zero-padded to 128 so conv
# outputs stay lane-dense (padded channels are exactly zero end-to-end).
# ---------------------------------------------------------------------------
def init_params(key, num_classes=10):
    ks = jax.random.split(key, 10)
    rnd = lambda k, shape, s: jax.random.normal(k, shape, jnp.float32) * s

    # stem weights flattened to (tap*Cin + c, N), K padded 27 -> 32
    stem_w = jnp.zeros((9, 3, 128), jnp.float32).at[:, :, :24].set(
        rnd(ks[0], (9, 3, 24), 0.15)).reshape(27, 128)
    stem_w = jnp.pad(stem_w, ((0, 5), (0, 0)))
    stem_b = jnp.zeros((1, 128), jnp.float32).at[:, :24].set(rnd(ks[1], (1, 24), 0.01))

    # blk weights flattened to (tap*C + c, N)
    blk_w = jnp.zeros((9, 128, 128), jnp.float32).at[:, :24, :48].set(
        rnd(ks[2], (9, 24, 48), 0.05)).reshape(9 * 128, 128)
    blk_b = jnp.zeros((1, 128), jnp.float32).at[:, :48].set(rnd(ks[3], (1, 48), 0.01))

    proj_w = jnp.zeros((128, 1280), jnp.float32).at[:48, :].set(
        rnd(ks[4], (48, 1280), 0.05))
    proj_b = rnd(ks[5], (1, 1280), 0.01)

    return {
        "stem_w": stem_w.astype(jnp.bfloat16), "stem_b": stem_b,
        "blk_w": blk_w.astype(jnp.bfloat16), "blk_b": blk_b,
        "proj_w": proj_w.astype(jnp.bfloat16), "proj_b": proj_b,
        "fc1_w": rnd(ks[6], (1280, 128), 0.02), "fc1_b": rnd(ks[7], (1, 128), 0.01),
        "fc2_w": rnd(ks[8], (128, num_classes), 0.05),
        "fc2_b": rnd(ks[9], (1, num_classes), 0.01),
    }


# ---------------------------------------------------------------------------
# Forward pass (mirrors Effnet.forward: backbone -> view -> head)
# ---------------------------------------------------------------------------
@jax.jit
def effnet_forward(params, x_nchw):
    x = jnp.transpose(x_nchw, (0, 2, 3, 1)).astype(jnp.float32)   # NCHW -> NHWC
    B = x.shape[0]

    # stem: 3x3 s2 conv 3 -> 24 (padded to 128), SiLU            -> bf16
    y = stem_conv3x3_s2(x, params["stem_w"], params["stem_b"])    # [B,H/2,W/2,128]
    # fused-MBConv-style 3x3 s2 conv 24 -> 48 (padded to 128), SiLU -> bf16
    y = conv3x3_s2(y, params["blk_w"], params["blk_b"])           # [B,H/4,W/4,128]

    # fused: 1x1 proj (48->1280) + SiLU + AdaptiveAvgPool2d((1,1)) + head MLP
    hw = y.shape[1] * y.shape[2]
    y = y.reshape(B, hw, y.shape[3])
    return proj_gap_head(y, params["proj_w"], params["proj_b"],
                         params["fc1_w"], params["fc1_b"],
                         params["fc2_w"], params["fc2_b"])


if __name__ == "__main__":
    key = jax.random.PRNGKey(0)
    pkey, xkey = jax.random.split(key)
    params = init_params(pkey, num_classes=10)
    x = jax.random.normal(xkey, (2, 3, 32, 32), jnp.float32)   # NCHW like PyTorch

    out = effnet_forward(params, x)
    out = jax.block_until_ready(out)
    assert out.shape == (2, 10), out.shape
    print("KERNEL_OK")
</pallas_src>

<mosaic_0001>
module attributes {stable_mosaic.version = 11 : i64} {
  func.func @_mm_bias_silu_kernel(%arg0: i32, %arg1: i32, %arg2: memref<1x256x32xbf16, #tpu.memory_space<vmem>>, %arg3: memref<32x128xbf16, #tpu.memory_space<vmem>>, %arg4: memref<1x128xf32, #tpu.memory_space<vmem>>, %arg5: memref<1x256x128xbf16, #tpu.memory_space<vmem>>) attributes {dimension_semantics = [#tpu.dimension_semantics<parallel>, #tpu.dimension_semantics<parallel>], iteration_bounds = array<i64: 2, 1>, scalar_prefetch = 0 : i64, scratch_operands = 0 : i64, tpu.core_type = #tpu.core_type<tc>, window_params = [{transform_indices = @transform_0, window_bounds = array<i64: 1, 256, 32>}, {pipeline_mode = #tpu.pipeline_mode<synchronous>, transform_indices = @transform_1, window_bounds = array<i64: 32, 128>}, {pipeline_mode = #tpu.pipeline_mode<synchronous>, transform_indices = @transform_2, window_bounds = array<i64: 1, 128>}, {transform_indices = @transform_3, window_bounds = array<i64: 1, 256, 128>}]} {
    %c0 = arith.constant 0 : index
    %c0_0 = arith.constant 0 : index
    %c0_1 = arith.constant 0 : index
    %0 = vector.load %arg2[%c0, %c0_0, %c0_1] : memref<1x256x32xbf16, #tpu.memory_space<vmem>>, vector<1x256x32xbf16>
    %1 = vector.shape_cast %0 : vector<1x256x32xbf16> to vector<256x32xbf16>
    %c0_2 = arith.constant 0 : index
    %c0_3 = arith.constant 0 : index
    %2 = vector.load %arg3[%c0_2, %c0_3] : memref<32x128xbf16, #tpu.memory_space<vmem>>, vector<32x128xbf16>
    %cst = arith.constant dense<0.000000e+00> : vector<256x128xf32>
    %3 = tpu.matmul %1, %2, %cst {dimension_numbers = #tpu.dot_dimension_numbers<[1], [0], [0], [1], [0, 0, 1, 1], [], []>} : vector<256x32xbf16>, vector<32x128xbf16>, vector<256x128xf32> -> vector<256x128xf32>
    %c0_4 = arith.constant 0 : index
    %c0_5 = arith.constant 0 : index
    %4 = vector.load %arg4[%c0_4, %c0_5] : memref<1x128xf32, #tpu.memory_space<vmem>>, vector<1x128xf32>
    %5 = vector.broadcast %4 : vector<1x128xf32> to vector<256x128xf32>
    %6 = arith.addf %3, %5 : vector<256x128xf32>
    %7 = arith.negf %6 : vector<256x128xf32>
    %8 = math.exp %7 : vector<256x128xf32>
    %cst_6 = arith.constant 1.000000e+00 : f32
    %9 = vector.broadcast %cst_6 : f32 to vector<256x128xf32>
    %10 = arith.addf %9, %8 : vector<256x128xf32>
    %11 = arith.divf %9, %10 : vector<256x128xf32>
    %12 = arith.mulf %6, %11 : vector<256x128xf32>
    %13 = arith.truncf %12 : vector<256x128xf32> to vector<256x128xbf16>
    %c0_7 = arith.constant 0 : index
    %c0_8 = arith.constant 0 : index
    %c0_9 = arith.constant 0 : index
    %14 = vector.load %arg5[%c0_7, %c0_8, %c0_9] : memref<1x256x128xbf16, #tpu.memory_space<vmem>>, vector<1x256x128xbf16>
    %15 = vector.shape_cast %14 : vector<1x256x128xbf16> to vector<256x128xbf16>
    %16 = vector.shape_cast %13 : vector<256x128xbf16> to vector<1x256x128xbf16>
    tpu.vector_store %arg5[%c0_7, %c0_8, %c0_9], %16 {strides = array<i32>} : memref<1x256x128xbf16, #tpu.memory_space<vmem>>, vector<1x256x128xbf16>,
    return
  }
  func.func @transform_0(%arg0: i32, %arg1: i32) -> (i32, i32, i32) {
    %c0_i32 = arith.constant 0 : i32
    %c0_i32_0 = arith.constant 0 : i32
    return %arg0, %arg1, %c0_i32 : i32, i32, i32
  }
  func.func @transform_1(%arg0: i32, %arg1: i32) -> (i32, i32) {
    %c0_i32 = arith.constant 0 : i32
    %c0_i32_0 = arith.constant 0 : i32
    %c0_i32_1 = arith.constant 0 : i32
    return %c0_i32, %c0_i32_0 : i32, i32
  }
  func.func @transform_2(%arg0: i32, %arg1: i32) -> (i32, i32) {
    %c0_i32 = arith.constant 0 : i32
    %c0_i32_0 = arith.constant 0 : i32
    %c0_i32_1 = arith.constant 0 : i32
    return %c0_i32, %c0_i32_0 : i32, i32
  }
  func.func @transform_3(%arg0: i32, %arg1: i32) -> (i32, i32, i32) {
    %c0_i32 = arith.constant 0 : i32
    %c0_i32_0 = arith.constant 0 : i32
    return %arg0, %arg1, %c0_i32 : i32, i32, i32
  }
}

module attributes {stable_mosaic.version = 11 : i64} {
  func.func @_conv3x3_s2_kernel(%arg0: i32, %arg1: i32, %arg2: memref<4x8x9x128xbf16, #tpu.memory_space<vmem>>, %arg3: memref<4x1x9x128xbf16, #tpu.memory_space<vmem>>, %arg4: memref<1152x128xbf16, #tpu.memory_space<vmem>>, %arg5: memref<1x128xf32, #tpu.memory_space<vmem>>, %arg6: memref<1x8x8x128xbf16, #tpu.memory_space<vmem>>) attributes {dimension_semantics = [#tpu.dimension_semantics<parallel>, #tpu.dimension_semantics<parallel>], iteration_bounds = array<i64: 2, 1>, scalar_prefetch = 0 : i64, scratch_operands = 0 : i64, tpu.core_type = #tpu.core_type<tc>, window_params = [{transform_indices = @transform_0, window_bounds = array<i64: 4, 8, 9, 128>}, {transform_indices = @transform_1, window_bounds = array<i64: 4, 1, 9, 128>}, {pipeline_mode = #tpu.pipeline_mode<synchronous>, transform_indices = @transform_2, window_bounds = array<i64: 1152, 128>}, {pipeline_mode = #tpu.pipeline_mode<synchronous>, transform_indices = @transform_3, window_bounds = array<i64: 1, 128>}, {transform_indices = @transform_4, window_bounds = array<i64: 1, 8, 8, 128>}]} {
    %c0 = arith.constant 0 : index
    %c0_0 = arith.constant 0 : index
    %c0_1 = arith.constant 0 : index
    %c0_2 = arith.constant 0 : index
    %0 = vector.load %arg2[%c0, %c0_0, %c0_1, %c0_2] : memref<4x8x9x128xbf16, #tpu.memory_space<vmem>>, vector<4x8x9x128xbf16>
    %c0_3 = arith.constant 0 : index
    %c0_4 = arith.constant 0 : index
    %c0_5 = arith.constant 0 : index
    %c0_6 = arith.constant 0 : index
    %1 = vector.load %arg3[%c0_3, %c0_4, %c0_5, %c0_6] : memref<4x1x9x128xbf16, #tpu.memory_space<vmem>>, vector<4x1x9x128xbf16>
    %2 = tpu.concatenate %0, %1 in 1 : vector<4x8x9x128xbf16>, vector<4x1x9x128xbf16> -> vector<4x9x9x128xbf16>
    %3 = vector.extract_strided_slice %2 {offsets = [0, 0, 0, 0], sizes = [1, 8, 8, 128], strides = [1, 1, 1, 1]} : vector<4x9x9x128xbf16> to vector<1x8x8x128xbf16>
    %4 = vector.shape_cast %3 : vector<1x8x8x128xbf16> to vector<8x8x128xbf16>
    %5 = vector.extract_strided_slice %2 {offsets = [1, 0, 0, 0], sizes = [1, 8, 8, 128], strides = [1, 1, 1, 1]} : vector<4x9x9x128xbf16> to vector<1x8x8x128xbf16>
    %6 = vector.shape_cast %5 : vector<1x8x8x128xbf16> to vector<8x8x128xbf16>
    %7 = vector.extract_strided_slice %2 {offsets = [0, 0, 1, 0], sizes = [1, 8, 8, 128], strides = [1, 1, 1, 1]} : vector<4x9x9x128xbf16> to vector<1x8x8x128xbf16>
    %8 = vector.shape_cast %7 : vector<1x8x8x128xbf16> to vector<8x8x128xbf16>
    %9 = vector.extract_strided_slice %2 {offsets = [2, 0, 0, 0], sizes = [1, 8, 8, 128], strides = [1, 1, 1, 1]} : vector<4x9x9x128xbf16> to vector<1x8x8x128xbf16>
    %10 = vector.shape_cast %9 : vector<1x8x8x128xbf16> to vector<8x8x128xbf16>
    %11 = vector.extract_strided_slice %2 {offsets = [3, 0, 0, 0], sizes = [1, 8, 8, 128], strides = [1, 1, 1, 1]} : vector<4x9x9x128xbf16> to vector<1x8x8x128xbf16>
    %12 = vector.shape_cast %11 : vector<1x8x8x128xbf16> to vector<8x8x128xbf16>
    %13 = vector.extract_strided_slice %2 {offsets = [2, 0, 1, 0], sizes = [1, 8, 8, 128], strides = [1, 1, 1, 1]} : vector<4x9x9x128xbf16> to vector<1x8x8x128xbf16>
    %14 = vector.shape_cast %13 : vector<1x8x8x128xbf16> to vector<8x8x128xbf16>
    %15 = vector.extract_strided_slice %2 {offsets = [0, 1, 0, 0], sizes = [1, 8, 8, 128], strides = [1, 1, 1, 1]} : vector<4x9x9x128xbf16> to vector<1x8x8x128xbf16>
    %16 = vector.shape_cast %15 : vector<1x8x8x128xbf16> to vector<8x8x128xbf16>
    %17 = vector.extract_strided_slice %2 {offsets = [1, 1, 0, 0], sizes = [1, 8, 8, 128], strides = [1, 1, 1, 1]} : vector<4x9x9x128xbf16> to vector<1x8x8x128xbf16>
    %18 = vector.shape_cast %17 : vector<1x8x8x128xbf16> to vector<8x8x128xbf16>
    %19 = vector.extract_strided_slice %2 {offsets = [0, 1, 1, 0], sizes = [1, 8, 8, 128], strides = [1, 1, 1, 1]} : vector<4x9x9x128xbf16> to vector<1x8x8x128xbf16>
    %20 = vector.shape_cast %19 : vector<1x8x8x128xbf16> to vector<8x8x128xbf16>
    %21 = tpu.concatenate %4, %6, %8, %10, %12, %14, %16, %18, %20 in 2 : vector<8x8x128xbf16>, vector<8x8x128xbf16>, vector<8x8x128xbf16>, vector<8x8x128xbf16>, vector<8x8x128xbf16>, vector<8x8x128xbf16>, vector<8x8x128xbf16>, vector<8x8x128xbf16>, vector<8x8x128xbf16> -> vector<8x8x1152xbf16>
    %22 = vector.shape_cast %21 : vector<8x8x1152xbf16> to vector<64x1152xbf16>
    %c0_7 = arith.constant 0 : index
    %c0_8 = arith.constant 0 : index
    %23 = vector.load %arg4[%c0_7, %c0_8] : memref<1152x128xbf16, #tpu.memory_space<vmem>>, vector<1152x128xbf16>
    %cst = arith.constant dense<0.000000e+00> : vector<64x128xf32>
    %24 = tpu.matmul %22, %23, %cst {dimension_numbers = #tpu.dot_dimension_numbers<[1], [0], [0], [1], [0, 0, 1, 1], [], []>} : vector<64x1152xbf16>, vector<1152x128xbf16>, vector<64x128xf32> -> vector<64x128xf32>
    %c0_9 = arith.constant 0 : index
    %c0_10 = arith.constant 0 : index
    %25 = vector.load %arg5[%c0_9, %c0_10] : memref<1x128xf32, #tpu.memory_space<vmem>>, vector<1x128xf32>
    %26 = vector.broadcast %25 : vector<1x128xf32> to vector<64x128xf32>
    %27 = arith.addf %24, %26 : vector<64x128xf32>
    %28 = arith.negf %27 : vector<64x128xf32>
    %29 = math.exp %28 : vector<64x128xf32>
    %cst_11 = arith.constant 1.000000e+00 : f32
    %30 = vector.broadcast %cst_11 : f32 to vector<64x128xf32>
    %31 = arith.addf %30, %29 : vector<64x128xf32>
    %32 = arith.divf %30, %31 : vector<64x128xf32>
    %33 = arith.mulf %27, %32 : vector<64x128xf32>
    %34 = vector.shape_cast %33 : vector<64x128xf32> to vector<8x8x128xf32>
    %35 = arith.truncf %34 : vector<8x8x128xf32> to vector<8x8x128xbf16>
    %c0_12 = arith.constant 0 : index
    %c0_13 = arith.constant 0 : index
    %c0_14 = arith.constant 0 : index
    %c0_15 = arith.constant 0 : index
    %36 = vector.load %arg6[%c0_12, %c0_13, %c0_14, %c0_15] : memref<1x8x8x128xbf16, #tpu.memory_space<vmem>>, vector<1x8x8x128xbf16>
    %37 = vector.shape_cast %36 : vector<1x8x8x128xbf16> to vector<8x8x128xbf16>
    %38 = vector.shape_cast %35 : vector<8x8x128xbf16> to vector<1x8x8x128xbf16>
    tpu.vector_store %arg6[%c0_12, %c0_13, %c0_14, %c0_15], %38 {strides = array<i32>} : memref<1x8x8x128xbf16, #tpu.memory_space<vmem>>, vector<1x8x8x128xbf16>,
    return
  }
  func.func @transform_0(%arg0: i32, %arg1: i32) -> (i32, i32, i32, i32) {
    %c0_i32 = arith.constant 0 : i32
    %c0_i32_0 = arith.constant 0 : i32
    %c0_i32_1 = arith.constant 0 : i32
    return %arg0, %arg1, %c0_i32, %c0_i32_0 : i32, i32, i32, i32
  }
  func.func @transform_1(%arg0: i32, %arg1: i32) -> (i32, i32, i32, i32) {
    %c1_i32 = arith.constant 1 : i32
    %0 = arith.addi %arg1, %c1_i32 : i32
    %c8_i32 = arith.constant 8 : i32
    %1 = arith.muli %0, %c8_i32 : i32
    %c0_i32 = arith.constant 0 : i32
    %c0_i32_0 = arith.constant 0 : i32
    %c0_i32_1 = arith.constant 0 : i32
    return %arg0, %1, %c0_i32, %c0_i32_0 : i32, i32, i32, i32
  }
  func.func @transform_2(%arg0: i32, %arg1: i32) -> (i32, i32) {
    %c0_i32 = arith.constant 0 : i32
    %c0_i32_0 = arith.constant 0 : i32
    %c0_i32_1 = arith.constant 0 : i32
    return %c0_i32, %c0_i32_0 : i32, i32
  }
  func.func @transform_3(%arg0: i32, %arg1: i32) -> (i32, i32) {
    %c0_i32 = arith.constant 0 : i32
    %c0_i32_0 = arith.constant 0 : i32
    %c0_i32_1 = arith.constant 0 : i32
    return %c0_i32, %c0_i32_0 : i32, i32
  }
  func.func @transform_4(%arg0: i32, %arg1: i32) -> (i32, i32, i32, i32) {
    %c0_i32 = arith.constant 0 : i32
    %c0_i32_0 = arith.constant 0 : i32
    %c0_i32_1 = arith.constant 0 : i32
    return %arg0, %arg1, %c0_i32, %c0_i32_0 : i32, i32, i32, i32
  }
}

module attributes {stable_mosaic.version = 11 : i64} {
  func.func @_proj_gap_head_kernel(%arg0: i32, %arg1: i32, %arg2: memref<1x64x128xbf16, #tpu.memory_space<vmem>>, %arg3: memref<128x1280xbf16, #tpu.memory_space<vmem>>, %arg4: memref<1x1280xf32, #tpu.memory_space<vmem>>, %arg5: memref<1280x128xf32, #tpu.memory_space<vmem>>, %arg6: memref<1x128xf32, #tpu.memory_space<vmem>>, %arg7: memref<128x10xf32, #tpu.memory_space<vmem>>, %arg8: memref<1x10xf32, #tpu.memory_space<vmem>>, %arg9: memref<1x1x10xf32, #tpu.memory_space<vmem>>, %arg10: memref<1x1280xf32, #tpu.memory_space<vmem>>) attributes {dimension_semantics = [#tpu.dimension_semantics<parallel>, #tpu.dimension_semantics<arbitrary>], iteration_bounds = array<i64: 2, 1>, scalar_prefetch = 0 : i64, scratch_operands = 1 : i64, tpu.core_type = #tpu.core_type<tc>, window_params = [{transform_indices = @transform_0, window_bounds = array<i64: 1, 64, 128>}, {pipeline_mode = #tpu.pipeline_mode<synchronous>, transform_indices = @transform_1, window_bounds = array<i64: 128, 1280>}, {pipeline_mode = #tpu.pipeline_mode<synchronous>, transform_indices = @transform_2, window_bounds = array<i64: 1, 1280>}, {pipeline_mode = #tpu.pipeline_mode<synchronous>, transform_indices = @transform_3, window_bounds = array<i64: 1280, 128>}, {pipeline_mode = #tpu.pipeline_mode<synchronous>, transform_indices = @transform_4, window_bounds = array<i64: 1, 128>}, {pipeline_mode = #tpu.pipeline_mode<synchronous>, transform_indices = @transform_5, window_bounds = array<i64: 128, 10>}, {pipeline_mode = #tpu.pipeline_mode<synchronous>, transform_indices = @transform_6, window_bounds = array<i64: 1, 10>}, {transform_indices = @transform_7, window_bounds = array<i64: 1, 1, 10>}]} {
    %c0_i32 = arith.constant 0 : i32
    %0 = arith.cmpi eq, %arg1, %c0_i32 : i32
    %1 = arith.extui %0 : i1 to i32
    %c0_i32_0 = arith.constant 0 : i32
    %2 = arith.cmpi ne, %1, %c0_i32_0 : i32
    scf.if %2 {
      %cst_15 = arith.constant 0.000000e+00 : f32
      %24 = vector.broadcast %cst_15 : f32 to vector<1x1280xf32>
      %c0_16 = arith.constant 0 : index
      %c0_17 = arith.constant 0 : index
      %25 = vector.load %arg10[%c0_16, %c0_17] : memref<1x1280xf32, #tpu.memory_space<vmem>>, vector<1x1280xf32>
      tpu.vector_store %arg10[%c0_16, %c0_17], %24 {strides = array<i32>} : memref<1x1280xf32, #tpu.memory_space<vmem>>, vector<1x1280xf32>,
    } else {
    }
    %c0 = arith.constant 0 : index
    %c0_1 = arith.constant 0 : index
    %c0_2 = arith.constant 0 : index
    %3 = vector.load %arg2[%c0, %c0_1, %c0_2] : memref<1x64x128xbf16, #tpu.memory_space<vmem>>, vector<1x64x128xbf16>
    %4 = vector.shape_cast %3 : vector<1x64x128xbf16> to vector<64x128xbf16>
    %c0_3 = arith.constant 0 : index
    %c0_4 = arith.constant 0 : index
    %5 = vector.load %arg3[%c0_3, %c0_4] : memref<128x1280xbf16, #tpu.memory_space<vmem>>, vector<128x1280xbf16>
    %cst = arith.constant dense<0.000000e+00> : vector<64x1280xf32>
    %6 = tpu.matmul %4, %5, %cst {dimension_numbers = #tpu.dot_dimension_numbers<[1], [0], [0], [1], [0, 0, 1, 1], [], []>} : vector<64x128xbf16>, vector<128x1280xbf16>, vector<64x1280xf32> -> vector<64x1280xf32>
    %c0_5 = arith.constant 0 : index
    %c0_6 = arith.constant 0 : index
    %7 = vector.load %arg4[%c0_5, %c0_6] : memref<1x1280xf32, #tpu.memory_space<vmem>>, vector<1x1280xf32>
    %8 = vector.broadcast %7 : vector<1x1280xf32> to vector<64x1280xf32>
    %9 = arith.addf %6, %8 : vector<64x1280xf32>
    %10 = arith.negf %9 : vector<64x1280xf32>
    %11 = math.exp %10 : vector<64x1280xf32>
    %cst_7 = arith.constant 1.000000e+00 : f32
    %12 = vector.broadcast %cst_7 : f32 to vector<64x1280xf32>
    %13 = arith.addf %12, %11 : vector<64x1280xf32>
    %14 = arith.divf %12, %13 : vector<64x1280xf32>
    %15 = arith.mulf %9, %14 : vector<64x1280xf32>
    %c0_8 = arith.constant 0 : index
    %c0_9 = arith.constant 0 : index
    %16 = vector.load %arg10[%c0_8, %c0_9] : memref<1x1280xf32, #tpu.memory_space<vmem>>, vector<1x1280xf32>
    %cst_10 = arith.constant dense<0.000000e+00> : vector<1280xf32>
    %17 = vector.multi_reduction <add>, %15, %cst_10 [0] : vector<64x1280xf32> to vector<1280xf32>
    %18 = vector.shape_cast %17 : vector<1280xf32> to vector<1x1280xf32>
    %19 = arith.addf %16, %18 : vector<1x1280xf32>
    %c0_11 = arith.constant 0 : index
    %c0_12 = arith.constant 0 : index
    %20 = vector.load %arg10[%c0_11, %c0_12] : memref<1x1280xf32, #tpu.memory_space<vmem>>, vector<1x1280xf32>
    tpu.vector_store %arg10[%c0_11, %c0_12], %19 {strides = array<i32>} : memref<1x1280xf32, #tpu.memory_space<vmem>>, vector<1x1280xf32>,
    %c0_i32_13 = arith.constant 0 : i32
    %21 = arith.cmpi eq, %arg1, %c0_i32_13 : i32
    %22 = arith.extui %21 : i1 to i32
    %c0_i32_14 = arith.constant 0 : i32
    %23 = arith.cmpi ne, %22, %c0_i32_14 : i32
    scf.if %23 {
      %c0_15 = arith.constant 0 : index
      %c0_16 = arith.constant 0 : index
      %24 = vector.load %arg10[%c0_15, %c0_16] : memref<1x1280xf32, #tpu.memory_space<vmem>>, vector<1x1280xf32>
      %cst_17 = arith.constant 1.562500e-02 : f32
      %25 = vector.broadcast %cst_17 : f32 to vector<1x1280xf32>
      %26 = arith.mulf %24, %25 : vector<1x1280xf32>
      %c0_18 = arith.constant 0 : index
      %c0_19 = arith.constant 0 : index
      %27 = vector.load %arg5[%c0_18, %c0_19] : memref<1280x128xf32, #tpu.memory_space<vmem>>, vector<1280x128xf32>
      %cst_20 = arith.constant dense<0.000000e+00> : vector<1x128xf32>
      %28 = tpu.matmul %26, %27, %cst_20 {dimension_numbers = #tpu.dot_dimension_numbers<[1], [0], [0], [1], [0, 0, 1, 1], [], []>} : vector<1x1280xf32>, vector<1280x128xf32>, vector<1x128xf32> -> vector<1x128xf32>
      %c0_21 = arith.constant 0 : index
      %c0_22 = arith.constant 0 : index
      %29 = vector.load %arg6[%c0_21, %c0_22] : memref<1x128xf32, #tpu.memory_space<vmem>>, vector<1x128xf32>
      %30 = arith.addf %28, %29 : vector<1x128xf32>
      %c0_23 = arith.constant 0 : index
      %c0_24 = arith.constant 0 : index
      %31 = vector.load %arg7[%c0_23, %c0_24] : memref<128x10xf32, #tpu.memory_space<vmem>>, vector<128x10xf32>
      %cst_25 = arith.constant dense<0.000000e+00> : vector<1x10xf32>
      %32 = tpu.matmul %30, %31, %cst_25 {dimension_numbers = #tpu.dot_dimension_numbers<[1], [0], [0], [1], [0, 0, 1, 1], [], []>} : vector<1x128xf32>, vector<128x10xf32>, vector<1x10xf32> -> vector<1x10xf32>
      %c0_26 = arith.constant 0 : index
      %c0_27 = arith.constant 0 : index
      %33 = vector.load %arg8[%c0_26, %c0_27] : memref<1x10xf32, #tpu.memory_space<vmem>>, vector<1x10xf32>
      %34 = arith.addf %32, %33 : vector<1x10xf32>
      %c0_28 = arith.constant 0 : index
      %c0_29 = arith.constant 0 : index
      %c0_30 = arith.constant 0 : index
      %35 = vector.load %arg9[%c0_28, %c0_29, %c0_30] : memref<1x1x10xf32, #tpu.memory_space<vmem>>, vector<1x1x10xf32>
      %36 = vector.shape_cast %35 : vector<1x1x10xf32> to vector<1x10xf32>
      %37 = vector.shape_cast %34 : vector<1x10xf32> to vector<1x1x10xf32>
      tpu.vector_store %arg9[%c0_28, %c0_29, %c0_30], %37 {strides = array<i32>} : memref<1x1x10xf32, #tpu.memory_space<vmem>>, vector<1x1x10xf32>,
    } else {
    }
    return
  }
  func.func @transform_0(%arg0: i32, %arg1: i32) -> (i32, i32, i32) {
    %c0_i32 = arith.constant 0 : i32
    %c0_i32_0 = arith.constant 0 : i32
    return %arg0, %arg1, %c0_i32 : i32, i32, i32
  }
  func.func @transform_1(%arg0: i32, %arg1: i32) -> (i32, i32) {
    %c0_i32 = arith.constant 0 : i32
    %c0_i32_0 = arith.constant 0 : i32
    %c0_i32_1 = arith.constant 0 : i32
    return %c0_i32, %c0_i32_0 : i32, i32
  }
  func.func @transform_2(%arg0: i32, %arg1: i32) -> (i32, i32) {
    %c0_i32 = arith.constant 0 : i32
    %c0_i32_0 = arith.constant 0 : i32
    %c0_i32_1 = arith.constant 0 : i32
    return %c0_i32, %c0_i32_0 : i32, i32
  }
  func.func @transform_3(%arg0: i32, %arg1: i32) -> (i32, i32) {
    %c0_i32 = arith.constant 0 : i32
    %c0_i32_0 = arith.constant 0 : i32
    %c0_i32_1 = arith.constant 0 : i32
    return %c0_i32, %c0_i32_0 : i32, i32
  }
  func.func @transform_4(%arg0: i32, %arg1: i32) -> (i32, i32) {
    %c0_i32 = arith.constant 0 : i32
    %c0_i32_0 = arith.constant 0 : i32
    %c0_i32_1 = arith.constant 0 : i32
    return %c0_i32, %c0_i32_0 : i32, i32
  }
  func.func @transform_5(%arg0: i32, %arg1: i32) -> (i32, i32) {
    %c0_i32 = arith.constant 0 : i32
    %c0_i32_0 = arith.constant 0 : i32
    %c0_i32_1 = arith.constant 0 : i32
    return %c0_i32, %c0_i32_0 : i32, i32
  }
  func.func @transform_6(%arg0: i32, %arg1: i32) -> (i32, i32) {
    %c0_i32 = arith.constant 0 : i32
    %c0_i32_0 = arith.constant 0 : i32
    %c0_i32_1 = arith.constant 0 : i32
    return %c0_i32, %c0_i32_0 : i32, i32
  }
  func.func @transform_7(%arg0: i32, %arg1: i32) -> (i32, i32, i32) {
    %c0_i32 = arith.constant 0 : i32
    %c0_i32_0 = arith.constant 0 : i32
    %c0_i32_1 = arith.constant 0 : i32
    return %arg0, %c0_i32, %c0_i32_0 : i32, i32, i32
  }
}

</mosaic_0001>

<bundles_post_ra>
// kernel: effnet_forward.3
= control target key start
LH: loop header
LB: loop body
LE: loop exit
PB: predicated region body
PF: predicated region fallthrough
CT: control target
= control target key end

     0   :  { %s1538_s12 = smov 0   ;;  %s1540_s13 = smov 0   ;;  %s1828_s0 = inlined_call_operand.vmem [shape: bf16[2,256,32], index: 0, kind: input, shape index: {}]   ;;  %s1829_s1 = inlined_call_operand.vmem [shape: bf16[32,128], index: 1, kind: input, shape index: {}]   ;;  %s1830_s2 = inlined_call_operand.vmem [shape: f32[1,128], index: 2, kind: input, shape index: {}]   ;;  %s1831_s3 = inlined_call_operand.vmem [shape: bf16[2,256,128], index: 3, kind: output, shape index: {}]  }
   0x1   :  { %s1542_s14 = smov 0  }
   0x2 LB: > { %s25_s15 = sadd.s32 1, %s1512_s13  ;;  %p1031_p0 = scmp.ge.s32.totalorder %s1516_s14, 1  ;;  %s1516_s14 = sphi %s1542_s14, %s13_s14   ;;  %s1512_s13 = sphi %s1540_s13, %s1833_s13   ;;  %s1508_s12 = sphi %s1538_s12, %s1832_s12  }
   0x3   : > { %p27_p1 = scmp.ge.s32.totalorder %s25_s15, 2  ;;  %p158_p2 = scmp.lt.s32.totalorder %s1516_s14, 3 }
   0x5   : > { %s1835_s15 = smov (%p27_p1, %s25_s15), 0  ;;  %p159_p3 = pnand %p1031_p0, %p158_p2 }
   0x6   : > { %v1348_v0 = vld [vmem:[%s1829_s1] sm:$0xff] (!%p159_p3)   ;;  %p191_p4 = scmp.lt.s32.totalorder (!%p159_p3), %s1508_s12, 1  ;;  %v1349_v1 = vld [vmem:[%s1829_s1 + $0x8] sm:$0xff] (!%p159_p3)   ;;  %vm346_vm0 = vcmask (!%p159_p3), 261120  }
   0x7   : > { %162 = sbr.rel (%p159_p3) target bundleno = 321 (0x141), region = 32  ;;  %1284 = vmatprep.subr.bf16.mxu0 (!%p159_p3), %v1348_v0  ;;  %1320 = vmatprep.subr.bf16.mxu1 (!%p159_p3), %v1348_v0  ;;  %v1607_v18 = vld [vmem:[%s1830_s2] ss:$0 sm:$0xff] (!%p159_p3) }
   0x8   : > { %1285 = vmatpush3.bf16.msra.mxu0 (!%p159_p3), %v1348_v0  ;;  %1322 = vmatpush3.bf16.msra.mxu1 (!%p159_p3), %v1348_v0 }
   0x9   : > { %1286 = vmatprep.subr.bf16.mxu0 (!%p159_p3), %v1349_v1  ;;  %1321 = vmatprep.subr.bf16.mxu1 (!%p159_p3), %v1349_v1 }
   0xc   : > { %1287 = vmatpush3.bf16.msra.mxu0 (!%p159_p3), %v1349_v1  ;;  %1323 = vmatpush3.bf16.msra.mxu1 (!%p159_p3), %v1349_v1 }
   0xe   : > { %s1837_s12 = smov (!%p191_p4, %s1508_s12), 1 }
   0xf   : > { %s1137_s20 = sshll.u32 %s1837_s12, 7 }
  0x10   : > { %s1570_s23 = scalar_lea.vmem %s1828_s0, %s1137_s20  ;;  %s1727_s28 = scalar_lea.vmem %s1831_s3, %s1137_s20 }
  0x11   : > { %v1350_v2 = vld [vmem:[%s1570_s23] sm:$0xff]   ;;  %v1352_v4 = vld [vmem:[%s1570_s23 + $0x8] sm:$0xff]   ;;  %v1354_v6 = vld [vmem:[%s1570_s23 + $0x10] sm:$0xff]  }
  0x12   : > { %v1351_v3 = vld [vmem:[%s1570_s23 + $0x40] sm:$0xff]   ;;  %1288 = vmatprep.mubr.msk.bf16.mxu0 %vm346_vm0, %v1350_v2  ;;  %v1353_v5 = vld [vmem:[%s1570_s23 + $0x48] sm:$0xff]   ;;  %v1355_v7 = vld [vmem:[%s1570_s23 + $0x50] sm:$0xff]  }
  0x13   : > { %1304 = vmatprep.mubr.msk.bf16.mxu1 %vm346_vm0, %v1351_v3  ;;  %1289 = vmatmul.mubr.msk.bf16.vlgmr.msra.gmra.mrb[0].mxu0 %vm346_vm0, %v1352_v4  ;;  %v1356_v8 = vld [vmem:[%s1570_s23 + $0x18] sm:$0xff]   ;;  %v1358_v10 = vld [vmem:[%s1570_s23 + $0x20] sm:$0xff]   ;;  %v1360_v12 = vld [vmem:[%s1570_s23 + $0x28] sm:$0xff]  }
  0x14   : > { %1305 = vmatmul.mubr.msk.bf16.vlgmr.msra.gmra.mrb[0].mxu1 %vm346_vm0, %v1353_v5  ;;  %1292 = vmatprep.mubr.msk.bf16.mxu0 %vm346_vm0, %v1354_v6  ;;  %v1357_v9 = vld [vmem:[%s1570_s23 + $0x58] sm:$0xff]   ;;  %v1359_v11 = vld [vmem:[%s1570_s23 + $0x60] sm:$0xff]   ;;  %v1361_v13 = vld [vmem:[%s1570_s23 + $0x68] sm:$0xff]  }
  0x15   : > { %1308 = vmatprep.mubr.msk.bf16.mxu1 %vm346_vm0, %v1355_v7  ;;  %v1362_v14 = vld [vmem:[%s1570_s23 + $0x30] sm:$0xff]   ;;  %v1364_v16 = vld [vmem:[%s1570_s23 + $0x38] sm:$0xff]  }
  0x16   : > { %v1363_v15 = vld [vmem:[%s1570_s23 + $0x70] sm:$0xff]   ;;  %v1365_v17 = vld [vmem:[%s1570_s23 + $0x78] sm:$0xff]  }
  0x1b   : > { %1293 = vmatmul.mubr.msk.bf16.gmra.mrb[4].mxu0 %vm346_vm0, %v1356_v8 }
  0x1c   : > { %1309 = vmatmul.mubr.msk.bf16.gmra.mrb[4].mxu1 %vm346_vm0, %v1357_v9  ;;  %1296 = vmatprep.mubr.msk.bf16.mxu0 %vm346_vm0, %v1358_v10 }
  0x1d   : > { %1312 = vmatprep.mubr.msk.bf16.mxu1 %vm346_vm0, %v1359_v11 }
  0x23   : > { %1297 = vmatmul.mubr.msk.bf16.gmra.mrb[8].mxu0 %vm346_vm0, %v1360_v12 }
  0x24   : > { %1313 = vmatmul.mubr.msk.bf16.gmra.mrb[8].mxu1 %vm346_vm0, %v1361_v13  ;;  %1300 = vmatprep.mubr.msk.bf16.mxu0 %vm346_vm0, %v1362_v14 }
  0x25   : > { %1316 = vmatprep.mubr.msk.bf16.mxu1 %vm346_vm0, %v1363_v15 }
  0x2b   : > { %1301 = vmatmul.mubr.msk.bf16.gmra.mrb[12].mxu0 %vm346_vm0, %v1364_v16 }
  0x2c   : > { %1317 = vmatmul.mubr.msk.bf16.gmra.mrb[12].mxu1 %vm346_vm0, %v1365_v17 }
  0xe6   : > { %v1290_v19 = vpop.f32.mrb[0].mxu0 }
  0xe7   : > { %v1610_v20 = vadd.f32 %v1290_v19, %v1607_v18  ;;  %v1306_v21 = vpop.f32.mrb[0].mxu1  ;;  %v429_v22 = vpop.f32.mrb[1].mxu0 }
  0xe8   : > { %v1613_v23 = vadd.f32 %v1306_v21, %v1607_v18  ;;  %v1616_v24 = vadd.f32 %v1607_v18, %v429_v22  ;;  %v493_v25 = vpop.f32.mrb[1].mxu1  ;;  %v1291_v26 = vpop.f32.mrb[2].mxu0 }
  0xe9   : > { %v1073_v27 = vmul.f32 -1.442695, %v1610_v20  ;;  %v1620_v28 = vadd.f32 %v1607_v18, %v493_v25  ;;  %v1623_v29 = vadd.f32 %v1291_v26, %v1607_v18  ;;  %v1307_v30 = vpop.f32.mrb[2].mxu1  ;;  %v432_v31 = vpop.f32.mrb[3].mxu0 }
  0xea   : > { %v1089_v32 = vmul.f32 -1.442695, %v1613_v23  ;;  %v1071_v33 = vmul.f32 -1.442695, %v1616_v24  ;;  %v1628_v34 = vadd.f32 %v1307_v30, %v1607_v18  ;;  %v1631_v35 = vadd.f32 %v1607_v18, %v432_v31  ;;  %v496_v36 = vpop.f32.mrb[3].mxu1 }
  0xeb   : > { %1366 = vpow2.f32 %v1073_v27  ;;  %v1087_v37 = vmul.f32 -1.442695, %v1620_v28  ;;  %v1074_v38 = vmul.f32 -1.442695, %v1623_v29  ;;  %v1636_v39 = vadd.f32 %v1607_v18, %v496_v36 }
  0xec   : > { %1368 = vpow2.f32 %v1089_v32  ;;  %v1090_v40 = vmul.f32 -1.442695, %v1628_v34  ;;  %v1072_v41 = vmul.f32 -1.442695, %v1631_v35 }
  0xed   : > { %1370 = vpow2.f32 %v1071_v33  ;;  %v1088_v42 = vmul.f32 -1.442695, %v1636_v39 }
  0xee   : > { %1372 = vpow2.f32 %v1087_v37  ;;  %v1294_v43 = vpop.f32.mrb[4].mxu0 }
  0xef   : > { %1374 = vpow2.f32 %v1074_v38  ;;  %v1642_v44 = vadd.f32 %v1294_v43, %v1607_v18  ;;  %v1310_v45 = vpop.f32.mrb[4].mxu1  ;;  %v445_v46 = vpop.f32.mrb[5].mxu0 }
  0xf0   : > { %1376 = vpow2.f32 %v1090_v40  ;;  %v1645_v47 = vadd.f32 %v1310_v45, %v1607_v18  ;;  %v1648_v48 = vadd.f32 %v1607_v18, %v445_v46  ;;  %v509_v49 = vpop.f32.mrb[5].mxu1  ;;  %v1295_v50 = vpop.f32.mrb[6].mxu0 }
  0xf1   : > { %1378 = vpow2.f32 %v1072_v41  ;;  %v1077_v51 = vmul.f32 -1.442695, %v1642_v44  ;;  %v1652_v52 = vadd.f32 %v1607_v18, %v509_v49  ;;  %v1655_v53 = vadd.f32 %v1295_v50, %v1607_v18  ;;  %v1311_v54 = vpop.f32.mrb[6].mxu1  ;;  %v448_v55 = vpop.f32.mrb[7].mxu0 }
  0xf2   : > { %1380 = vpow2.f32 %v1088_v42  ;;  %v1093_v56 = vmul.f32 -1.442695, %v1645_v47  ;;  %v1075_v57 = vmul.f32 -1.442695, %v1648_v48  ;;  %v512_v58 = vpop.f32.mrb[7].mxu1  ;;  %v1662_v15 = vadd.f32 %v1311_v54, %v1607_v18 }
  0xf3   : > { %1382 = vpow2.f32 %v1077_v51  ;;  %v1091_v59 = vmul.f32 -1.442695, %v1652_v52  ;;  %v1078_v60 = vmul.f32 -1.442695, %v1655_v53  ;;  %v1665_v21 = vadd.f32 %v1607_v18, %v448_v55 }
  0xf4   : > { %1384 = vpow2.f32 %v1093_v56  ;;  %v1094_v32 = vmul.f32 -1.442695, %v1662_v15  ;;  %v1669_v33 = vadd.f32 %v1607_v18, %v512_v58 }
  0xf5   : > { %v1367_v61 = vpop.eup %1366  ;;  %1386 = vpow2.f32 %v1075_v57  ;;  %v1076_v40 = vmul.f32 -1.442695, %v1665_v21 }
  0xf6   : > { %v1369_v62 = vpop.eup %1368  ;;  %v654_v63 = vadd.f32 1.0, %v1367_v61  ;;  %1388 = vpow2.f32 %v1091_v59  ;;  %v1298_v0 = vpop.f32.mrb[8].mxu0 }
  0xf7   : > { %v1371_v1 = vpop.eup %1370  ;;  %v670_v2 = vadd.f32 1.0, %v1369_v62  ;;  %1390 = vpow2.f32 %v1078_v60  ;;  %v1314_v3 = vpop.f32.mrb[8].mxu1  ;;  %v1673_v41 = vadd.f32 %v1298_v0, %v1607_v18 }
  0xf8   : > { %v461_v4 = vpop.f32.mrb[9].mxu0  ;;  %v1373_v5 = vpop.eup %1372  ;;  %1392 = vrcp.f32 %v654_v63  ;;  %v652_v6 = vadd.f32 1.0, %v1371_v1  ;;  %v1678_v49 = vadd.f32 %v1314_v3, %v1607_v18  ;;  %v1092_v3 = vmul.f32 -1.442695, %v1669_v33 }
  0xf9   : > { %v525_v7 = vpop.f32.mrb[9].mxu1  ;;  %v1299_v8 = vpop.f32.mrb[10].mxu0  ;;  %1394 = vrcp.f32 %v670_v2  ;;  %v668_v10 = vadd.f32 1.0, %v1373_v5  ;;  %v1681_v50 = vadd.f32 %v1607_v18, %v461_v4  ;;  %v1081_v5 = vmul.f32 -1.442695, %v1673_v41 }
  0xfa   : > { %v1375_v9 = vpop.eup %1374  ;;  %v1315_v11 = vpop.f32.mrb[10].mxu1  ;;  %1396 = vrcp.f32 %v652_v6  ;;  %v1688_v57 = vadd.f32 %v1607_v18, %v525_v7  ;;  %v1691_v58 = vadd.f32 %v1299_v8, %v1607_v18  ;;  %v1097_v6 = vmul.f32 -1.442695, %v1678_v49 }
  0xfb   : > { %v464_v12 = vpop.f32.mrb[11].mxu0  ;;  %v1377_v13 = vpop.eup %1376  ;;  %v655_v14 = vadd.f32 1.0, %v1375_v9  ;;  %1398 = vrcp.f32 %v668_v10  ;;  %v1698_v63 = vadd.f32 %v1315_v11, %v1607_v18  ;;  %v1079_v8 = vmul.f32 -1.442695, %v1681_v50 }
  0xfc   : > { %v528_v16 = vpop.f32.mrb[11].mxu1  ;;  %v1379_v17 = vpop.eup %1378  ;;  %v671_v19 = vadd.f32 1.0, %v1377_v13  ;;  %v1701_v0 = vadd.f32 %v1607_v18, %v464_v12  ;;  %v1095_v9 = vmul.f32 -1.442695, %v1688_v57  ;;  %v1082_v10 = vmul.f32 -1.442695, %v1691_v58 }
  0xfd   : > { %v1381_v22 = vpop.eup %1380  ;;  %1400 = vrcp.f32 %v655_v14  ;;  %v653_v25 = vadd.f32 1.0, %v1379_v17  ;;  %v1098_v12 = vmul.f32 -1.442695, %v1698_v63  ;;  %v1714_v14 = vadd.f32 %v1607_v18, %v528_v16 }
  0xfe   : > { %v1383_v26 = vpop.eup %1382  ;;  %1402 = vrcp.f32 %v671_v19  ;;  %v669_v27 = vadd.f32 1.0, %v1381_v22  ;;  %v1302_v36 = vpop.f32.mrb[12].mxu0  ;;  %v1080_v13 = vmul.f32 -1.442695, %v1701_v0 }
  0xff   : > { %v1385_v30 = vpop.eup %1384  ;;  %1404 = vrcp.f32 %v653_v25  ;;  %v658_v31 = vadd.f32 1.0, %v1383_v26  ;;  %v1318_v42 = vpop.f32.mrb[12].mxu1  ;;  %v1719_v25 = vadd.f32 %v1302_v36, %v1607_v18 }
 0x100   : > { %v1387_v37 = vpop.eup %1386  ;;  %1406 = vrcp.f32 %v669_v27  ;;  %v674_v38 = vadd.f32 1.0, %v1385_v30  ;;  %v1675_v43 = vpop.f32.mrb[13].mxu0 }
 0x101   : > { %v1389_v45 = vpop.eup %1388  ;;  %1408 = vrcp.f32 %v658_v31  ;;  %v656_v46 = vadd.f32 1.0, %v1387_v37  ;;  %v1683_v51 = vpop.f32.mrb[13].mxu1 }
 0x102   : > { %v1685_v54 = vpop.f32.mrb[14].mxu0  ;;  %v1391_v55 = vpop.eup %1390  ;;  %1410 = vrcp.f32 %v674_v38  ;;  %v672_v56 = vadd.f32 1.0, %v1389_v45  ;;  %v1085_v45 = vmul.f32 -1.442695, %v1719_v25 }
 0x103   : > { %v1693_v59 = vpop.f32.mrb[14].mxu1  ;;  %v1695_v60 = vpop.f32.mrb[15].mxu0  ;;  %1412 = vrcp.f32 %v656_v46  ;;  %v659_v62 = vadd.f32 1.0, %v1391_v55 }
 0x104   : > { %v1393_v61 = vpop.eup %1392  ;;  %v1703_v1 = vpop.f32.mrb[15].mxu1  ;;  %1414 = vrcp.f32 %v672_v56 }
 0x105   : > { %v1395_v2 = vpop.eup %1394  ;;  %1416 = vrcp.f32 %v659_v62  ;;  %v750_v19 = vmul.f32 %v1393_v61, %v1610_v20  ;;  %v1731_v20 = vadd.f32 %v1318_v42, %v1607_v18 }
 0x106   : > { %v1397_v4 = vpop.eup %1396  ;;  %1418 = vpow2.f32 %v1094_v32  ;;  %v766_v27 = vmul.f32 %v1395_v2, %v1613_v23 }
 0x107   : > { %v1399_v7 = vpop.eup %1398  ;;  %1420 = vpow2.f32 %v1076_v40  ;;  %v748_v30 = vmul.f32 %v1397_v4, %v1616_v24  ;;  %v1096_v24 = vmul.f32 -1.442695, %v1714_v14 }
 0x108   : > { %v1401_v11 = vpop.eup %1400  ;;  %1422 = vpow2.f32 %v1092_v3  ;;  %v764_v36 = vmul.f32 %v1399_v7, %v1620_v28 }
 0x109   : > { %v1403_v17 = vpop.eup %1402  ;;  %v751_v22 = vmul.f32 %v1401_v11, %v1623_v29  ;;  %1424 = vpow2.f32 %v1081_v5 }
 0x10a   : > { %v1405_v26 = vpop.eup %1404  ;;  %v767_v16 = vmul.f32 %v1403_v17, %v1628_v34  ;;  %1426 = vpow2.f32 %v1097_v6 }
 0x10b   : > { %v1407_v29 = vpop.eup %1406  ;;  %v1179_v31 = vpack.c.bf16 %v751_v22, %v750_v19  ;;  %v749_v23 = vmul.f32 %v1405_v26, %v1631_v35  ;;  %1428 = vpow2.f32 %v1079_v8  ;;  %v1755_v22 = vadd.f32 %v1607_v18, %v1675_v43 }
 0x10c   : > { %v1409_v32 = vpop.eup %1408  ;;  %v1219_v37 = vpack.c.bf16 %v767_v16, %v766_v27  ;;  %v765_v38 = vmul.f32 %v1407_v29, %v1636_v39  ;;  %1430 = vpow2.f32 %v1095_v9  ;;  %v1101_v39 = vmul.f32 -1.442695, %v1731_v20 }
 0x10d   : > { %v1737_v34 = vpop.eup %1410  ;;  %1251 = vst [vmem:[%s1727_s28 + $0x8] sm:$0xff] %v1179_v31   ;;  %v1174_v40 = vpack.c.bf16 %v749_v23, %v748_v30  ;;  %1432 = vpow2.f32 %v1082_v10  ;;  %v754_v56 = vmul.f32 %v1409_v32, %v1642_v44  ;;  %v1759_v16 = vadd.f32 %v1607_v18, %v1683_v51 }
 0x10e   : > { %v1741_v42 = vpop.eup %1412  ;;  %1259 = vst [vmem:[%s1727_s28 + $0x48] sm:$0xff] %v1219_v37   ;;  %v1214_v35 = vpack.c.bf16 %v765_v38, %v764_v36  ;;  %1434 = vpow2.f32 %v1098_v12  ;;  %v1763_v31 = vadd.f32 %v1685_v54, %v1607_v18  ;;  %v1767_v43 = vadd.f32 %v1693_v59, %v1607_v18 }
 0x10f   : > { %v1745_v28 = vpop.eup %1414  ;;  %1175 = vst [vmem:[%s1727_s28] sm:$0xff] %v1174_v40   ;;  %1436 = vpow2.f32 %v1080_v13  ;;  %v1771_v36 = vadd.f32 %v1607_v18, %v1695_v60  ;;  %v1083_v37 = vmul.f32 -1.442695, %v1755_v22  ;;  %v1099_v54 = vmul.f32 -1.442695, %v1759_v16 }
 0x110   : > { %v1417_v46 = vpop.eup %1416  ;;  %1258 = vst [vmem:[%s1727_s28 + $0x40] sm:$0xff] %v1214_v35   ;;  %1438 = vpow2.f32 %v1096_v24  ;;  %v1777_v40 = vadd.f32 %v1607_v18, %v1703_v1  ;;  %v770_v59 = vmul.f32 %v1737_v34, %v1645_v47  ;;  %v1086_v60 = vmul.f32 -1.442695, %v1763_v31 }
 0x111   : > { %v1419_v55 = vpop.eup %1418  ;;  %v755_v61 = vmul.f32 %v1417_v46, %v1655_v53  ;;  %1440 = vpow2.f32 %v1085_v45  ;;  %v1084_v18 = vmul.f32 -1.442695, %v1771_v36  ;;  %v768_v47 = vmul.f32 %v1745_v28, %v1652_v52 }
 0x112   : > { %v1421_v62 = vpop.eup %1420  ;;  %v675_v2 = vadd.f32 1.0, %v1419_v55  ;;  %1442 = vpow2.f32 %v1101_v39  ;;  %v752_v39 = vmul.f32 %v1741_v42, %v1648_v48  ;;  %v1102_v55 = vmul.f32 -1.442695, %v1767_v43 }
 0x113   : > { %v1423_v3 = vpop.eup %1422  ;;  %v1189_v4 = vpack.c.bf16 %v755_v61, %v754_v56  ;;  %v657_v5 = vadd.f32 1.0, %v1421_v62  ;;  %v1100_v48 = vmul.f32 -1.442695, %v1777_v40 }
 0x114   : > { %v1425_v6 = vpop.eup %1424  ;;  %1444 = vrcp.f32 %v675_v2  ;;  %v673_v7 = vadd.f32 1.0, %v1423_v3 }
 0x115   : > { %v1427_v8 = vpop.eup %1426  ;;  %1253 = vst [vmem:[%s1727_s28 + $0x18] sm:$0xff] %v1189_v4   ;;  %1446 = vrcp.f32 %v657_v5  ;;  %v662_v9 = vadd.f32 1.0, %v1425_v6 }
 0x116   : > { %v1429_v10 = vpop.eup %1428  ;;  %1448 = vrcp.f32 %v673_v7  ;;  %v678_v44 = vadd.f32 1.0, %v1427_v8 }
 0x117   : > { %v1431_v11 = vpop.eup %1430  ;;  %1450 = vrcp.f32 %v662_v9  ;;  %v660_v53 = vadd.f32 1.0, %v1429_v10 }
 0x118   : > { %v1433_v12 = vpop.eup %1432  ;;  %1452 = vrcp.f32 %v678_v44  ;;  %v676_v13 = vadd.f32 1.0, %v1431_v11 }
 0x119   : > { %v1435_v17 = vpop.eup %1434  ;;  %1454 = vrcp.f32 %v660_v53  ;;  %v663_v19 = vadd.f32 1.0, %v1433_v12 }
 0x11a   : > { %v1437_v26 = vpop.eup %1436  ;;  %1456 = vrcp.f32 %v676_v13  ;;  %v679_v27 = vadd.f32 1.0, %v1435_v17 }
 0x11b   : > { %v1439_v29 = vpop.eup %1438  ;;  %1458 = vrcp.f32 %v663_v19  ;;  %v661_v30 = vadd.f32 1.0, %v1437_v26 }
 0x11c   : > { %v1441_v23 = vpop.eup %1440  ;;  %1460 = vrcp.f32 %v679_v27  ;;  %v677_v32 = vadd.f32 1.0, %v1439_v29 }
 0x11d   : > { %v1443_v51 = vpop.eup %1442  ;;  %1462 = vrcp.f32 %v661_v30  ;;  %v666_v10 = vadd.f32 1.0, %v1441_v23 }
 0x11e   : > { %v1445_v38 = vpop.eup %1444  ;;  %1464 = vrcp.f32 %v677_v32  ;;  %v682_v11 = vadd.f32 1.0, %v1443_v51 }
 0x11f   : > { %v1447_v24 = vpop.eup %1446  ;;  %v771_v35 = vmul.f32 %v1445_v38, %v1662_v15  ;;  %1466 = vpow2.f32 %v1083_v37 }
 0x120   : > { %v1449_v45 = vpop.eup %1448  ;;  %v753_v46 = vmul.f32 %v1447_v24, %v1665_v21  ;;  %1468 = vpow2.f32 %v1099_v54 }
 0x121   : > { %v1451_v1 = vpop.eup %1450  ;;  %v1229_v15 = vpack.c.bf16 %v771_v35, %v770_v59  ;;  %v769_v34 = vmul.f32 %v1449_v45, %v1669_v33  ;;  %1470 = vpow2.f32 %v1086_v60 }
 0x122   : > { %v1453_v56 = vpop.eup %1452  ;;  %v1184_v61 = vpack.c.bf16 %v753_v46, %v752_v39  ;;  %1472 = vpow2.f32 %v1102_v55  ;;  %v758_v33 = vmul.f32 %v1451_v1, %v1673_v41 }
 0x123   : > { %v1455_v21 = vpop.eup %1454  ;;  %1261 = vst [vmem:[%s1727_s28 + $0x58] sm:$0xff] %v1229_v15   ;;  %v1224_v42 = vpack.c.bf16 %v769_v34, %v768_v47  ;;  %1474 = vpow2.f32 %v1084_v18  ;;  %v774_v4 = vmul.f32 %v1453_v56, %v1678_v49 }
 0x124   : > { %v1457_v62 = vpop.eup %1456  ;;  %1252 = vst [vmem:[%s1727_s28 + $0x10] sm:$0xff] %v1184_v61   ;;  %1476 = vpow2.f32 %v1100_v48  ;;  %v756_v7 = vmul.f32 %v1455_v21, %v1681_v50 }
 0x125   : > { %v1459_v2 = vpop.eup %1458  ;;  %1260 = vst [vmem:[%s1727_s28 + $0x50] sm:$0xff] %v1224_v42   ;;  %v772_v41 = vmul.f32 %v1457_v62, %v1688_v57  ;;  %1478 = vrcp.f32 %v666_v10 }
 0x126   : > { %v1461_v52 = vpop.eup %1460  ;;  %v759_v28 = vmul.f32 %v1459_v2, %v1691_v58  ;;  %1480 = vrcp.f32 %v682_v11 }
 0x127   : > { %v1463_v3 = vpop.eup %1462  ;;  %v775_v5 = vmul.f32 %v1461_v52, %v1698_v63 }
 0x128   : > { %v1465_v6 = vpop.eup %1464  ;;  %v1199_v8 = vpack.c.bf16 %v759_v28, %v758_v33  ;;  %v757_v9 = vmul.f32 %v1463_v3, %v1701_v0 }
 0x129   : > { %v1239_v44 = vpack.c.bf16 %v775_v5, %v774_v4  ;;  %v773_v58 = vmul.f32 %v1465_v6, %v1714_v14  ;;  %v1467_v49 = vpop.eup %1466 }
 0x12a   : > { %1255 = vst [vmem:[%s1727_s28 + $0x28] sm:$0xff] %v1199_v8   ;;  %v1194_v53 = vpack.c.bf16 %v757_v9, %v756_v7  ;;  %v1469_v12 = vpop.eup %1468  ;;  %v664_v50 = vadd.f32 1.0, %v1467_v49 }
 0x12b   : > { %1263 = vst [vmem:[%s1727_s28 + $0x68] sm:$0xff] %v1239_v44   ;;  %v1234_v63 = vpack.c.bf16 %v773_v58, %v772_v41  ;;  %v1471_v13 = vpop.eup %1470  ;;  %v680_v0 = vadd.f32 1.0, %v1469_v12 }
 0x12c   : > { %1254 = vst [vmem:[%s1727_s28 + $0x20] sm:$0xff] %v1194_v53   ;;  %v1473_v17 = vpop.eup %1472  ;;  %1482 = vrcp.f32 %v664_v50  ;;  %v667_v57 = vadd.f32 1.0, %v1471_v13 }
 0x12d   : > { %1262 = vst [vmem:[%s1727_s28 + $0x60] sm:$0xff] %v1234_v63   ;;  %v1475_v19 = vpop.eup %1474  ;;  %1484 = vrcp.f32 %v680_v0  ;;  %v683_v14 = vadd.f32 1.0, %v1473_v17 }
 0x12e   : > { %v1477_v26 = vpop.eup %1476  ;;  %1486 = vrcp.f32 %v667_v57  ;;  %v665_v27 = vadd.f32 1.0, %v1475_v19 }
 0x12f   : > { %1488 = vrcp.f32 %v683_v14  ;;  %v681_v29 = vadd.f32 1.0, %v1477_v26  ;;  %v1479_v30 = vpop.eup %1478 }
 0x130   : > { %1490 = vrcp.f32 %v665_v27  ;;  %v1481_v23 = vpop.eup %1480  ;;  %v762_v54 = vmul.f32 %v1479_v30, %v1719_v25 }
 0x131   : > { %1492 = vrcp.f32 %v681_v29  ;;  %v778_v35 = vmul.f32 %v1481_v23, %v1731_v20 }
 0x136   : > { %v1483_v32 = vpop.eup %1482 }
 0x137   : > { %v1485_v51 = vpop.eup %1484  ;;  %v760_v39 = vmul.f32 %v1483_v32, %v1755_v22 }
 0x138   : > { %v1487_v37 = vpop.eup %1486  ;;  %v776_v18 = vmul.f32 %v1485_v51, %v1759_v16 }
 0x139   : > { %v1489_v38 = vpop.eup %1488  ;;  %v763_v24 = vmul.f32 %v1487_v37, %v1763_v31 }
 0x13a   : > { %v1491_v59 = vpop.eup %1490  ;;  %v779_v60 = vmul.f32 %v1489_v38, %v1767_v43 }
 0x13b   : > { %v1493_v45 = vpop.eup %1492  ;;  %v1209_v46 = vpack.c.bf16 %v763_v24, %v762_v54  ;;  %v761_v55 = vmul.f32 %v1491_v59, %v1771_v36 }
 0x13c   : > { %v1249_v1 = vpack.c.bf16 %v779_v60, %v778_v35  ;;  %v777_v25 = vmul.f32 %v1493_v45, %v1777_v40 }
 0x13d   : > { %1257 = vst [vmem:[%s1727_s28 + $0x38] sm:$0xff] %v1209_v46   ;;  %v1204_v47 = vpack.c.bf16 %v761_v55, %v760_v39 }
 0x13e   : > { %1265 = vst [vmem:[%s1727_s28 + $0x78] sm:$0xff] %v1249_v1   ;;  %v1244_v31 = vpack.c.bf16 %v777_v25, %v776_v18 }
 0x13f   : > { %1256 = vst [vmem:[%s1727_s28 + $0x30] sm:$0xff] %v1204_v47  }
 0x140   : > { %1264 = vst [vmem:[%s1727_s28 + $0x70] sm:$0xff] %v1244_v31  }
 0x141 PF: > { %s13_s14 = sadd.s32 1, %s1516_s14   ;;  %s1832_s12 = smov %s1512_s13 }
 0x142   : > { %p10_p5 = scmp.ge.s32.totalorder %s13_s14, 4   ;;  %s1833_s13 = smov %s1835_s15 }
 0x144   :  { %12 = sbr.rel (!%p10_p5) target bundleno = 2 (0x2), region = 62 }

// kernel: effnet_forward.4
= control target key start
LH: loop header
LB: loop body
LE: loop exit
PB: predicated region body
PF: predicated region fallthrough
CT: control target
= control target key end

     0   :  { %s2987_s15 = smov 0   ;;  %s2989_s16 = smov 0   ;;  %s3610_s0 = inlined_call_operand.vmem [shape: bf16[8,9,9,128], index: 0, kind: input, shape index: {}, may-alias: {0,1}]   ;;  %s3611_s1 = inlined_call_operand.vmem [shape: bf16[8,9,9,128], index: 1, kind: input, shape index: {}, may-alias: {0,1}]   ;;  %s3612_s2 = inlined_call_operand.vmem [shape: bf16[1152,128], index: 2, kind: input, shape index: {}]   ;;  %s3613_s3 = inlined_call_operand.vmem [shape: f32[1,128], index: 3, kind: input, shape index: {}]   ;;  %s3614_s4 = inlined_call_operand.vmem [shape: bf16[2,8,8,128], index: 4, kind: output, shape index: {}]  }
   0x1   :  { %s2991_s17 = smov 0   ;;  %s2993_s18 = smov 0  }
   0x2   :  { %s2995_s19 = smov 0  }
   0x3 LB: > { %s26_s20 = sadd.s32 1, %s2952_s18  ;;  %p42_p1 = scmp.ne.s32.totalorder %s2944_s16, %s2940_s15  ;;  %s2956_s19 = sphi %s2995_s19, %s14_s19   ;;  %s2952_s18 = sphi %s2993_s18, %s3619_s18   ;;  %s2948_s17 = sphi %s2991_s17, %s3618_s17   ;;  %s2944_s16 = sphi %s2989_s16, %s3617_s16   ;;  %s2940_s15 = sphi %s2987_s15, %s3616_s15  }
   0x4   : > { %p28_p0 = scmp.ge.s32.totalorder %s26_s20, 2  ;;  %p43_p2 = scmp.eq.s32.totalorder %s2956_s19, 0 }
   0x5   : > { %s35_s23 = sadd.s32 1, %s2944_s16  ;;  %p2286_p5 = scmp.ge.s32.totalorder %s2956_s19, 2 }
   0x6   : > { %s3621_s20 = smov (%p28_p0, %s26_s20), 0  ;;  %p3018_p3 = por %p43_p2, %p42_p1 }
   0x7   : > { %s30_s22 = ssub.s32 %s2952_s18, %s3621_s20  ;;  %176 = sbr.rel (%p2286_p5) target bundleno = 79 (0x4f), region = 24 }
   0x8   : > { %p33_p4 = scmp.eq.s32.totalorder %s30_s22, 0 }
   0xa   : > { %s3026_s24 = scalar_select %p33_p4, %s2944_s16, %s35_s23  }
   0xe   : > { %179 = sbr.rel (!%p3018_p3) target bundleno = 72 (0x48), region = 28  ;;  %s181_s25 = sand.u32 (%p3018_p3), 1, %s2944_s16  }
   0xf   : > { %s2686_s26 = smul.u32 (%p3018_p3), 288, %s2952_s18  ;;  %s2287_s27 = sshll.u32 (%p3018_p3), %s181_s25, 8 }
  0x10   : > { %s3038_s5 = scalar_lea.vmem (%p3018_p3), [#allocation2], %s2287_s27   ;;  %s3040_s6 = smov (%p3018_p3), 0  }
  0x11   : > { %s3036_s30 = scalar_lea.vmem (%p3018_p3), %s3610_s0, %s2686_s26  }
  0x15 LB: >> { %v216_v0 = vld [vmem:[%s3036_s30] sm:$0xf]  ;;  %v218_v1 = vld [vmem:[%s3036_s30 + $0x4] sm:$0xf]  ;;  %v220_v2 = vld [vmem:[%s3036_s30 + $0x8] sm:$0xf]  ;;  %s2960_s6 = sphi %s3040_s6, %s210_s6  }
  0x16   : >> { %217 = vst [vmem:[%s3038_s5] sm:$0xf] %v216_v0  ;;  %219 = vst [vmem:[%s3038_s5 + $0x4] sm:$0xf] %v218_v1  ;;  %v222_v3 = vld [vmem:[%s3036_s30 + $0xc] sm:$0xf]  ;;  %s210_s6 = sadd.s32 1, %s2960_s6  }
  0x17   : >> { %221 = vst [vmem:[%s3038_s5 + $0x8] sm:$0xf] %v220_v2  ;;  %v224_v4 = vld [vmem:[%s3036_s30 + $0x10] sm:$0xf]  ;;  %v226_v5 = vld [vmem:[%s3036_s30 + $0x14] sm:$0xf] }
  0x18   : >> { %223 = vst [vmem:[%s3038_s5 + $0xc] sm:$0xf] %v222_v3  ;;  %225 = vst [vmem:[%s3038_s5 + $0x10] sm:$0xf] %v224_v4  ;;  %v228_v6 = vld [vmem:[%s3036_s30 + $0x18] sm:$0xf] }
  0x19   : >> { %227 = vst [vmem:[%s3038_s5 + $0x14] sm:$0xf] %v226_v5  ;;  %v230_v7 = vld [vmem:[%s3036_s30 + $0x1c] sm:$0xf]  ;;  %v232_v8 = vld [vmem:[%s3036_s30 + $0x20] sm:$0xf] }
  0x1a   : >> { %229 = vst [vmem:[%s3038_s5 + $0x18] sm:$0xf] %v228_v6  ;;  %231 = vst [vmem:[%s3038_s5 + $0x1c] sm:$0xf] %v230_v7  ;;  %v234_v9 = vld [vmem:[%s3036_s30 + $0x24] sm:$0xf] }
  0x1b   : >> { %233 = vst [vmem:[%s3038_s5 + $0x20] sm:$0xf] %v232_v8  ;;  %v236_v10 = vld [vmem:[%s3036_s30 + $0x28] sm:$0xf]  ;;  %v238_v11 = vld [vmem:[%s3036_s30 + $0x2c] sm:$0xf] }
  0x1c   : >> { %235 = vst [vmem:[%s3038_s5 + $0x24] sm:$0xf] %v234_v9  ;;  %237 = vst [vmem:[%s3038_s5 + $0x28] sm:$0xf] %v236_v10  ;;  %v240_v12 = vld [vmem:[%s3036_s30 + $0x30] sm:$0xf] }
  0x1d   : >> { %239 = vst [vmem:[%s3038_s5 + $0x2c] sm:$0xf] %v238_v11  ;;  %v242_v13 = vld [vmem:[%s3036_s30 + $0x34] sm:$0xf]  ;;  %v244_v14 = vld [vmem:[%s3036_s30 + $0x38] sm:$0xf] }
  0x1e   : >> { %241 = vst [vmem:[%s3038_s5 + $0x30] sm:$0xf] %v240_v12  ;;  %243 = vst [vmem:[%s3038_s5 + $0x34] sm:$0xf] %v242_v13  ;;  %v246_v15 = vld [vmem:[%s3036_s30 + $0x3c] sm:$0xf] }
  0x1f   : >> { %245 = vst [vmem:[%s3038_s5 + $0x38] sm:$0xf] %v244_v14  ;;  %v248_v16 = vld [vmem:[%s3036_s30 + $0x48] sm:$0xf]  ;;  %v250_v17 = vld [vmem:[%s3036_s30 + $0x4c] sm:$0xf] }
  0x20   : >> { %247 = vst [vmem:[%s3038_s5 + $0x3c] sm:$0xf] %v246_v15  ;;  %249 = vst [vmem:[%s3038_s5 + $0x40] sm:$0xf] %v248_v16  ;;  %v252_v18 = vld [vmem:[%s3036_s30 + $0x50] sm:$0xf] }
  0x21   : >> { %251 = vst [vmem:[%s3038_s5 + $0x44] sm:$0xf] %v250_v17  ;;  %v254_v19 = vld [vmem:[%s3036_s30 + $0x54] sm:$0xf]  ;;  %v256_v20 = vld [vmem:[%s3036_s30 + $0x58] sm:$0xf] }
  0x22   : >> { %253 = vst [vmem:[%s3038_s5 + $0x48] sm:$0xf] %v252_v18  ;;  %255 = vst [vmem:[%s3038_s5 + $0x4c] sm:$0xf] %v254_v19  ;;  %v258_v21 = vld [vmem:[%s3036_s30 + $0x5c] sm:$0xf] }
  0x23   : >> { %257 = vst [vmem:[%s3038_s5 + $0x50] sm:$0xf] %v256_v20  ;;  %v260_v22 = vld [vmem:[%s3036_s30 + $0x60] sm:$0xf]  ;;  %v262_v23 = vld [vmem:[%s3036_s30 + $0x64] sm:$0xf] }
  0x24   : >> { %259 = vst [vmem:[%s3038_s5 + $0x54] sm:$0xf] %v258_v21  ;;  %261 = vst [vmem:[%s3038_s5 + $0x58] sm:$0xf] %v260_v22  ;;  %v264_v24 = vld [vmem:[%s3036_s30 + $0x68] sm:$0xf] }
  0x25   : >> { %263 = vst [vmem:[%s3038_s5 + $0x5c] sm:$0xf] %v262_v23  ;;  %v266_v25 = vld [vmem:[%s3036_s30 + $0x6c] sm:$0xf]  ;;  %v268_v26 = vld [vmem:[%s3036_s30 + $0x70] sm:$0xf] }
  0x26   : >> { %265 = vst [vmem:[%s3038_s5 + $0x60] sm:$0xf] %v264_v24  ;;  %267 = vst [vmem:[%s3038_s5 + $0x64] sm:$0xf] %v266_v25  ;;  %v270_v27 = vld [vmem:[%s3036_s30 + $0x74] sm:$0xf] }
  0x27   : >> { %269 = vst [vmem:[%s3038_s5 + $0x68] sm:$0xf] %v268_v26  ;;  %v272_v28 = vld [vmem:[%s3036_s30 + $0x78] sm:$0xf]  ;;  %v274_v29 = vld [vmem:[%s3036_s30 + $0x7c] sm:$0xf] }
  0x28   : >> { %271 = vst [vmem:[%s3038_s5 + $0x6c] sm:$0xf] %v270_v27  ;;  %273 = vst [vmem:[%s3038_s5 + $0x70] sm:$0xf] %v272_v28  ;;  %v276_v30 = vld [vmem:[%s3036_s30 + $0x80] sm:$0xf] }
  0x29   : >> { %275 = vst [vmem:[%s3038_s5 + $0x74] sm:$0xf] %v274_v29  ;;  %v278_v31 = vld [vmem:[%s3036_s30 + $0x84] sm:$0xf]  ;;  %v280_v32 = vld [vmem:[%s3036_s30 + $0x90] sm:$0xf] }
  0x2a   : >> { %277 = vst [vmem:[%s3038_s5 + $0x78] sm:$0xf] %v276_v30  ;;  %279 = vst [vmem:[%s3038_s5 + $0x7c] sm:$0xf] %v278_v31  ;;  %v282_v33 = vld [vmem:[%s3036_s30 + $0x94] sm:$0xf] }
  0x2b   : >> { %281 = vst [vmem:[%s3038_s5 + $0x80] sm:$0xf] %v280_v32  ;;  %v284_v34 = vld [vmem:[%s3036_s30 + $0x98] sm:$0xf]  ;;  %v286_v35 = vld [vmem:[%s3036_s30 + $0x9c] sm:$0xf] }
  0x2c   : >> { %283 = vst [vmem:[%s3038_s5 + $0x84] sm:$0xf] %v282_v33  ;;  %285 = vst [vmem:[%s3038_s5 + $0x88] sm:$0xf] %v284_v34  ;;  %v288_v36 = vld [vmem:[%s3036_s30 + $0xa0] sm:$0xf] }
  0x2d   : >> { %287 = vst [vmem:[%s3038_s5 + $0x8c] sm:$0xf] %v286_v35  ;;  %v290_v37 = vld [vmem:[%s3036_s30 + $0xa4] sm:$0xf]  ;;  %v292_v38 = vld [vmem:[%s3036_s30 + $0xa8] sm:$0xf] }
  0x2e   : >> { %289 = vst [vmem:[%s3038_s5 + $0x90] sm:$0xf] %v288_v36  ;;  %291 = vst [vmem:[%s3038_s5 + $0x94] sm:$0xf] %v290_v37  ;;  %v294_v39 = vld [vmem:[%s3036_s30 + $0xac] sm:$0xf] }
  0x2f   : >> { %293 = vst [vmem:[%s3038_s5 + $0x98] sm:$0xf] %v292_v38  ;;  %v296_v40 = vld [vmem:[%s3036_s30 + $0xb0] sm:$0xf]  ;;  %v298_v41 = vld [vmem:[%s3036_s30 + $0xb4] sm:$0xf] }
  0x30   : >> { %295 = vst [vmem:[%s3038_s5 + $0x9c] sm:$0xf] %v294_v39  ;;  %297 = vst [vmem:[%s3038_s5 + $0xa0] sm:$0xf] %v296_v40  ;;  %v300_v42 = vld [vmem:[%s3036_s30 + $0xb8] sm:$0xf] }
  0x31   : >> { %299 = vst [vmem:[%s3038_s5 + $0xa4] sm:$0xf] %v298_v41  ;;  %v302_v43 = vld [vmem:[%s3036_s30 + $0xbc] sm:$0xf]  ;;  %v304_v44 = vld [vmem:[%s3036_s30 + $0xc0] sm:$0xf] }
  0x32   : >> { %301 = vst [vmem:[%s3038_s5 + $0xa8] sm:$0xf] %v300_v42  ;;  %303 = vst [vmem:[%s3038_s5 + $0xac] sm:$0xf] %v302_v43  ;;  %v306_v45 = vld [vmem:[%s3036_s30 + $0xc4] sm:$0xf] }
  0x33   : >> { %305 = vst [vmem:[%s3038_s5 + $0xb0] sm:$0xf] %v304_v44  ;;  %v308_v46 = vld [vmem:[%s3036_s30 + $0xc8] sm:$0xf]  ;;  %v310_v47 = vld [vmem:[%s3036_s30 + $0xcc] sm:$0xf] }
  0x34   : >> { %307 = vst [vmem:[%s3038_s5 + $0xb4] sm:$0xf] %v306_v45  ;;  %309 = vst [vmem:[%s3038_s5 + $0xb8] sm:$0xf] %v308_v46  ;;  %v312_v48 = vld [vmem:[%s3036_s30 + $0xd8] sm:$0xf] }
  0x35   : >> { %311 = vst [vmem:[%s3038_s5 + $0xbc] sm:$0xf] %v310_v47  ;;  %v314_v49 = vld [vmem:[%s3036_s30 + $0xdc] sm:$0xf]  ;;  %v316_v50 = vld [vmem:[%s3036_s30 + $0xe0] sm:$0xf] }
  0x36   : >> { %313 = vst [vmem:[%s3038_s5 + $0xc0] sm:$0xf] %v312_v48  ;;  %315 = vst [vmem:[%s3038_s5 + $0xc4] sm:$0xf] %v314_v49  ;;  %v318_v51 = vld [vmem:[%s3036_s30 + $0xe4] sm:$0xf] }
  0x37   : >> { %317 = vst [vmem:[%s3038_s5 + $0xc8] sm:$0xf] %v316_v50  ;;  %v320_v52 = vld [vmem:[%s3036_s30 + $0xe8] sm:$0xf]  ;;  %v322_v53 = vld [vmem:[%s3036_s30 + $0xec] sm:$0xf] }
  0x38   : >> { %319 = vst [vmem:[%s3038_s5 + $0xcc] sm:$0xf] %v318_v51  ;;  %321 = vst [vmem:[%s3038_s5 + $0xd0] sm:$0xf] %v320_v52  ;;  %v324_v54 = vld [vmem:[%s3036_s30 + $0xf0] sm:$0xf] }
  0x39   : >> { %323 = vst [vmem:[%s3038_s5 + $0xd4] sm:$0xf] %v322_v53  ;;  %v326_v55 = vld [vmem:[%s3036_s30 + $0xf4] sm:$0xf]  ;;  %v328_v56 = vld [vmem:[%s3036_s30 + $0xf8] sm:$0xf] }
  0x3a   : >> { %325 = vst [vmem:[%s3038_s5 + $0xd8] sm:$0xf] %v324_v54  ;;  %327 = vst [vmem:[%s3038_s5 + $0xdc] sm:$0xf] %v326_v55  ;;  %v330_v57 = vld [vmem:[%s3036_s30 + $0xfc] sm:$0xf] }
  0x3b   : >> { %329 = vst [vmem:[%s3038_s5 + $0xe0] sm:$0xf] %v328_v56  ;;  %v332_v58 = vld [vmem:[%s3036_s30 + $0x100] sm:$0xf]  ;;  %v334_v59 = vld [vmem:[%s3036_s30 + $0x104] sm:$0xf] }
  0x3c   : >> { %331 = vst [vmem:[%s3038_s5 + $0xe4] sm:$0xf] %v330_v57  ;;  %333 = vst [vmem:[%s3038_s5 + $0xe8] sm:$0xf] %v332_v58  ;;  %v336_v60 = vld [vmem:[%s3036_s30 + $0x108] sm:$0xf] }
  0x3d   : >> { %335 = vst [vmem:[%s3038_s5 + $0xec] sm:$0xf] %v334_v59  ;;  %v338_v61 = vld [vmem:[%s3036_s30 + $0x10c] sm:$0xf]  ;;  %v340_v62 = vld [vmem:[%s3036_s30 + $0x110] sm:$0xf] }
  0x3e   : >> { %337 = vst [vmem:[%s3038_s5 + $0xf0] sm:$0xf] %v336_v60  ;;  %339 = vst [vmem:[%s3038_s5 + $0xf4] sm:$0xf] %v338_v61  ;;  %v342_v63 = vld [vmem:[%s3036_s30 + $0x114] sm:$0xf] }
  0x3f   : >> { %341 = vst [vmem:[%s3038_s5 + $0xf8] sm:$0xf] %v340_v62  ;;  %343 = vst [vmem:[%s3038_s5 + $0xfc] sm:$0xf] %v342_v63  ;;  %p209_p6 = scmp.ge.s32.totalorder %s210_s6, 1 }
  0x41   : > { %212 = sbr.rel (!%p209_p6) target bundleno = 21 (0x15), region = 196 }
  0x48 PF: > { %604 = sbr.rel (!%p3018_p3) target bundleno = 79 (0x4f), region = 90  ;;  %s606_s7 = sand.u32 (%p3018_p3), 1, %s2944_s16  }
  0x49   : > { %s2300_s8 = smul.u32 (%p3018_p3), 288, %s2952_s18  ;;  %s2299_s9 = sshll.u32 (%p3018_p3), %s606_s7, 5 }
  0x4a   : > { %s608_s13 = scalar_lea.vmem (%p3018_p3), [#allocation3], %s2299_s9 }
  0x4b   : > { %s2190_s12 = scalar_lea.vmem (%p3018_p3), %s3611_s1, %s2300_s8 }
  0x4c   : > { %v2301_v0 = vld [vmem:[%s2190_s12 + $0x40] sm:$0xff] (%p3018_p3)   ;;  %v2303_v1 = vld [vmem:[%s2190_s12 + $0x88] sm:$0xff] (%p3018_p3)   ;;  %v2305_v2 = vld [vmem:[%s2190_s12 + $0xd0] sm:$0xff] (%p3018_p3)  }
  0x4d   : > { %633 = vst [vmem:[%s608_s13] sm:$0xff] (%p3018_p3), %v2301_v0   ;;  %637 = vst [vmem:[%s608_s13 + $0x8] sm:$0xff] (%p3018_p3), %v2303_v1   ;;  %v2307_v3 = vld [vmem:[%s2190_s12 + $0x118] sm:$0xff] (%p3018_p3)  }
  0x4e   : > { %641 = vst [vmem:[%s608_s13 + $0x10] sm:$0xff] (%p3018_p3), %v2305_v2   ;;  %645 = vst [vmem:[%s608_s13 + $0x18] sm:$0xff] (%p3018_p3), %v2307_v3  }
  0x4f PF: > { %p2309_p7 = scmp.ge.s32.totalorder %s2956_s19, 1  ;;  %p685_p8 = scmp.lt.s32.totalorder %s2956_s19, 3 }
  0x51   : > { %p686_p9 = pnand %p2309_p7, %p685_p8 }
  0x52   : > { %v2759_v4 = vld [vmem:[%s3612_s2 + $0x40] sm:$0xff] (!%p686_p9)   ;;  %v2763_v8 = vld [vmem:[%s3612_s2 + $0x48] sm:$0xff] (!%p686_p9)   ;;  %v2767_v12 = vld [vmem:[%s3612_s2 + $0x50] sm:$0xff] (!%p686_p9)   ;;  %s692_s9 = sand.u32 (!%p686_p9), 1, %s2940_s15   ;;  %p743_p10 = scmp.lt.s32.totalorder (!%p686_p9), %s2948_s17, 1 }
  0x53   : > { %689 = sbr.rel (%p686_p9) target bundleno = 432 (0x1b0), region = 131  ;;  %v2760_v5 = vld [vmem:[%s3612_s2 + $0xc0] sm:$0xff] (!%p686_p9)   ;;  %2474 = vmatprep.subr.bf16.mxu0 (!%p686_p9), %v2759_v4  ;;  %v2764_v9 = vld [vmem:[%s3612_s2 + $0xc8] sm:$0xff] (!%p686_p9)   ;;  %v2768_v13 = vld [vmem:[%s3612_s2 + $0xd0] sm:$0xff] (!%p686_p9)   ;;  %s2310_s22 = sshll.u32 (!%p686_p9), %s692_s9, 8 }
  0x54   : > { %v2761_v6 = vld [vmem:[%s3612_s2] sm:$0xff] (!%p686_p9)   ;;  %2514 = vmatprep.subr.bf16.mxu1 (!%p686_p9), %v2760_v5  ;;  %v2765_v10 = vld [vmem:[%s3612_s2 + $0x8] sm:$0xff] (!%p686_p9)   ;;  %v2769_v14 = vld [vmem:[%s3612_s2 + $0x10] sm:$0xff] (!%p686_p9)   ;;  %s3284_s30 = scalar_lea.vmem (!%p686_p9), [#allocation2], %s2310_s22  ;;  %s2311_s10 = sshll.u32 (!%p686_p9), %s692_s9, 5 }
  0x55   : > { %v2762_v7 = vld [vmem:[%s3612_s2 + $0x80] sm:$0xff] (!%p686_p9)   ;;  %2475 = vmatpush3.bf16.msra.mxu0 (!%p686_p9), %v2761_v6  ;;  %v2766_v11 = vld [vmem:[%s3612_s2 + $0x88] sm:$0xff] (!%p686_p9)   ;;  %v2770_v15 = vld [vmem:[%s3612_s2 + $0x90] sm:$0xff] (!%p686_p9)   ;;  %s701_s13 = scalar_lea.vmem (!%p686_p9), [#allocation3], %s2311_s10 }
  0x56   : > { %2515 = vmatpush3.bf16.msra.mxu1 (!%p686_p9), %v2762_v7  ;;  %2476 = vmatprep.subr.bf16.mxu0 (!%p686_p9), %v2763_v8  ;;  %v2771_v16 = vld [vmem:[%s3612_s2 + $0x58] sm:$0xff] (!%p686_p9)   ;;  %v2775_v20 = vld [vmem:[%s3612_s2 + $0x60] sm:$0xff] (!%p686_p9)   ;;  %v2779_v24 = vld [vmem:[%s3612_s2 + $0x68] sm:$0xff] (!%p686_p9)  }
  0x57   : > { %2516 = vmatprep.subr.bf16.mxu1 (!%p686_p9), %v2764_v9  ;;  %v2772_v17 = vld [vmem:[%s3612_s2 + $0xd8] sm:$0xff] (!%p686_p9)   ;;  %v2776_v21 = vld [vmem:[%s3612_s2 + $0xe0] sm:$0xff] (!%p686_p9)   ;;  %v2780_v25 = vld [vmem:[%s3612_s2 + $0xe8] sm:$0xff] (!%p686_p9)  }
  0x58   : > { %v2773_v18 = vld [vmem:[%s3612_s2 + $0x18] sm:$0xff] (!%p686_p9)   ;;  %v2777_v22 = vld [vmem:[%s3612_s2 + $0x20] sm:$0xff] (!%p686_p9)   ;;  %v2781_v26 = vld [vmem:[%s3612_s2 + $0x28] sm:$0xff] (!%p686_p9)  }
  0x59   : > { %2477 = vmatpush3.bf16.msra.mxu0 (!%p686_p9), %v2765_v10  ;;  %v2774_v19 = vld [vmem:[%s3612_s2 + $0x98] sm:$0xff] (!%p686_p9)   ;;  %v2778_v23 = vld [vmem:[%s3612_s2 + $0xa0] sm:$0xff] (!%p686_p9)   ;;  %v2782_v27 = vld [vmem:[%s3612_s2 + $0xa8] sm:$0xff] (!%p686_p9)  }
  0x5a   : > { %2517 = vmatpush3.bf16.msra.mxu1 %v2766_v11  ;;  %2478 = vmatprep.subr.bf16.mxu0 %v2767_v12  ;;  %v2783_v28 = vld [vmem:[%s3612_s2 + $0x70] sm:$0xff]   ;;  %v2787_v32 = vld [vmem:[%s3612_s2 + $0x78] sm:$0xff]   ;;  %v769_v36 = vld [vmem:[%s3284_s30 + $0x40] sm:$0xf]  ;;  %s3623_s17 = smov (!%p743_p10, %s2948_s17), 1 }
  0x5b   : > { %2518 = vmatprep.subr.bf16.mxu1 %v2768_v13  ;;  %v2784_v29 = vld [vmem:[%s3612_s2 + $0xf0] sm:$0xff]   ;;  %v2788_v33 = vld [vmem:[%s3612_s2 + $0xf8] sm:$0xff]   ;;  %v3288_v37 = vld [vmem:[%s3284_s30 + $0x48] sm:$0xf]  ;;  %s2450_s26 = sshll.u32 %s3623_s17, 5 }
  0x5c   : > { %v2785_v30 = vld [vmem:[%s3612_s2 + $0x30] sm:$0xff]   ;;  %v2789_v34 = vld [vmem:[%s3612_s2 + $0x38] sm:$0xff]   ;;  %v2333_v38 = vcombine.low %v769_v36, %v3288_v37  ;;  %v3292_v39 = vld [vmem:[%s3284_s30 + $0x80] sm:$0xf]  ;;  %s750_s29 = scalar_lea.vmem %s3614_s4, %s2450_s26 }
  0x5d   : > { %2479 = vmatpush3.bf16.msra.mxu0 %v2769_v14  ;;  %v2786_v31 = vld [vmem:[%s3612_s2 + $0xb0] sm:$0xff]   ;;  %v2790_v35 = vld [vmem:[%s3612_s2 + $0xb8] sm:$0xff]   ;;  %v3295_v40 = vld [vmem:[%s3284_s30 + $0x88] sm:$0xf] }
  0x5e   : > { %2519 = vmatpush3.bf16.msra.mxu1 %v2770_v15  ;;  %2480 = vmatprep.subr.bf16.mxu0 %v2771_v16  ;;  %v2335_v41 = vcombine.low %v3292_v39, %v3295_v40  ;;  %v753_v42 = vld [vmem:[%s3284_s30] sm:$0xf]  ;;  %v754_v43 = vld [vmem:[%s3284_s30 + $0x4] sm:$0x1]  ;;  %v3302_v44 = vld [vmem:[%s3284_s30 + $0x8] sm:$0xf] }
  0x5f   : > { %2520 = vmatprep.subr.bf16.mxu1 %v2772_v17  ;;  %1746 = vmatprep.mubr.bf16.mxu0 %v2333_v38  ;;  %v756_v45 = vld [vmem:[%s3284_s30 + $0xc] sm:$0x1]  ;;  %v2314_v46 = vcombine.low %v753_v42, %v754_v43  ;;  %v2332_v48 = vcombine.low %v753_v42, %v3302_v44  ;;  %v2799_v49 = vld [vmem:[%s3612_s2 + $0x140] sm:$0xff]   ;;  %v3317_v58 = vld [vmem:[%s3284_s30 + $0x50] sm:$0xf] }
  0x60   : > { %1811 = vmatprep.mubr.bf16.mxu1 %v2335_v41  ;;  %v2315_v47 = vcombine.low %v3302_v44, %v756_v45  ;;  %v2800_v50 = vld [vmem:[%s3612_s2 + $0x1c0] sm:$0xff]   ;;  %v2803_v60 = vld [vmem:[%s3612_s2 + $0x148] sm:$0xff]   ;;  %v3335_v2 = vld [vmem:[%s3284_s30 + $0x58] sm:$0xf] }
  0x61   : > { %2481 = vmatpush3.bf16.msra.mxu0 %v2773_v18  ;;  %v847_v51 = vshll.u32 %v2314_v46, 16  ;;  %v845_v52 = vshrl.u32 %v2314_v46, 16  ;;  %v2801_v55 = vld [vmem:[%s3612_s2 + $0x100] sm:$0xff]   ;;  %v2805_v63 = vld [vmem:[%s3612_s2 + $0x108] sm:$0xff]   ;;  %v781_v3 = vld [vmem:[%s3284_s30 + $0x90] sm:$0xf]  ;;  %v2342_v5 = vcombine.low %v3317_v58, %v3335_v2 }
  0x62   : > { %2521 = vmatpush3.bf16.msra.mxu1 %v2774_v19  ;;  %2482 = vmatprep.subr.bf16.mxu0 %v2775_v20  ;;  %v852_v53 = vshrl.u32 %v2315_v47, 16  ;;  %v854_v54 = vshll.u32 %v2315_v47, 16  ;;  %v2802_v62 = vld [vmem:[%s3612_s2 + $0x180] sm:$0xff]   ;;  %v2804_v1 = vld [vmem:[%s3612_s2 + $0x1c8] sm:$0xff]   ;;  %v3344_v6 = vld [vmem:[%s3284_s30 + $0x98] sm:$0xf] }
  0x63   : > { %2522 = vmatprep.subr.bf16.mxu1 %v2776_v21  ;;  %v849_v56 = vrot.slane %v847_v51, 1  ;;  %v2806_v4 = vld [vmem:[%s3612_s2 + $0x188] sm:$0xff]   ;;  %v3347_v7 = vld [vmem:[%s3284_s30 + $0x10] sm:$0xf]  ;;  %v778_v8 = vld [vmem:[%s3284_s30 + $0x84] sm:$0x1]  ;;  %v2344_v9 = vcombine.low %v781_v3, %v3344_v6 }
  0x64   : > { %v856_v57 = vrot.slane %v854_v54, 1  ;;  %v758_v10 = vld [vmem:[%s3284_s30 + $0x14] sm:$0x1]  ;;  %v3353_v11 = vld [vmem:[%s3284_s30 + $0x18] sm:$0xf] }
  0x65   : > { %2483 = vmatpush3.bf16.msra.mxu0 %v2777_v22  ;;  %v850_v59 = vor.u32 %v849_v56, %v845_v52  ;;  %v760_v12 = vld [vmem:[%s3284_s30 + $0x1c] sm:$0x1]  ;;  %v780_v13 = vld [vmem:[%s3284_s30 + $0x8c] sm:$0x1]  ;;  %v2316_v14 = vcombine.low %v3347_v7, %v758_v10  ;;  %v2341_v16 = vcombine.low %v3347_v7, %v3353_v11  ;;  %v2815_v17 = vld [vmem:[%s3612_s2 + $0x150] sm:$0xff]  }
  0x66   : > { %2523 = vmatpush3.bf16.msra.mxu1 %v2778_v23  ;;  %2484 = vmatprep.subr.bf16.mxu0 %v2779_v24  ;;  %v3322_v61 = vor.u32 %v856_v57, %v852_v53  ;;  %v2317_v15 = vcombine.low %v3353_v11, %v760_v12  ;;  %v2816_v18 = vld [vmem:[%s3612_s2 + $0x1d0] sm:$0xff]   ;;  %v3371_v24 = vcombine.low %v3292_v39, %v778_v8  ;;  %v2822_v39 = vld [vmem:[%s3612_s2 + $0x198] sm:$0xff]   ;;  %v3406_v43 = vld [vmem:[%s3284_s30 + $0x68] sm:$0xf] }
  0x67   : > { %2524 = vmatprep.subr.bf16.mxu1 %v2780_v25  ;;  %v859_v19 = vshrl.u32 %v2316_v14, 16  ;;  %v861_v20 = vshll.u32 %v2316_v14, 16  ;;  %v2817_v23 = vld [vmem:[%s3612_s2 + $0x110] sm:$0xff]   ;;  %v785_v45 = vld [vmem:[%s3284_s30 + $0xa0] sm:$0xf] }
  0x68   : > { %v2334_v0 = vcombine.low %v850_v59, %v3322_v61  ;;  %v866_v21 = vshrl.u32 %v2317_v15, 16  ;;  %v868_v22 = vshll.u32 %v2317_v15, 16  ;;  %v943_v36 = vshll.u32 %v3371_v24, 16  ;;  %v784_v46 = vld [vmem:[%s3284_s30 + $0x9c] sm:$0x1]  ;;  %v2833_v14 = vld [vmem:[%s3612_s2 + $0x1a0] sm:$0xff]  }
  0x69   : > { %2485 = vmatpush3.bf16.msra.mxu0 %v2781_v26  ;;  %v863_v25 = vrot.slane %v861_v20, 1  ;;  %v762_v52 = vld [vmem:[%s3284_s30 + $0x24] sm:$0x1]  ;;  %v3420_v53 = vld [vmem:[%s3284_s30 + $0x28] sm:$0xf] }
  0x6a   : > { %2525 = vmatpush3.bf16.msra.mxu1 %v2782_v27  ;;  %2486 = vmatprep.subr.bf16.mxu0 %v2783_v28  ;;  %v870_v26 = vrot.slane %v868_v22, 1  ;;  %v2818_v27 = vld [vmem:[%s3612_s2 + $0x190] sm:$0xff]   ;;  %v2819_v28 = vld [vmem:[%s3612_s2 + $0x158] sm:$0xff]   ;;  %v764_v54 = vld [vmem:[%s3284_s30 + $0x2c] sm:$0x1] }
  0x6b   : > { %2526 = vmatprep.subr.bf16.mxu1 %v2784_v29  ;;  %v3380_v29 = vcombine.low %v3295_v40, %v780_v13  ;;  %v3401_v40 = vld [vmem:[%s3284_s30 + $0x60] sm:$0xf]  ;;  %v2319_v57 = vcombine.low %v3420_v53, %v764_v54  ;;  %v788_v10 = vld [vmem:[%s3284_s30 + $0xac] sm:$0x1]  ;;  %v2845_v54 = vld [vmem:[%s3612_s2 + $0x170] sm:$0xff]  }
  0x6c   : > { %v2351_v47 = vcombine.low %v3401_v40, %v3406_v43  ;;  %v2834_v15 = vld [vmem:[%s3612_s2 + $0x168] sm:$0xff]  }
  0x6d   : > { %2487 = vmatpush3.bf16.msra.mxu0 %v2785_v30  ;;  %v782_v30 = vld [vmem:[%s3284_s30 + $0x94] sm:$0x1]  ;;  %v948_v41 = vshrl.u32 %v3380_v29, 16  ;;  %v950_v42 = vshll.u32 %v3380_v29, 16  ;;  %v2836_v20 = vld [vmem:[%s3612_s2 + $0x128] sm:$0xff]  }
  0x6e   : > { %2527 = vmatpush3.bf16.msra.mxu1 %v2786_v31  ;;  %2488 = vmatprep.subr.bf16.mxu0 %v2787_v32  ;;  %v3383_v31 = vor.u32 %v863_v25, %v859_v19  ;;  %v3385_v32 = vor.u32 %v870_v26, %v866_v21  ;;  %v2835_v19 = vld [vmem:[%s3612_s2 + $0x1e8] sm:$0xff]   ;;  %v3467_v26 = vld [vmem:[%s3284_s30 + $0x70] sm:$0xf] }
  0x6f   : > { %2528 = vmatprep.subr.bf16.mxu1 %v2788_v33  ;;  %v2820_v33 = vld [vmem:[%s3612_s2 + $0x1d8] sm:$0xff]   ;;  %v2837_v25 = vld [vmem:[%s3612_s2 + $0x1a8] sm:$0xff]   ;;  %v789_v29 = vld [vmem:[%s3284_s30 + $0xb0] sm:$0xf] }
  0x70   : > { %v2343_v38 = vcombine.low %v3383_v31, %v3385_v32 }
  0x71   : > { %2489 = vmatpush3.bf16.msra.mxu0 %v2789_v34  ;;  %v941_v34 = vshrl.u32 %v3371_v24, 16 }
  0x72   : > { %2529 = vmatpush3.bf16.msra.mxu1 %v2790_v35  ;;  %2554 = vmatprep.subr.bf16.mxu0 %v2799_v49  ;;  %v2821_v35 = vld [vmem:[%s3612_s2 + $0x118] sm:$0xff]   ;;  %v3414_v49 = vld [vmem:[%s3284_s30 + $0x20] sm:$0xf] }
  0x73   : > { %2594 = vmatprep.subr.bf16.mxu1 %v2800_v50  ;;  %v3416_v50 = vcombine.low %v781_v3, %v782_v30  ;;  %v2318_v56 = vcombine.low %v3414_v49, %v762_v52  ;;  %v2350_v59 = vcombine.low %v3414_v49, %v3420_v53 }
  0x74   : > { %1747 = vmatmul.mubr.bf16.vlgmr.msra.gmra.mrb[0].mxu0 %v2332_v48  ;;  %v787_v48 = vld [vmem:[%s3284_s30 + $0xa8] sm:$0xf] }
  0x75   : > { %2555 = vmatpush3.bf16.msra.mxu0 %v2801_v55  ;;  %1812 = vmatmul.mubr.bf16.vlgmr.msra.gmra.mrb[0].mxu1 %v2334_v0  ;;  %v2353_v51 = vcombine.low %v785_v45, %v787_v48  ;;  %v945_v55 = vrot.slane %v943_v36, 1  ;;  %v2831_v0 = vld [vmem:[%s3612_s2 + $0x1e0] sm:$0xff]   ;;  %v875_v3 = vshll.u32 %v2318_v56, 16  ;;  %v957_v8 = vshll.u32 %v3416_v50, 16  ;;  %v3480_v36 = vld [vmem:[%s3284_s30 + $0x30] sm:$0xf] }
  0x76   : > { %2556 = vmatprep.subr.bf16.mxu0 %v2803_v60  ;;  %2595 = vmatpush3.bf16.msra.mxu1 %v2802_v62  ;;  %v2830_v60 = vld [vmem:[%s3612_s2 + $0x160] sm:$0xff]   ;;  %v952_v62 = vrot.slane %v950_v42, 1  ;;  %v955_v30 = vshrl.u32 %v3416_v50, 16  ;;  %v766_v42 = vld [vmem:[%s3284_s30 + $0x34] sm:$0x1] }
  0x77   : > { %2596 = vmatprep.subr.bf16.mxu1 %v2804_v1  ;;  %1754 = vmatprep.mubr.bf16.mxu0 %v2342_v5  ;;  %v873_v1 = vshrl.u32 %v2318_v56, 16  ;;  %v882_v5 = vshll.u32 %v2319_v57, 16  ;;  %v877_v12 = vrot.slane %v875_v3, 1  ;;  %v946_v21 = vor.u32 %v945_v55, %v941_v34  ;;  %v2846_v56 = vld [vmem:[%s3612_s2 + $0x1f0] sm:$0xff]   ;;  %v792_v3 = vld [vmem:[%s3284_s30 + $0xbc] sm:$0x1] }
  0x78   : > { %1819 = vmatprep.mubr.bf16.mxu1 %v2344_v9  ;;  %v786_v9 = vld [vmem:[%s3284_s30 + $0xa4] sm:$0x1]  ;;  %v953_v22 = vor.u32 %v952_v62, %v948_v41  ;;  %v2320_v50 = vcombine.low %v3480_v36, %v766_v42  ;;  %v2857_v42 = vld [vmem:[%s3284_s30 + $0xd0] ss:$8 sps:$4 sm:$0xff]  }
  0x79   : > { %2557 = vmatpush3.bf16.msra.mxu0 %v2805_v63  ;;  %v3431_v63 = vcombine.low %v3344_v6, %v784_v46  ;;  %v2832_v6 = vld [vmem:[%s3612_s2 + $0x120] sm:$0xff]   ;;  %v884_v13 = vrot.slane %v882_v5, 1  ;;  %v768_v46 = vld [vmem:[%s3284_s30 + $0x3c] sm:$0x1] }
  0x7a   : > { %2558 = vmatprep.subr.bf16.mxu0 %v2815_v17  ;;  %2597 = vmatpush3.bf16.msra.mxu1 %v2806_v4  ;;  %v880_v4 = vshrl.u32 %v2319_v57, 16  ;;  %v3449_v17 = vor.u32 %v877_v12, %v873_v1  ;;  %v887_v57 = vshrl.u32 %v2320_v50, 16  ;;  %v790_v1 = vld [vmem:[%s3284_s30 + $0xb4] sm:$0x1] }
  0x7b   : > { %2598 = vmatprep.subr.bf16.mxu1 %v2816_v18 }
  0x7c   : > { %1755 = vmatmul.mubr.bf16.gmra.mrb[4].mxu0 %v2341_v16  ;;  %v964_v16 = vshll.u32 %v3431_v63, 16  ;;  %v3451_v18 = vor.u32 %v884_v13, %v880_v4  ;;  %v2850_v13 = vld [vmem:[%s3612_s2 + $0x1f8] sm:$0xff]  }
  0x7d   : > { %2559 = vmatpush3.bf16.msra.mxu0 %v2817_v23  ;;  %1820 = vmatmul.mubr.bf16.gmra.mrb[4].mxu1 %v2343_v38  ;;  %v3459_v23 = vcombine.low %v785_v45, %v786_v9  ;;  %v962_v38 = vshrl.u32 %v3431_v63, 16  ;;  %v3485_v45 = vld [vmem:[%s3284_s30 + $0x38] sm:$0xf]  ;;  %v2847_v63 = vld [vmem:[%s3612_s2 + $0x130] sm:$0xff]  }
  0x7e   : > { %2560 = vmatprep.subr.bf16.mxu0 %v2819_v28  ;;  %2599 = vmatpush3.bf16.msra.mxu1 %v2818_v27  ;;  %v2352_v24 = vcombine.low %v3449_v17, %v3451_v18  ;;  %v3469_v27 = vcombine.low %v787_v48, %v788_v10  ;;  %v3472_v28 = vld [vmem:[%s3284_s30 + $0x78] sm:$0xf]  ;;  %v2359_v52 = vcombine.low %v3480_v36, %v3485_v45 }
  0x7f   : > { %2600 = vmatprep.subr.bf16.mxu1 %v2820_v33  ;;  %1762 = vmatprep.mubr.bf16.mxu0 %v2351_v47  ;;  %v959_v33 = vrot.slane %v957_v8, 1  ;;  %v2360_v34 = vcombine.low %v3467_v26, %v3472_v28  ;;  %v2337_v47 = vcombine.low %v946_v21, %v953_v22  ;;  %v971_v48 = vshll.u32 %v3459_v23, 16  ;;  %v2848_v8 = vld [vmem:[%s3612_s2 + $0x1b0] sm:$0xff]   ;;  %v2849_v9 = vld [vmem:[%s3612_s2 + $0x178] sm:$0xff]  }
  0x80   : > { %1827 = vmatprep.mubr.bf16.mxu1 %v2353_v51  ;;  %v2321_v51 = vcombine.low %v3485_v45, %v768_v46  ;;  %v978_v55 = vshll.u32 %v3469_v27, 16  ;;  %v2852_v22 = vld [vmem:[%s3612_s2 + $0x1b8] sm:$0xff]  }
  0x81   : > { %2561 = vmatpush3.bf16.msra.mxu0 %v2821_v35  ;;  %v791_v35 = vld [vmem:[%s3284_s30 + $0xb8] sm:$0xf] }
  0x82   : > { %2601 = vmatpush3.bf16.msra.mxu1 %v2822_v39  ;;  %2562 = vmatprep.subr.bf16.mxu0 %v2830_v60  ;;  %v966_v39 = vrot.slane %v964_v16, 1  ;;  %v2362_v41 = vcombine.low %v789_v29, %v791_v35  ;;  %v894_v60 = vshrl.u32 %v2321_v51, 16  ;;  %v896_v62 = vshll.u32 %v2321_v51, 16 }
  0x83   : > { %2602 = vmatprep.subr.bf16.mxu1 %v2831_v0  ;;  %v969_v0 = vshrl.u32 %v3459_v23, 16  ;;  %v2339_v16 = vcombine.low %v3288_v37, %v3317_v58  ;;  %v980_v23 = vrot.slane %v978_v55, 1  ;;  %v2854_v37 = vld [vmem:[%s3612_s2 + $0x200] sm:$0xff]  }
  0x84   : > { %1763 = vmatmul.mubr.bf16.gmra.mrb[8].mxu0 %v2350_v59  ;;  %v889_v59 = vshll.u32 %v2320_v50, 16  ;;  %v898_v5 = vrot.slane %v896_v62, 1  ;;  %v2862_v55 = vld [vmem:[%s3284_s30 + $0xe0] ss:$8 sps:$4 sm:$0xff]  }
  0x85   : > { %2563 = vmatpush3.bf16.msra.mxu0 %v2832_v6  ;;  %1828 = vmatmul.mubr.bf16.gmra.mrb[8].mxu1 %v2352_v24  ;;  %v960_v6 = vor.u32 %v959_v33, %v955_v30  ;;  %v2328_v24 = vcombine.low %v789_v29, %v790_v1  ;;  %v2853_v30 = vld [vmem:[%s3284_s30 + $0xc0] ss:$8 sps:$4 sm:$0xff]  }
  0x86   : > { %2603 = vmatpush3.bf16.msra.mxu1 %v2833_v14  ;;  %2564 = vmatprep.subr.bf16.mxu0 %v2834_v15  ;;  %v891_v4 = vrot.slane %v889_v59, 1  ;;  %v3514_v12 = vor.u32 %v898_v5, %v894_v60  ;;  %v967_v14 = vor.u32 %v966_v39, %v962_v38  ;;  %v973_v15 = vrot.slane %v971_v48, 1  ;;  %v2859_v39 = vld [vmem:[%s3612_s2 + $0x210] sm:$0xff]   ;;  %v803_v59 = vld [vmem:[%s701_s13 + $0x8] sm:$0xf] }
  0x87   : > { %2604 = vmatprep.subr.bf16.mxu1 %v2835_v19  ;;  %1770 = vmatprep.mubr.bf16.mxu0 %v2360_v34  ;;  %v2851_v19 = vld [vmem:[%s3612_s2 + $0x138] sm:$0xff]   ;;  %v985_v34 = vshll.u32 %v2328_v24, 16  ;;  %v2338_v38 = vcombine.low %v3302_v44, %v3347_v7  ;;  %v2868_v60 = vld [vmem:[%s3612_s2 + $0x230] sm:$0xff]   ;;  %v2366_v62 = vcombine.low %v3472_v28, %v803_v59 }
  0x88   : > { %1835 = vmatprep.mubr.bf16.mxu1 %v2362_v41  ;;  %v3512_v10 = vor.u32 %v891_v4, %v887_v57  ;;  %v2346_v58 = vcombine.low %v960_v6, %v967_v14  ;;  %v974_v33 = vor.u32 %v973_v15, %v969_v0  ;;  %v2348_v41 = vcombine.low %v3335_v2, %v3401_v40  ;;  %v2860_v44 = vld [vmem:[%s3612_s2 + $0x218] sm:$0xff]   ;;  %v2865_v57 = vld [vmem:[%s3612_s2 + $0x228] sm:$0xff]  }
  0x89   : > { %2565 = vmatpush3.bf16.msra.mxu0 %v2836_v20  ;;  %v976_v20 = vshrl.u32 %v3469_v27, 16  ;;  %v2855_v27 = vld [vmem:[%s3612_s2 + $0x208] sm:$0xff]   ;;  %v987_v48 = vrot.slane %v985_v34, 1  ;;  %v2347_v40 = vcombine.low %v3353_v11, %v3414_v49  ;;  %v801_v11 = vld [vmem:[%s701_s13] sm:$0xf]  ;;  %v2340_v0 = vcombine.low %v3322_v61, %v3383_v31 }
  0x8a   : > { %2605 = vmatpush3.bf16.msra.mxu1 %v2837_v25  ;;  %2566 = vmatprep.subr.bf16.mxu0 %v2845_v54  ;;  %v2361_v21 = vcombine.low %v3512_v10, %v3514_v12  ;;  %v2329_v25 = vcombine.low %v791_v35, %v792_v3  ;;  %v2357_v54 = vcombine.low %v3406_v43, %v3467_v26  ;;  %v802_v49 = vld [vmem:[%s701_s13 + $0x4] sm:$0x1] }
  0x8b   : > { %2606 = vmatprep.subr.bf16.mxu1 %v2846_v56  ;;  %v981_v29 = vor.u32 %v980_v23, %v976_v20  ;;  %v2356_v43 = vcombine.low %v3420_v53, %v3480_v36  ;;  %v2330_v26 = vcombine.low %v801_v11, %v802_v49  ;;  %v2869_v53 = vld [vmem:[%s3612_s2 + $0x238] sm:$0xff]   ;;  %v2365_v3 = vcombine.low %v3485_v45, %v801_v11 }
  0x8c   : > { %1771 = vmatmul.mubr.bf16.gmra.mrb[12].mxu0 %v2359_v52  ;;  %v992_v35 = vshll.u32 %v2329_v25, 16  ;;  %v990_v50 = vshrl.u32 %v2329_v25, 16  ;;  %v2864_v52 = vld [vmem:[%s3612_s2 + $0x220] sm:$0xff]   ;;  %v2358_v61 = vcombine.low %v3451_v18, %v3512_v10  ;;  %v2349_v31 = vcombine.low %v3385_v32, %v3449_v17 }
  0x8d   : > { %1876 = vmatprep.mubr.bf16.mxu0 %v2337_v47  ;;  %2567 = vmatpush3.bf16.msra.mxu0 %v2847_v63  ;;  %v2355_v46 = vcombine.low %v974_v33, %v981_v29  ;;  %v983_v47 = vshrl.u32 %v2328_v24, 16  ;;  %v2866_v63 = vld [vmem:[%s3284_s30 + $0xf0] ss:$8 sps:$4 sm:$0xff]   ;;  %v1004_v1 = vshll.u32 %v2330_v26, 16  ;;  %v1002_v28 = vshrl.u32 %v2330_v26, 16 }
  0x8e   : > { %2607 = vmatpush3.bf16.msra.mxu1 %v2848_v8  ;;  %2568 = vmatprep.subr.bf16.mxu0 %v2849_v9  ;;  %v994_v51 = vrot.slane %v992_v35, 1  ;;  %v2331_v32 = vld [vmem:[%s3613_s3] ss:$0 sm:$0xff] }
  0x8f   : > { %2608 = vmatprep.subr.bf16.mxu1 %v2850_v13  ;;  %1836 = vmatmul.mubr.bf16.gmra.mrb[12].mxu1 %v2361_v21  ;;  %v988_v2 = vor.u32 %v987_v48, %v983_v47  ;;  %v1006_v36 = vrot.slane %v1004_v1, 1 }
  0x90   : > { %1941 = vmatprep.mubr.bf16.mxu1 %v2339_v16  ;;  %v995_v7 = vor.u32 %v994_v51, %v990_v50 }
  0x91   : > { %2569 = vmatpush3.bf16.msra.mxu0 %v2851_v19  ;;  %v1007_v4 = vor.u32 %v1006_v36, %v1002_v28 }
  0x92   : > { %2609 = vmatpush3.bf16.msra.mxu1 %v2852_v22  ;;  %2646 = vmatprep.subr.bf16.mxu0 %v2854_v37  ;;  %v2364_v56 = vcombine.low %v988_v2, %v995_v7 }
  0x93   : > { %2670 = vmatprep.subr.bf16.mxu1 %v2854_v37  ;;  %v2367_v5 = vcombine.low %v3514_v12, %v1007_v4 }
  0x94   : > { %1877 = vmatmul.mubr.bf16.vlgmr.msra.gmra.mrb[16].mxu0 %v2853_v30 }
  0x95   : > { %2647 = vmatpush3.bf16.msra.mxu0 %v2854_v37  ;;  %1884 = vmatprep.mubr.bf16.mxu0 %v2346_v58 }
  0x96   : > { %2648 = vmatprep.subr.bf16.mxu0 %v2855_v27 }
  0x97   : > { %1942 = vmatmul.mubr.bf16.vlgmr.msra.gmra.mrb[16].mxu1 %v2338_v38 }
  0x98   : > { %2678 = vmatpush3.bf16.msra.mxu1 %v2854_v37  ;;  %1949 = vmatprep.mubr.bf16.mxu1 %v2348_v41 }
  0x99   : > { %2649 = vmatpush3.bf16.msra.mxu0 %v2855_v27  ;;  %2671 = vmatprep.subr.bf16.mxu1 %v2855_v27 }
  0x9a   : > { %2650 = vmatprep.subr.bf16.mxu0 %v2859_v39 }
  0x9c   : > { %1885 = vmatmul.mubr.bf16.gmra.mrb[20].mxu0 %v2857_v42  ;;  %2679 = vmatpush3.bf16.msra.mxu1 %v2855_v27 }
  0x9d   : > { %2651 = vmatpush3.bf16.msra.mxu0 %v2859_v39  ;;  %1892 = vmatprep.mubr.bf16.mxu0 %v2355_v46 }
  0x9e   : > { %2652 = vmatprep.subr.bf16.mxu0 %v2860_v44  ;;  %2672 = vmatprep.subr.bf16.mxu1 %v2859_v39 }
  0x9f   : > { %1950 = vmatmul.mubr.bf16.gmra.mrb[20].mxu1 %v2347_v40 }
  0xa0   : > { %2680 = vmatpush3.bf16.msra.mxu1 %v2859_v39  ;;  %1957 = vmatprep.mubr.bf16.mxu1 %v2357_v54 }
  0xa1   : > { %2653 = vmatpush3.bf16.msra.mxu0 %v2860_v44  ;;  %2673 = vmatprep.subr.bf16.mxu1 %v2860_v44 }
  0xa2   : > { %2654 = vmatprep.subr.bf16.mxu0 %v2864_v52 }
  0xa4   : > { %1893 = vmatmul.mubr.bf16.gmra.mrb[24].mxu0 %v2862_v55  ;;  %2681 = vmatpush3.bf16.msra.mxu1 %v2860_v44 }
  0xa5   : > { %2655 = vmatpush3.bf16.msra.mxu0 %v2864_v52  ;;  %1900 = vmatprep.mubr.bf16.mxu0 %v2364_v56 }
  0xa6   : > { %2656 = vmatprep.subr.bf16.mxu0 %v2865_v57  ;;  %2674 = vmatprep.subr.bf16.mxu1 %v2864_v52 }
  0xa7   : > { %1958 = vmatmul.mubr.bf16.gmra.mrb[24].mxu1 %v2356_v43 }
  0xa8   : > { %2682 = vmatpush3.bf16.msra.mxu1 %v2864_v52  ;;  %1965 = vmatprep.mubr.bf16.mxu1 %v2366_v62 }
  0xa9   : > { %2657 = vmatpush3.bf16.msra.mxu0 %v2865_v57  ;;  %2675 = vmatprep.subr.bf16.mxu1 %v2865_v57 }
  0xaa   : > { %2658 = vmatprep.subr.bf16.mxu0 %v2868_v60 }
  0xac   : > { %1901 = vmatmul.mubr.bf16.gmra.mrb[28].mxu0 %v2866_v63  ;;  %2683 = vmatpush3.bf16.msra.mxu1 %v2865_v57 }
  0xad   : > { %2659 = vmatpush3.bf16.msra.mxu0 %v2868_v60  ;;  %2662 = vmatprep.mubr.bf16.mxu0 %v2340_v0 }
  0xae   : > { %2660 = vmatprep.subr.bf16.mxu0 %v2869_v53  ;;  %2676 = vmatprep.subr.bf16.mxu1 %v2868_v60 }
  0xaf   : > { %1966 = vmatmul.mubr.bf16.gmra.mrb[28].mxu1 %v2365_v3 }
  0xb0   : > { %2684 = vmatpush3.bf16.msra.mxu1 %v2868_v60  ;;  %2666 = vmatprep.mubr.bf16.mxu1 %v2358_v61 }
  0xb1   : > { %2661 = vmatpush3.bf16.msra.mxu0 %v2869_v53  ;;  %2677 = vmatprep.subr.bf16.mxu1 %v2869_v53 }
  0xb4   : > { %2663 = vmatmul.mubr.bf16.vlgmr.msra.gmra.mrb[32].mxu0 %v2349_v31  ;;  %2685 = vmatpush3.bf16.msra.mxu1 %v2869_v53 }
  0xb7   : > { %2667 = vmatmul.mubr.bf16.vlgmr.msra.gmra.mrb[32].mxu1 %v2367_v5 }
 0x147   : > { %v2490_v45 = vpop.f32.mrb[0].mxu0 }
 0x148   : > { %v2491_v8 = vpop.f32.mrb[1].mxu0  ;;  %v2530_v17 = vpop.f32.mrb[0].mxu1 }
 0x149   : > { %v2492_v9 = vadd.f32 %v2491_v8, %v2490_v45  ;;  %v2493_v6 = vpop.f32.mrb[2].mxu0  ;;  %v2531_v14 = vpop.f32.mrb[1].mxu1 }
 0x14a   : > { %v2494_v18 = vpop.f32.mrb[3].mxu0  ;;  %v2532_v15 = vadd.f32 %v2531_v14, %v2530_v17  ;;  %v2533_v16 = vpop.f32.mrb[2].mxu1 }
 0x14b   : > { %v2495_v10 = vadd.f32 %v2494_v18, %v2493_v6  ;;  %v1749_v13 = vadd.f32 %v2492_v9, %v2331_v32  ;;  %v2534_v20 = vpop.f32.mrb[3].mxu1 }
 0x14c   : > { %v2535_v21 = vadd.f32 %v2534_v20, %v2533_v16 }
 0x14d   : > { %v1752_v19 = vadd.f32 %v2495_v10, %v2331_v32  ;;  %v1814_v12 = vadd.f32 %v2532_v15, %v1749_v13 }
 0x14f   : > { %v2496_v22 = vpop.f32.mrb[4].mxu0  ;;  %v1817_v24 = vadd.f32 %v2535_v21, %v1752_v19 }
 0x150   : > { %v2497_v23 = vpop.f32.mrb[5].mxu0  ;;  %v2536_v27 = vpop.f32.mrb[4].mxu1 }
 0x151   : > { %v2498_v25 = vadd.f32 %v2497_v23, %v2496_v22  ;;  %v2499_v30 = vpop.f32.mrb[6].mxu0  ;;  %v2537_v29 = vpop.f32.mrb[5].mxu1 }
 0x152   : > { %v2500_v37 = vpop.f32.mrb[7].mxu0  ;;  %v2538_v34 = vadd.f32 %v2537_v29, %v2536_v27  ;;  %v2539_v35 = vpop.f32.mrb[6].mxu1 }
 0x153   : > { %v2501_v58 = vadd.f32 %v2500_v37, %v2499_v30  ;;  %v1757_v33 = vadd.f32 %v2498_v25, %v2331_v32  ;;  %v2540_v39 = vpop.f32.mrb[7].mxu1 }
 0x154   : > { %v2541_v42 = vadd.f32 %v2540_v39, %v2539_v35 }
 0x155   : > { %v1760_v38 = vadd.f32 %v2501_v58, %v2331_v32  ;;  %v1822_v41 = vadd.f32 %v2538_v34, %v1757_v33 }
 0x157   : > { %v2502_v46 = vpop.f32.mrb[8].mxu0  ;;  %v1825_v48 = vadd.f32 %v2541_v42, %v1760_v38 }
 0x158   : > { %v2503_v47 = vpop.f32.mrb[9].mxu0  ;;  %v2542_v7 = vpop.f32.mrb[8].mxu1 }
 0x159   : > { %v2504_v50 = vadd.f32 %v2503_v47, %v2502_v46  ;;  %v2505_v51 = vpop.f32.mrb[10].mxu0  ;;  %v2543_v52 = vpop.f32.mrb[9].mxu1 }
 0x15a   : > { %v2506_v44 = vpop.f32.mrb[11].mxu0  ;;  %v2544_v54 = vadd.f32 %v2543_v52, %v2542_v7  ;;  %v2545_v55 = vpop.f32.mrb[10].mxu1 }
 0x15b   : > { %v2507_v2 = vadd.f32 %v2506_v44, %v2505_v51  ;;  %v1765_v40 = vadd.f32 %v2504_v50, %v2331_v32  ;;  %v2546_v57 = vpop.f32.mrb[11].mxu1 }
 0x15c   : > { %v2547_v49 = vadd.f32 %v2546_v57, %v2545_v55 }
 0x15d   : > { %v1768_v56 = vadd.f32 %v2507_v2, %v2331_v32  ;;  %v1830_v11 = vadd.f32 %v2544_v54, %v1765_v40 }
 0x15f   : > { %v2508_v59 = vpop.f32.mrb[12].mxu0  ;;  %v1833_v26 = vadd.f32 %v2547_v49, %v1768_v56 }
 0x160   : > { %v2509_v43 = vpop.f32.mrb[13].mxu0 }
 0x161   : > { %v2510_v60 = vadd.f32 %v2509_v43, %v2508_v59  ;;  %v2511_v62 = vpop.f32.mrb[14].mxu0 }
 0x162   : > { %v2512_v63 = vpop.f32.mrb[15].mxu0  ;;  %v2548_v1 = vpop.f32.mrb[12].mxu1 }
 0x163   : > { %v2513_v0 = vadd.f32 %v2512_v63, %v2511_v62  ;;  %v1773_v53 = vadd.f32 %v2510_v60, %v2331_v32  ;;  %v2549_v28 = vpop.f32.mrb[13].mxu1 }
 0x164   : > { %v2550_v36 = vadd.f32 %v2549_v28, %v2548_v1  ;;  %v2551_v3 = vpop.f32.mrb[14].mxu1 }
 0x165   : > { %v1776_v61 = vadd.f32 %v2513_v0, %v2331_v32  ;;  %v2552_v4 = vpop.f32.mrb[15].mxu1 }
 0x166   : > { %v1838_v45 = vadd.f32 %v2550_v36, %v1773_v53  ;;  %v2553_v8 = vadd.f32 %v2552_v4, %v2551_v3 }
 0x167   : > { %v2570_v31 = vpop.f32.mrb[16].mxu0 }
 0x168   : > { %v2571_v5 = vpop.f32.mrb[17].mxu0  ;;  %v1841_v10 = vadd.f32 %v2553_v8, %v1776_v61 }
 0x169   : > { %v2572_v9 = vadd.f32 %v2571_v5, %v2570_v31  ;;  %v2573_v6 = vpop.f32.mrb[18].mxu0 }
 0x16a   : > { %v2574_v18 = vpop.f32.mrb[19].mxu0  ;;  %v2610_v14 = vpop.f32.mrb[16].mxu1 }
 0x16b   : > { %v1879_v17 = vadd.f32 %v2572_v9, %v1814_v12  ;;  %v2575_v13 = vadd.f32 %v2574_v18, %v2573_v6  ;;  %v2611_v16 = vpop.f32.mrb[17].mxu1 }
 0x16c   : > { %v2612_v19 = vadd.f32 %v2611_v16, %v2610_v14  ;;  %v2613_v20 = vpop.f32.mrb[18].mxu1 }
 0x16d   : > { %v1882_v15 = vadd.f32 %v2575_v13, %v1817_v24  ;;  %v2614_v22 = vpop.f32.mrb[19].mxu1 }
 0x16e   : > { %v2615_v32 = vadd.f32 %v2614_v22, %v2613_v20  ;;  %v1944_v37 = vadd.f32 %v2612_v19, %v1879_v17 }
 0x16f   : > { %v2576_v21 = vpop.f32.mrb[20].mxu0 }
 0x170   : > { %v2577_v23 = vpop.f32.mrb[21].mxu0  ;;  %v1947_v29 = vadd.f32 %v2615_v32, %v1882_v15 }
 0x171   : > { %v2578_v25 = vadd.f32 %v2577_v23, %v2576_v21  ;;  %v2579_v30 = vpop.f32.mrb[22].mxu0 }
 0x172   : > { %v2580_v58 = vpop.f32.mrb[23].mxu0  ;;  %v2616_v34 = vpop.f32.mrb[20].mxu1 }
 0x173   : > { %v1887_v27 = vadd.f32 %v2578_v25, %v1822_v41  ;;  %v2581_v33 = vadd.f32 %v2580_v58, %v2579_v30  ;;  %v2617_v12 = vpop.f32.mrb[21].mxu1 }
 0x174   : > { %v2618_v38 = vadd.f32 %v2617_v12, %v2616_v34  ;;  %v2619_v39 = vpop.f32.mrb[22].mxu1 }
 0x175   : > { %v1890_v35 = vadd.f32 %v2581_v33, %v1825_v48  ;;  %v2620_v42 = vpop.f32.mrb[23].mxu1 }
 0x176   : > { %v2621_v47 = vadd.f32 %v2620_v42, %v2619_v39  ;;  %v1952_v44 = vadd.f32 %v2618_v38, %v1887_v27 }
 0x177   : > { %v2582_v24 = vpop.f32.mrb[24].mxu0 }
 0x178   : > { %v2583_v46 = vpop.f32.mrb[25].mxu0  ;;  %v1955_v52 = vadd.f32 %v2621_v47, %v1890_v35 }
 0x179   : > { %v2584_v50 = vadd.f32 %v2583_v46, %v2582_v24  ;;  %v2585_v51 = vpop.f32.mrb[26].mxu0 }
 0x17a   : > { %v2586_v2 = vpop.f32.mrb[27].mxu0  ;;  %v2622_v54 = vpop.f32.mrb[24].mxu1 }
 0x17b   : > { %v1895_v7 = vadd.f32 %v2584_v50, %v1830_v11  ;;  %v2587_v40 = vadd.f32 %v2586_v2, %v2585_v51  ;;  %v2623_v55 = vpop.f32.mrb[25].mxu1 }
 0x17c   : > { %v2624_v56 = vadd.f32 %v2623_v55, %v2622_v54  ;;  %v2625_v57 = vpop.f32.mrb[26].mxu1 }
 0x17d   : > { %v1898_v41 = vadd.f32 %v2587_v40, %v1833_v26  ;;  %v2626_v49 = vpop.f32.mrb[27].mxu1 }
 0x17e   : > { %v2627_v43 = vadd.f32 %v2626_v49, %v2625_v57  ;;  %v1960_v63 = vadd.f32 %v2624_v56, %v1895_v7 }
 0x17f   : > { %v2588_v48 = vpop.f32.mrb[28].mxu0 }
 0x180   : > { %v2589_v59 = vpop.f32.mrb[29].mxu0  ;;  %v1963_v28 = vadd.f32 %v2627_v43, %v1898_v41 }
 0x181   : > { %v2590_v60 = vadd.f32 %v2589_v59, %v2588_v48  ;;  %v2591_v62 = vpop.f32.mrb[30].mxu0 }
 0x182   : > { %v2592_v0 = vpop.f32.mrb[31].mxu0  ;;  %v2628_v36 = vpop.f32.mrb[28].mxu1 }
 0x183   : > { %v1903_v1 = vadd.f32 %v2590_v60, %v1838_v45  ;;  %v2593_v53 = vadd.f32 %v2592_v0, %v2591_v62  ;;  %v2629_v3 = vpop.f32.mrb[29].mxu1 }
 0x184   : > { %v2630_v61 = vadd.f32 %v2629_v3, %v2628_v36  ;;  %v2631_v31 = vpop.f32.mrb[30].mxu1 }
 0x185   : > { %v1906_v11 = vadd.f32 %v2593_v53, %v1841_v10  ;;  %v2632_v4 = vpop.f32.mrb[31].mxu1 }
 0x186   : > { %v2633_v9 = vadd.f32 %v2632_v4, %v2631_v31  ;;  %v1968_v6 = vadd.f32 %v2630_v61, %v1903_v1 }
 0x187   : > { %v2664_v26 = vpop.f32.mrb[32].mxu0 }
 0x188   : > { %v3582_v5 = vadd.f32 %v2664_v26, %v1952_v44  ;;  %v2008_v8 = vpop.f32.mrb[33].mxu0  ;;  %v1971_v10 = vadd.f32 %v2633_v9, %v1906_v11 }
 0x189   : > { %v3584_v18 = vadd.f32 %v2008_v8, %v1944_v37  ;;  %v2665_v17 = vpop.f32.mrb[34].mxu0 }
 0x18a   : > { %v2442_v13 = vmul.f32 -1.442695, %v3582_v5  ;;  %v2020_v45 = vadd.f32 %v2665_v17, %v1955_v52  ;;  %v2011_v14 = vpop.f32.mrb[35].mxu0  ;;  %v2668_v20 = vpop.f32.mrb[32].mxu1 }
 0x18b   : > { %v2440_v15 = vmul.f32 -1.442695, %v3584_v18  ;;  %v2012_v16 = vadd.f32 %v2011_v14, %v1947_v29  ;;  %v2033_v22 = vadd.f32 %v2668_v20, %v1968_v6  ;;  %v2024_v23 = vpop.f32.mrb[33].mxu1 }
 0x18c   : > { %2870 = vpow2.f32 %v2442_v13  ;;  %v2443_v19 = vmul.f32 -1.442695, %v2020_v45  ;;  %v2025_v32 = vadd.f32 %v2024_v23, %v1960_v63  ;;  %v2669_v25 = vpop.f32.mrb[34].mxu1 }
 0x18d   : > { %2872 = vpow2.f32 %v2440_v15  ;;  %v2441_v21 = vmul.f32 -1.442695, %v2012_v16  ;;  %v2446_v30 = vmul.f32 -1.442695, %v2033_v22  ;;  %v2036_v37 = vadd.f32 %v2669_v25, %v1971_v10  ;;  %v2027_v58 = vpop.f32.mrb[35].mxu1 }
 0x18e   : > { %2874 = vpow2.f32 %v2443_v19  ;;  %v2444_v27 = vmul.f32 -1.442695, %v2025_v32  ;;  %v2028_v33 = vadd.f32 %v2027_v58, %v1963_v28 }
 0x18f   : > { %2876 = vpow2.f32 %v2441_v21  ;;  %v2447_v34 = vmul.f32 -1.442695, %v2036_v37 }
 0x190   : > { %2878 = vpow2.f32 %v2446_v30  ;;  %v2445_v29 = vmul.f32 -1.442695, %v2028_v33 }
 0x191   : > { %2880 = vpow2.f32 %v2444_v27 }
 0x192   : > { %2882 = vpow2.f32 %v2447_v34 }
 0x193   : > { %2884 = vpow2.f32 %v2445_v29 }
 0x196   : > { %v2871_v35 = vpop.eup %2870 }
 0x197   : > { %v2873_v12 = vpop.eup %2872  ;;  %v2065_v38 = vadd.f32 1.0, %v2871_v35 }
 0x198   : > { %v2875_v39 = vpop.eup %2874  ;;  %v2063_v24 = vadd.f32 1.0, %v2873_v12 }
 0x199   : > { %v2877_v42 = vpop.eup %2876  ;;  %2886 = vrcp.f32 %v2065_v38  ;;  %v2066_v46 = vadd.f32 1.0, %v2875_v39 }
 0x19a   : > { %2888 = vrcp.f32 %v2063_v24  ;;  %v2064_v47 = vadd.f32 1.0, %v2877_v42  ;;  %v2879_v50 = vpop.eup %2878 }
 0x19b   : > { %2890 = vrcp.f32 %v2066_v46  ;;  %v2881_v51 = vpop.eup %2880  ;;  %v2069_v44 = vadd.f32 1.0, %v2879_v50 }
 0x19c   : > { %2892 = vrcp.f32 %v2064_v47  ;;  %v2883_v2 = vpop.eup %2882  ;;  %v2067_v7 = vadd.f32 1.0, %v2881_v51 }
 0x19d   : > { %v2885_v40 = vpop.eup %2884  ;;  %2894 = vrcp.f32 %v2069_v44  ;;  %v2070_v52 = vadd.f32 1.0, %v2883_v2 }
 0x19e   : > { %2896 = vrcp.f32 %v2067_v7  ;;  %v2068_v54 = vadd.f32 1.0, %v2885_v40 }
 0x19f   : > { %2898 = vrcp.f32 %v2070_v52 }
 0x1a0   : > { %2900 = vrcp.f32 %v2068_v54 }
 0x1a3   : > { %v2887_v41 = vpop.eup %2886 }
 0x1a4   : > { %v2889_v55 = vpop.eup %2888  ;;  %v2089_v48 = vmul.f32 %v2887_v41, %v3582_v5 }
 0x1a5   : > { %v2891_v56 = vpop.eup %2890  ;;  %v2087_v59 = vmul.f32 %v2889_v55, %v3584_v18 }
 0x1a6   : > { %v2893_v57 = vpop.eup %2892  ;;  %v2090_v49 = vmul.f32 %v2891_v56, %v2020_v45 }
 0x1a7   : > { %v2088_v43 = vmul.f32 %v2893_v57, %v2012_v16  ;;  %v2895_v62 = vpop.eup %2894 }
 0x1a8   : > { %v2459_v60 = vpack.c.bf16 %v2090_v49, %v2089_v48  ;;  %v2897_v0 = vpop.eup %2896  ;;  %v2093_v28 = vmul.f32 %v2895_v62, %v2033_v22 }
 0x1a9   : > { %v2454_v63 = vpack.c.bf16 %v2088_v43, %v2087_v59  ;;  %v2899_v1 = vpop.eup %2898  ;;  %v2091_v11 = vmul.f32 %v2897_v0, %v2025_v32 }
 0x1aa   : > { %2471 = vst [vmem:[%s750_s29 + $0x8] sm:$0xff] %v2459_v60   ;;  %v2901_v53 = vpop.eup %2900  ;;  %v2094_v36 = vmul.f32 %v2899_v1, %v2036_v37 }
 0x1ab   : > { %2455 = vst [vmem:[%s750_s29] sm:$0xff] %v2454_v63   ;;  %v2092_v3 = vmul.f32 %v2901_v53, %v2028_v33 }
 0x1ac   : > { %v2469_v61 = vpack.c.bf16 %v2094_v36, %v2093_v28 }
 0x1ad   : > { %v2464_v31 = vpack.c.bf16 %v2092_v3, %v2091_v11 }
 0x1ae   : > { %2473 = vst [vmem:[%s750_s29 + $0x18] sm:$0xff] %v2469_v61  }
 0x1af   : > { %2472 = vst [vmem:[%s750_s29 + $0x10] sm:$0xff] %v2464_v31  }
 0x1b0 PF: > { %s14_s19 = sadd.s32 1, %s2956_s19   ;;  %s3616_s15 = smov %s2944_s16 }
 0x1b1   : > { %p11_p11 = scmp.ge.s32.totalorder %s14_s19, 4   ;;  %s3617_s16 = smov %s3026_s24 }
 0x1b2   : > { %s3618_s17 = smov %s2952_s18  ;;  %s3619_s18 = smov %s3621_s20 }
 0x1b3   :  { %13 = sbr.rel (!%p11_p11) target bundleno = 3 (0x3), region = 218 }

// kernel: effnet_forward.5
= control target key start
LH: loop header
LB: loop body
LE: loop exit
PB: predicated region body
PF: predicated region fallthrough
CT: control target
= control target key end

     0   :  { %12 = vsyncpa [#allocation4], 0  ;;  %s5813_s0 = inlined_call_operand.vmem [shape: bf16[2,64,128], index: 0, kind: input, shape index: {}]   ;;  %s5814_s1 = inlined_call_operand.vmem [shape: bf16[128,1280], index: 1, kind: input, shape index: {}]   ;;  %s5815_s2 = inlined_call_operand.vmem [shape: f32[1,1280], index: 2, kind: input, shape index: {}]   ;;  %s5816_s3 = inlined_call_operand.vmem [shape: f32[1280,128], index: 3, kind: input, shape index: {}]   ;;  %s5817_s4 = inlined_call_operand.vmem [shape: f32[1,128], index: 4, kind: input, shape index: {}]   ;;  %s5818_s5 = inlined_call_operand.vmem [shape: f32[128,10], index: 5, kind: input, shape index: {}]   ;;  %s5819_s6 = inlined_call_operand.vmem [shape: f32[1,10], index: 6, kind: input, shape index: {}]   ;;  %s5820_s7 = inlined_call_operand.hbm [shape: f32[2,1,10], index: 7, kind: output, shape index: {}]  }
   0x1   :  { %14 = vsyncpa [#allocation4 + $0x1], 0  ;;  %s3979_s24 = smov 0   ;;  %s3981_s25 = smov 0  }
   0x2   :  { %s3983_s26 = smov 0   ;;  %s3985_s27 = smov 0  }
   0x3   :  { %s3987_s28 = smov 0   ;;  %s3989_s29 = smov 0  }
   0x4 LB: > { %s2763_s30 = sadd.s32 4294967295, %s3931_s29   ;;  %s2764_s8 = sadd.s32 4294967294, %s3931_s29   ;;  %s3931_s29 = sphi %s3989_s29, %s20_s29   ;;  %s3927_s28 = sphi %s3987_s28, %s5967_s28   ;;  %s3923_s27 = sphi %s3985_s27, %s5966_s27   ;;  %s3919_s26 = sphi %s3983_s26, %s5965_s26   ;;  %s3915_s25 = sphi %s3981_s25, %s5964_s25   ;;  %s3911_s24 = sphi %s3979_s24, %s5963_s24  }
   0x5   : > { %s32_s9 = sadd.s32 1, %s3927_s28  ;;  %s193_s10 = sadd.s32 1, %s3919_s26 }
   0x6   : > { %p34_p0 = scmp.ge.s32.totalorder %s32_s9, 2  ;;  %p203_p1 = scmp.ne.s32.totalorder %s3919_s26, %s3915_s25 }
   0x7   : > { %p204_p2 = scmp.eq.s32.totalorder %s2763_s30, 1  ;;  %p209_p3 = scmp.ne.s32.totalorder %s3915_s25, %s3911_s24 }
   0x8   : > { %s5969_s9 = smov (%p34_p0, %s32_s9), 0  ;;  %p210_p5 = scmp.eq.s32.totalorder %s2764_s8, 1 }
   0x9   : > { %p4019_p4 = por %p204_p2, %p203_p1  ;;  %s190_s12 = ssub.s32 %s3927_s28, %s5969_s9 }
   0xa   : > { %p2767_p6 = scmp.ge.s32.totalorder %s3931_s29, 1  ;;  %p191_p7 = scmp.eq.s32.totalorder %s190_s12, 0 }
   0xb   : > { %p4026_p8 = por %p210_p5, %p209_p3  ;;  %p259_p9 = scmp.lt.s32.totalorder %s3931_s29, 3 }
   0xc   : > { %s4032_s14 = scalar_select %p191_p7, %s3919_s26, %s193_s10  }
   0xd   : > { %p260_p10 = pnand %p2767_p6, %p259_p9 }
   0xf   : > { %263 = sbr.rel (%p260_p10) target bundleno = 969 (0x3c9), region = 48 }
  0x16   : > { %v3409_v0 = vld [vmem:[%s5814_s1 + $0x4] ss:$40 sps:$4 sm:$0xff]   ;;  %v3933_v2 = vmov 0   ;;  %v3413_v3 = vld [vmem:[%s5814_s1] ss:$40 sps:$4 sm:$0xff]   ;;  %p295_p11 = scmp.lt.s32.totalorder %s3923_s27, 1 }
  0x17   : > { %v3411_v1 = vld [vmem:[%s5814_s1 + $0xc] ss:$40 sps:$4 sm:$0xff]   ;;  %913 = vmatprep.mubr.bf16.mxu0 %v3933_v2  ;;  %986 = vmatprep.mubr.bf16.mxu1 %v3933_v2  ;;  %v3414_v4 = vld [vmem:[%s5814_s1 + $0x8] ss:$40 sps:$4 sm:$0xff]   ;;  %v3417_v6 = vld [vmem:[%s5814_s1 + $0x5c] ss:$40 sps:$4 sm:$0xff]  }
  0x18   : > { %881 = vmatprep.subr.bf16.mxu0 %v3409_v0  ;;  %954 = vmatprep.subr.bf16.mxu1 %v3411_v1  ;;  %v3415_v5 = vld [vmem:[%s5814_s1 + $0x54] ss:$40 sps:$4 sm:$0xff]   ;;  %v3419_v7 = vld [vmem:[%s5814_s1 + $0x50] ss:$40 sps:$4 sm:$0xff]   ;;  %v3421_v9 = vld [vmem:[%s5814_s1 + $0xa4] ss:$40 sps:$4 sm:$0xff]  }
  0x19   : > { %882 = vmatpush1.bf16.msra.mxu0 %v3413_v3  ;;  %955 = vmatpush1.bf16.msra.mxu1 %v3414_v4  ;;  %v3420_v8 = vld [vmem:[%s5814_s1 + $0x58] ss:$40 sps:$4 sm:$0xff]   ;;  %v3423_v10 = vld [vmem:[%s5814_s1 + $0xac] ss:$40 sps:$4 sm:$0xff]   ;;  %v3426_v12 = vld [vmem:[%s5814_s1 + $0xa8] ss:$40 sps:$4 sm:$0xff]  }
  0x1a   : > { %883 = vmatprep.subr.bf16.mxu0 %v3415_v5  ;;  %956 = vmatprep.subr.bf16.mxu1 %v3417_v6  ;;  %v3425_v11 = vld [vmem:[%s5814_s1 + $0xa0] ss:$40 sps:$4 sm:$0xff]   ;;  %v3427_v13 = vld [vmem:[%s5814_s1 + $0xf4] ss:$40 sps:$4 sm:$0xff]   ;;  %v3431_v15 = vld [vmem:[%s5814_s1 + $0xf0] ss:$40 sps:$4 sm:$0xff]  }
  0x1b   : > { %v3429_v14 = vld [vmem:[%s5814_s1 + $0xfc] ss:$40 sps:$4 sm:$0xff]   ;;  %v3432_v16 = vld [vmem:[%s5814_s1 + $0xf8] ss:$40 sps:$4 sm:$0xff]   ;;  %v3435_v18 = vld [vmem:[%s5814_s1 + $0x14c] ss:$40 sps:$4 sm:$0xff]  }
  0x1c   : > { %v3433_v17 = vld [vmem:[%s5814_s1 + $0x144] ss:$40 sps:$4 sm:$0xff]   ;;  %s296_s8 = scalar_select %p295_p11, %s3923_s27, 1  ;;  %v3437_v19 = vld [vmem:[%s5814_s1 + $0x140] ss:$40 sps:$4 sm:$0xff]   ;;  %vm3937_vm1 = vmmov 0  }
  0x1d   : > { %884 = vmatpush1.bf16.msra.mxu0 %v3419_v7  ;;  %957 = vmatpush1.bf16.msra.mxu1 %v3420_v8  ;;  %v3438_v20 = vld [vmem:[%s5814_s1 + $0x148] ss:$40 sps:$4 sm:$0xff]   ;;  %v3439_v21 = vld [vmem:[%s5814_s1 + $0x194] ss:$40 sps:$4 sm:$0xff]   ;;  %v3444_v24 = vld [vmem:[%s5814_s1 + $0x198] ss:$40 sps:$4 sm:$0xff]  }
  0x1e   : > { %885 = vmatprep.subr.bf16.mxu0 %v3421_v9  ;;  %958 = vmatprep.subr.bf16.mxu1 %v3423_v10  ;;  %v3441_v22 = vld [vmem:[%s5814_s1 + $0x19c] ss:$40 sps:$4 sm:$0xff]   ;;  %s2937_s21 = sshll.u32 %s296_s8, 5  ;;  %v3443_v23 = vld [vmem:[%s5814_s1 + $0x190] ss:$40 sps:$4 sm:$0xff]   ;;  %s292_s30 = sand.u32 1, %s3915_s25  }
  0x1f   : > { %v3445_v25 = vld [vmem:[%s5814_s1 + $0x1e4] ss:$40 sps:$4 sm:$0xff]   ;;  %s4116_s18 = scalar_lea.vmem %s5813_s0, %s2937_s21  ;;  %v3449_v27 = vld [vmem:[%s5814_s1 + $0x1e0] ss:$40 sps:$4 sm:$0xff]   ;;  %v3451_v29 = vld [vmem:[%s5814_s1 + $0x234] ss:$40 sps:$4 sm:$0xff]  }
  0x20   : > { %v3447_v26 = vld [vmem:[%s5814_s1 + $0x1ec] ss:$40 sps:$4 sm:$0xff]   ;;  %v3450_v28 = vld [vmem:[%s5814_s1 + $0x1e8] ss:$40 sps:$4 sm:$0xff]   ;;  %v3453_v30 = vld [vmem:[%s5814_s1 + $0x23c] ss:$40 sps:$4 sm:$0xff]  }
  0x21   : > { %886 = vmatpush1.bf16.msra.mxu0 %v3425_v11  ;;  %959 = vmatpush1.bf16.msra.mxu1 %v3426_v12  ;;  %v3455_v31 = vld [vmem:[%s5814_s1 + $0x230] ss:$40 sps:$4 sm:$0xff]   ;;  %v3460_v33 = vld [vmem:[%s5814_s1 + $0x14] ss:$40 sps:$4 sm:$0xff]   ;;  %v4146_v35 = vld [vmem:[%s4116_s18] sm:$0xff]   ;;  %s2934_s12 = sshll.u32 %s3923_s27, 4 }
  0x22   : > { %887 = vmatprep.subr.bf16.mxu0 %v3427_v13  ;;  %960 = vmatprep.subr.bf16.mxu1 %v3429_v14  ;;  %v3456_v32 = vld [vmem:[%s5814_s1 + $0x238] ss:$40 sps:$4 sm:$0xff]   ;;  %v3463_v34 = vld [vmem:[%s5814_s1 + $0x1c] ss:$40 sps:$4 sm:$0xff]   ;;  %v3469_v39 = vld [vmem:[%s5814_s1 + $0x6c] ss:$40 sps:$4 sm:$0xff]   ;;  %s5766_s19 = scalar_lea.hbm %s5820_s7, %s2934_s12 }
  0x23   : > { %v3458_v36 = vld [vmem:[%s5814_s1 + $0x10] ss:$40 sps:$4 sm:$0xff]   ;;  %v3466_v38 = vld [vmem:[%s5814_s1 + $0x64] ss:$40 sps:$4 sm:$0xff]   ;;  %v3464_v40 = vld [vmem:[%s5814_s1 + $0x60] ss:$40 sps:$4 sm:$0xff]  }
  0x24   : > { %v3461_v37 = vld [vmem:[%s5814_s1 + $0x18] ss:$40 sps:$4 sm:$0xff]   ;;  %v3467_v41 = vld [vmem:[%s5814_s1 + $0x68] ss:$40 sps:$4 sm:$0xff]   ;;  %v3473_v42 = vld [vmem:[%s5814_s1 + $0xb4] ss:$40 sps:$4 sm:$0xff]  }
  0x25   : > { %888 = vmatpush1.bf16.msra.mxu0 %v3431_v15  ;;  %961 = vmatpush1.bf16.msra.mxu1 %v3432_v16  ;;  %v3476_v43 = vld [vmem:[%s5814_s1 + $0xbc] ss:$40 sps:$4 sm:$0xff]   ;;  %v4177_v44 = vld [vmem:[%s4116_s18 + $0x8] sm:$0xff]   ;;  %v3471_v45 = vld [vmem:[%s5814_s1 + $0xb0] ss:$40 sps:$4 sm:$0xff]   ;;  %s293_s15 = scalar_lea.vmem [#allocation3], %s292_s30 }
  0x26   : > { %889 = vmatprep.subr.bf16.mxu0 %v3433_v17  ;;  %962 = vmatprep.subr.bf16.mxu1 %v3435_v18  ;;  %v3474_v46 = vld [vmem:[%s5814_s1 + $0xb8] ss:$40 sps:$4 sm:$0xff]   ;;  %v3479_v47 = vld [vmem:[%s5814_s1 + $0x104] ss:$40 sps:$4 sm:$0xff]   ;;  %v3480_v50 = vld [vmem:[%s5814_s1 + $0x108] ss:$40 sps:$4 sm:$0xff]  }
  0x27   : > { %v3482_v48 = vld [vmem:[%s5814_s1 + $0x10c] ss:$40 sps:$4 sm:$0xff]   ;;  %v3477_v49 = vld [vmem:[%s5814_s1 + $0x100] ss:$40 sps:$4 sm:$0xff]   ;;  %v3489_v52 = vld [vmem:[%s5814_s1 + $0x15c] ss:$40 sps:$4 sm:$0xff]  }
  0x28   : > { %v3486_v51 = vld [vmem:[%s5814_s1 + $0x154] ss:$40 sps:$4 sm:$0xff]   ;;  %v3484_v54 = vld [vmem:[%s5814_s1 + $0x150] ss:$40 sps:$4 sm:$0xff]   ;;  %v3492_v56 = vld [vmem:[%s5814_s1 + $0x1a4] ss:$40 sps:$4 sm:$0xff]  }
  0x29   : > { %890 = vmatpush1.bf16.msra.mxu0 %v3437_v19  ;;  %963 = vmatpush1.bf16.msra.mxu1 %v3438_v20  ;;  %v4208_v53 = vld [vmem:[%s4116_s18 + $0x10] sm:$0xff]   ;;  %v3487_v55 = vld [vmem:[%s5814_s1 + $0x158] ss:$40 sps:$4 sm:$0xff]   ;;  %v3502_v61 = vld [vmem:[%s5814_s1 + $0x1fc] ss:$40 sps:$4 sm:$0xff]   ;;  %s2694_s16 = sshll.u32 %s293_s15, 4  ;;  %s5768_s16 = int_to_ptr.vmem [resolvable:$true] %s2694_s16 }
  0x2a   : > { %891 = vmatprep.subr.bf16.mxu0 %v3439_v21  ;;  %964 = vmatprep.subr.bf16.mxu1 %v3441_v22  ;;  %v3495_v57 = vld [vmem:[%s5814_s1 + $0x1ac] ss:$40 sps:$4 sm:$0xff]   ;;  %v3490_v58 = vld [vmem:[%s5814_s1 + $0x1a0] ss:$40 sps:$4 sm:$0xff]   ;;  %v4239_v62 = vld [vmem:[%s4116_s18 + $0x18] sm:$0xff]   ;;  %v5827_v22 = vlaneseq  ;;  %vm2679_vm2 = vcmask 73728  }
  0x2b   : > { %v3493_v59 = vld [vmem:[%s5814_s1 + $0x1a8] ss:$40 sps:$4 sm:$0xff]   ;;  %v3499_v60 = vld [vmem:[%s5814_s1 + $0x1f4] ss:$40 sps:$4 sm:$0xff]   ;;  %v3500_v0 = vld [vmem:[%s5814_s1 + $0x1f8] ss:$40 sps:$4 sm:$0xff]  }
  0x2c   : > { %v3497_v63 = vld [vmem:[%s5814_s1 + $0x1f0] ss:$40 sps:$4 sm:$0xff]   ;;  %v3505_v1 = vld [vmem:[%s5814_s1 + $0x244] ss:$40 sps:$4 sm:$0xff]   ;;  %v3503_v4 = vld [vmem:[%s5814_s1 + $0x240] ss:$40 sps:$4 sm:$0xff]  }
  0x2d   : > { %892 = vmatpush1.bf16.msra.mxu0 %v3443_v23  ;;  %965 = vmatpush1.bf16.msra.mxu1 %v3444_v24  ;;  %v3508_v3 = vld [vmem:[%s5814_s1 + $0x24c] ss:$40 sps:$4 sm:$0xff]   ;;  %v3506_v5 = vld [vmem:[%s5814_s1 + $0x248] ss:$40 sps:$4 sm:$0xff]   ;;  %v4334_v23 = vshrl.u32 %v5827_v22, 7  ;;  %s2682_s18 = scalar_lea.sflag [#allocation4], %s292_s30 }
  0x2e   : > { %893 = vmatprep.subr.bf16.mxu0 %v3445_v25  ;;  %966 = vmatprep.subr.bf16.mxu1 %v3447_v26  ;;  %v3511_v6 = vld [vmem:[%s5814_s1 + $0x24] ss:$40 sps:$4 sm:$0xff]   ;;  %v3509_v7 = vld [vmem:[%s5814_s1 + $0x20] ss:$40 sps:$4 sm:$0xff]   ;;  %v3514_v8 = vld [vmem:[%s5814_s1 + $0x74] ss:$40 sps:$4 sm:$0xff]  }
  0x2f   : > { %v3512_v9 = vld [vmem:[%s5814_s1 + $0x70] ss:$40 sps:$4 sm:$0xff]   ;;  %v3517_v10 = vld [vmem:[%s5814_s1 + $0xc4] ss:$40 sps:$4 sm:$0xff]   ;;  %v3515_v11 = vld [vmem:[%s5814_s1 + $0xc0] ss:$40 sps:$4 sm:$0xff]  }
  0x30   : > { %v3520_v12 = vld [vmem:[%s5814_s1 + $0x114] ss:$40 sps:$4 sm:$0xff]   ;;  %v3518_v13 = vld [vmem:[%s5814_s1 + $0x110] ss:$40 sps:$4 sm:$0xff]   ;;  %v3523_v14 = vld [vmem:[%s5814_s1 + $0x164] ss:$40 sps:$4 sm:$0xff]  }
  0x31   : > { %894 = vmatpush1.bf16.msra.mxu0 %v3449_v27  ;;  %967 = vmatpush1.bf16.msra.mxu1 %v3450_v28  ;;  %v3521_v15 = vld [vmem:[%s5814_s1 + $0x160] ss:$40 sps:$4 sm:$0xff]   ;;  %v3526_v16 = vld [vmem:[%s5814_s1 + $0x1b4] ss:$40 sps:$4 sm:$0xff]   ;;  %v3524_v17 = vld [vmem:[%s5814_s1 + $0x1b0] ss:$40 sps:$4 sm:$0xff]  }
  0x32   : > { %895 = vmatprep.subr.bf16.mxu0 %v3451_v29  ;;  %968 = vmatprep.subr.bf16.mxu1 %v3453_v30  ;;  %v3529_v18 = vld [vmem:[%s5814_s1 + $0x204] ss:$40 sps:$4 sm:$0xff]   ;;  %v3527_v19 = vld [vmem:[%s5814_s1 + $0x200] ss:$40 sps:$4 sm:$0xff]   ;;  %v3532_v20 = vld [vmem:[%s5814_s1 + $0x254] ss:$40 sps:$4 sm:$0xff]  }
  0x33   : > { %v3530_v21 = vld [vmem:[%s5814_s1 + $0x250] ss:$40 sps:$4 sm:$0xff]   ;;  %5868 = vst [vmem:[#allocation6_spill] sm:$0xff] %v4334_v23  ;;  %v4337_v24 = vsub.s32 0, %v4334_v23  ;;  %v5825_v25 = vsub.s32 2, %v4334_v23  ;;  %v4343_v26 = vld [vmem:[%s5815_s2] sm:$0xff] }
  0x34   : > { %v4346_v27 = vsub.s32 1, %v4334_v23  ;;  %s3853_s20 = scalar_lea.vmem %s5768_s16, 16  ;;  %s3938_s27 = smov [#allocation3]  }
  0x35   : > { %896 = vmatpush1.bf16.msra.mxu0 %v3455_v31  ;;  %969 = vmatpush1.bf16.msra.mxu1 %v3456_v32  ;;  %5869 = vst [vmem:[#allocation7_spill] sm:$0xff] %v4337_v24  ;;  %v4351_v28 = vrot.slane %v4343_v26, %v4337_v24  ;;  %v4356_v29 = vrot.slane %v4343_v26, %v5825_v25  ;;  %p3854_p12 = scmp.ne.s32.totalorder %s5768_s16, %s3853_s20  ;;  %s3857_s22 = sshll.u32 %s3938_s27, 4  ;;  %s3858_s22 = int_to_ptr.vmem [resolvable:$false] %s3857_s22 }
  0x36   : > { %1027 = vmatprep.subr.bf16.mxu0 %v3460_v33  ;;  %1100 = vmatprep.subr.bf16.mxu1 %v3463_v34  ;;  %5870 = vst [vmem:[#allocation8_spill] sm:$0xff] %v4346_v27  ;;  %v4360_v30 = vrot.slane %v4343_v26, %v4346_v27  ;;  %s3859_s23 = scalar_lea.vmem %s3858_s22, 32  ;;  %p3860_p1 = scmp.lt.s32.totalorder %s5768_s16, %s3858_s22 }
  0x37   : > { %p3855_p13 = pnand %p3854_p12, %p4019_p4  ;;  %p3861_p2 = scmp.lt.s32.totalorder %s3859_s23, %s3853_s20 }
  0x38   : > { %914 = vmatmul.mubr.bf16.vlgmr.msra.gmra.mrb[0].mxu0 %v4146_v35  ;;  %987 = vmatmul.mubr.bf16.vlgmr.msra.gmra.mrb[0].mxu1 %v4146_v35 }
  0x39   : > { %1028 = vmatpush1.bf16.msra.mxu0 %v3458_v36  ;;  %1101 = vmatpush1.bf16.msra.mxu1 %v3461_v37  ;;  %p3856_p0 = pneg %p3855_p13  ;;  %p3862_p3 = por %p3861_p2, %p3860_p1 }
  0x3a   : > { %1029 = vmatprep.subr.bf16.mxu0 %v3466_v38  ;;  %1102 = vmatprep.subr.bf16.mxu1 %v3469_v39 }
  0x3b   : > { %923 = vmatprep.mubr.bf16.mxu0 %v3933_v2  ;;  %996 = vmatprep.mubr.bf16.mxu1 %v3933_v2  ;;  %p3863_p5 = pnand %p3862_p3, %p3856_p0 }
  0x3d   : > { %1030 = vmatpush1.bf16.msra.mxu0 %v3464_v40  ;;  %1103 = vmatpush1.bf16.msra.mxu1 %v3467_v41 }
  0x3e   : > { %1031 = vmatprep.subr.bf16.mxu0 %v3473_v42  ;;  %1104 = vmatprep.subr.bf16.mxu1 %v3476_v43 }
  0x40   : > { %924 = vmatmul.mubr.bf16.gmra.mrb[4].mxu0 %v4177_v44  ;;  %997 = vmatmul.mubr.bf16.gmra.mrb[4].mxu1 %v4177_v44 }
  0x41   : > { %1032 = vmatpush1.bf16.msra.mxu0 %v3471_v45  ;;  %1105 = vmatpush1.bf16.msra.mxu1 %v3474_v46 }
  0x42   : > { %1033 = vmatprep.subr.bf16.mxu0 %v3479_v47  ;;  %1106 = vmatprep.subr.bf16.mxu1 %v3482_v48 }
  0x43   : > { %933 = vmatprep.mubr.bf16.mxu0 %v3933_v2  ;;  %1006 = vmatprep.mubr.bf16.mxu1 %v3933_v2 }
  0x45   : > { %1034 = vmatpush1.bf16.msra.mxu0 %v3477_v49  ;;  %1107 = vmatpush1.bf16.msra.mxu1 %v3480_v50 }
  0x46   : > { %1035 = vmatprep.subr.bf16.mxu0 %v3486_v51  ;;  %1108 = vmatprep.subr.bf16.mxu1 %v3489_v52 }
  0x48   : > { %934 = vmatmul.mubr.bf16.gmra.mrb[8].mxu0 %v4208_v53  ;;  %1007 = vmatmul.mubr.bf16.gmra.mrb[8].mxu1 %v4208_v53 }
  0x49   : > { %1036 = vmatpush1.bf16.msra.mxu0 %v3484_v54  ;;  %1109 = vmatpush1.bf16.msra.mxu1 %v3487_v55 }
  0x4a   : > { %1037 = vmatprep.subr.bf16.mxu0 %v3492_v56  ;;  %1110 = vmatprep.subr.bf16.mxu1 %v3495_v57 }
  0x4b   : > { %943 = vmatprep.mubr.bf16.mxu0 %v3933_v2  ;;  %1016 = vmatprep.mubr.bf16.mxu1 %v3933_v2 }
  0x4d   : > { %1038 = vmatpush1.bf16.msra.mxu0 %v3490_v58  ;;  %1111 = vmatpush1.bf16.msra.mxu1 %v3493_v59 }
  0x4e   : > { %1039 = vmatprep.subr.bf16.mxu0 %v3499_v60  ;;  %1112 = vmatprep.subr.bf16.mxu1 %v3502_v61 }
  0x50   : > { %944 = vmatmul.mubr.bf16.gmra.mrb[12].mxu0 %v4239_v62  ;;  %1017 = vmatmul.mubr.bf16.gmra.mrb[12].mxu1 %v4239_v62 }
  0x51   : > { %1040 = vmatpush1.bf16.msra.mxu0 %v3497_v63  ;;  %1113 = vmatpush1.bf16.msra.mxu1 %v3500_v0 }
  0x52   : > { %1041 = vmatprep.subr.bf16.mxu0 %v3505_v1  ;;  %1114 = vmatprep.subr.bf16.mxu1 %v3508_v3 }
  0x53   : > { %1059 = vmatprep.mubr.bf16.mxu0 %v3933_v2  ;;  %1132 = vmatprep.mubr.bf16.mxu1 %v3933_v2 }
  0x55   : > { %1042 = vmatpush1.bf16.msra.mxu0 %v3503_v4  ;;  %1115 = vmatpush1.bf16.msra.mxu1 %v3506_v5 }
  0x56   : > { %1173 = vmatprep.subr.bf16.mxu0 %v3511_v6 }
  0x58   : > { %1060 = vmatmul.mubr.bf16.vlgmr.msra.gmra.mrb[16].mxu0 %v4146_v35  ;;  %1133 = vmatmul.mubr.bf16.vlgmr.msra.gmra.mrb[16].mxu1 %v4146_v35 }
  0x59   : > { %1174 = vmatpush1.bf16.msra.mxu0 %v3509_v7  ;;  %1069 = vmatprep.mubr.bf16.mxu0 %v3933_v2 }
  0x5a   : > { %1175 = vmatprep.subr.bf16.mxu0 %v3514_v8  ;;  %1142 = vmatprep.mubr.bf16.mxu1 %v3933_v2 }
  0x5d   : > { %1176 = vmatpush1.bf16.msra.mxu0 %v3512_v9 }
  0x5e   : > { %1177 = vmatprep.subr.bf16.mxu0 %v3517_v10 }
  0x60   : > { %1070 = vmatmul.mubr.bf16.gmra.mrb[20].mxu0 %v4177_v44  ;;  %1143 = vmatmul.mubr.bf16.gmra.mrb[20].mxu1 %v4177_v44 }
  0x61   : > { %1178 = vmatpush1.bf16.msra.mxu0 %v3515_v11  ;;  %1079 = vmatprep.mubr.bf16.mxu0 %v3933_v2 }
  0x62   : > { %1179 = vmatprep.subr.bf16.mxu0 %v3520_v12  ;;  %1152 = vmatprep.mubr.bf16.mxu1 %v3933_v2 }
  0x65   : > { %1180 = vmatpush1.bf16.msra.mxu0 %v3518_v13 }
  0x66   : > { %1181 = vmatprep.subr.bf16.mxu0 %v3523_v14 }
  0x68   : > { %1080 = vmatmul.mubr.bf16.gmra.mrb[24].mxu0 %v4208_v53  ;;  %1153 = vmatmul.mubr.bf16.gmra.mrb[24].mxu1 %v4208_v53 }
  0x69   : > { %1182 = vmatpush1.bf16.msra.mxu0 %v3521_v15  ;;  %1089 = vmatprep.mubr.bf16.mxu0 %v3933_v2 }
  0x6a   : > { %1183 = vmatprep.subr.bf16.mxu0 %v3526_v16  ;;  %1162 = vmatprep.mubr.bf16.mxu1 %v3933_v2 }
  0x6d   : > { %1184 = vmatpush1.bf16.msra.mxu0 %v3524_v17 }
  0x6e   : > { %1185 = vmatprep.subr.bf16.mxu0 %v3529_v18 }
  0x70   : > { %1090 = vmatmul.mubr.bf16.gmra.mrb[28].mxu0 %v4239_v62  ;;  %1163 = vmatmul.mubr.bf16.gmra.mrb[28].mxu1 %v4239_v62 }
  0x71   : > { %1186 = vmatpush1.bf16.msra.mxu0 %v3527_v19  ;;  %1205 = vmatprep.mubr.bf16.mxu0 %v3933_v2 }
  0x72   : > { %1187 = vmatprep.subr.bf16.mxu0 %v3532_v20 }
  0x75   : > { %1188 = vmatpush1.bf16.msra.mxu0 %v3530_v21 }
  0x78   : > { %1206 = vmatmul.mubr.bf16.vlgmr.msra.gmra.mrb[32].mxu0 %v4146_v35 }
  0x79   : > { %1215 = vmatprep.mubr.bf16.mxu0 %v3933_v2 }
  0x80   : > { %1216 = vmatmul.mubr.bf16.gmra.mrb[36].mxu0 %v4177_v44 }
  0x81   : > { %1225 = vmatprep.mubr.bf16.mxu0 %v3933_v2 }
  0x88   : > { %1226 = vmatmul.mubr.bf16.gmra.mrb[40].mxu0 %v4208_v53 }
  0x89   : > { %1235 = vmatprep.mubr.bf16.mxu0 %v3933_v2  ;;  %v5826_v2 = vsub.s32 3, %v4334_v23 }
  0x8b   : > { %v4365_v31 = vrot.slane %v4343_v26, %v5826_v2 }
  0x90   : > { %1236 = vmatmul.mubr.bf16.gmra.mrb[44].mxu0 %v4239_v62 }
 0x10b   : > { %v915_v32 = vpop.f32.mrb[0].mxu0  ;;  %v988_v33 = vpop.f32.mrb[0].mxu1 }
 0x10c   : > { %v4368_v34 = vadd.f32 %v915_v32, %v4351_v28  ;;  %v4371_v35 = vadd.f32 %v988_v33, %v4356_v29  ;;  %v917_v36 = vpop.f32.mrb[1].mxu0  ;;  %v990_v37 = vpop.f32.mrb[1].mxu1 }
 0x10d   : > { %v4374_v38 = vadd.f32 %v917_v36, %v4360_v30  ;;  %v4377_v39 = vadd.f32 %v990_v37, %v4365_v31  ;;  %v919_v40 = vpop.f32.mrb[2].mxu0  ;;  %v992_v41 = vpop.f32.mrb[2].mxu1  ;;  %v5822_v36 = vsub.s32 4, %v4334_v23  ;;  %v5821_v37 = vsub.s32 6, %v4334_v23 }
 0x10e   : > { %v2854_v42 = vmul.f32 -1.442695, %v4368_v34  ;;  %v2856_v43 = vmul.f32 -1.442695, %v4371_v35  ;;  %v4382_v44 = vadd.f32 %v919_v40, %v4351_v28  ;;  %v4385_v45 = vadd.f32 %v992_v41, %v4356_v29  ;;  %v921_v46 = vpop.f32.mrb[3].mxu0  ;;  %v994_v47 = vpop.f32.mrb[3].mxu1 }
 0x10f   : > { %v2855_v48 = vmul.f32 -1.442695, %v4374_v38  ;;  %v2857_v49 = vmul.f32 -1.442695, %v4377_v39  ;;  %v4390_v50 = vadd.f32 %v921_v46, %v4360_v30  ;;  %v4393_v51 = vadd.f32 %v994_v47, %v4365_v31 }
 0x110   : > { %3533 = vpow2.f32 %v2854_v42  ;;  %v2864_v52 = vmul.f32 -1.442695, %v4382_v44  ;;  %v2866_v53 = vmul.f32 -1.442695, %v4385_v45 }
 0x111   : > { %3535 = vpow2.f32 %v2856_v43  ;;  %v2865_v54 = vmul.f32 -1.442695, %v4390_v50  ;;  %v2867_v55 = vmul.f32 -1.442695, %v4393_v51  ;;  %v3934_v43 = vmov 1966171168  }
 0x112   : > { %3537 = vpow2.f32 %v2855_v48  ;;  %v4421_v46 = vunpack.c.l.s4 %v3934_v43 }
 0x113   : > { %3539 = vpow2.f32 %v2857_v49  ;;  %v925_v56 = vpop.f32.mrb[4].mxu0  ;;  %v998_v57 = vpop.f32.mrb[4].mxu1 }
 0x114   : > { %3541 = vpow2.f32 %v2864_v52  ;;  %v4400_v58 = vadd.f32 %v925_v56, %v4351_v28  ;;  %v4403_v59 = vadd.f32 %v998_v57, %v4356_v29  ;;  %v927_v60 = vpop.f32.mrb[5].mxu0  ;;  %v1000_v61 = vpop.f32.mrb[5].mxu1  ;;  %v5823_v56 = vsub.s32 5, %v4334_v23 }
 0x115   : > { %3543 = vpow2.f32 %v2866_v53  ;;  %v4406_v62 = vadd.f32 %v927_v60, %v4360_v30  ;;  %v4409_v63 = vadd.f32 %v1000_v61, %v4365_v31  ;;  %v929_v0 = vpop.f32.mrb[6].mxu0  ;;  %v1002_v1 = vpop.f32.mrb[6].mxu1  ;;  %v5824_v57 = vsub.s32 7, %v4334_v23 }
 0x116   : > { %3545 = vpow2.f32 %v2865_v54  ;;  %v2874_v3 = vmul.f32 -1.442695, %v4400_v58  ;;  %v2876_v4 = vmul.f32 -1.442695, %v4403_v59  ;;  %v4414_v5 = vadd.f32 %v929_v0, %v4351_v28  ;;  %v931_v6 = vpop.f32.mrb[7].mxu0  ;;  %v1004_v7 = vpop.f32.mrb[7].mxu1 }
 0x117   : > { %3547 = vpow2.f32 %v2867_v55  ;;  %v2875_v8 = vmul.f32 -1.442695, %v4406_v62  ;;  %v2877_v9 = vmul.f32 -1.442695, %v4409_v63  ;;  %v4424_v49 = vadd.f32 %v1002_v1, %v4356_v29 }
 0x118   : > { %3549 = vpow2.f32 %v2874_v3  ;;  %v2884_v10 = vmul.f32 -1.442695, %v4414_v5  ;;  %v4427_v52 = vadd.f32 %v931_v6, %v4360_v30  ;;  %v4434_v0 = vrot.slane %v4343_v26, %v5822_v36 }
 0x119   : > { %3551 = vpow2.f32 %v2876_v4  ;;  %v4439_v1 = vrot.slane %v4343_v26, %v5821_v37  ;;  %v4442_v6 = vadd.f32 %v1004_v7, %v4365_v31 }
 0x11a   : > { %v3534_v11 = vpop.eup %3533  ;;  %3553 = vpow2.f32 %v2875_v8  ;;  %v1954_v8 = vunpack.c.0.s8 %v4421_v46 }
 0x11b   : > { %v3536_v12 = vpop.eup %3535  ;;  %v1486_v13 = vadd.f32 1.0, %v3534_v11  ;;  %3555 = vpow2.f32 %v2877_v9  ;;  %v935_v14 = vpop.f32.mrb[8].mxu0  ;;  %v2886_v11 = vmul.f32 -1.442695, %v4424_v49 }
 0x11c   : > { %v1008_v15 = vpop.f32.mrb[8].mxu1  ;;  %v3538_v16 = vpop.eup %3537  ;;  %v1488_v17 = vadd.f32 1.0, %v3536_v12  ;;  %3557 = vpow2.f32 %v2884_v10  ;;  %v2885_v12 = vmul.f32 -1.442695, %v4427_v52 }
 0x11d   : > { %v937_v18 = vpop.f32.mrb[9].mxu0  ;;  %v1010_v19 = vpop.f32.mrb[9].mxu1  ;;  %3559 = vrcp.f32 %v1486_v13  ;;  %v1487_v21 = vadd.f32 1.0, %v3538_v16 }
 0x11e   : > { %v3540_v20 = vpop.eup %3539  ;;  %v939_v32 = vpop.f32.mrb[10].mxu0  ;;  %3561 = vrcp.f32 %v1488_v17  ;;  %v4456_v46 = vadd.f32 %v937_v18, %v4360_v30 }
 0x11f   : > { %v1012_v33 = vpop.f32.mrb[10].mxu1  ;;  %v3542_v40 = vpop.eup %3541  ;;  %v1489_v41 = vadd.f32 1.0, %v3540_v20  ;;  %3563 = vrcp.f32 %v1487_v21  ;;  %v4448_v20 = vadd.f32 %v935_v14, %v4351_v28  ;;  %v4451_v21 = vadd.f32 %v1008_v15, %v4356_v29 }
 0x120   : > { %v941_v42 = vpop.f32.mrb[11].mxu0  ;;  %v3544_v47 = vpop.eup %3543  ;;  %v1496_v48 = vadd.f32 1.0, %v3542_v40  ;;  %5872 = vst [vmem:[#allocation10_spill] sm:$0xff] %v4456_v46 }
 0x121   : > { %v1014_v53 = vpop.f32.mrb[11].mxu1  ;;  %v3546_v54 = vpop.eup %3545  ;;  %3565 = vrcp.f32 %v1489_v41  ;;  %v1498_v55 = vadd.f32 1.0, %v3544_v47  ;;  %5871 = vst [vmem:[#allocation9_spill] sm:$0xff] %v4451_v21  ;;  %v4459_v47 = vadd.f32 %v1010_v19, %v4365_v31 }
 0x122   : > { %v3548_v60 = vpop.eup %3547  ;;  %3567 = vrcp.f32 %v1496_v48  ;;  %v1497_v61 = vadd.f32 1.0, %v3546_v54 }
 0x123   : > { %v3550_v3 = vpop.eup %3549  ;;  %3569 = vrcp.f32 %v1498_v55  ;;  %v1499_v4 = vadd.f32 1.0, %v3548_v60  ;;  %v945_v13 = vpop.f32.mrb[12].mxu0  ;;  %5873 = vst [vmem:[#allocation11_spill] sm:$0xff] %v4459_v47  ;;  %v4466_v55 = vadd.f32 %v939_v32, %v4351_v28  ;;  %v4469_v60 = vadd.f32 %v1012_v33, %v4356_v29 }
 0x124   : > { %v3552_v9 = vpop.eup %3551  ;;  %3571 = vrcp.f32 %v1497_v61  ;;  %v1506_v10 = vadd.f32 1.0, %v3550_v3  ;;  %v1018_v7 = vpop.f32.mrb[12].mxu1  ;;  %v2887_v33 = vmul.f32 -1.442695, %v4442_v6 }
 0x125   : > { %v3554_v16 = vpop.eup %3553  ;;  %3573 = vrcp.f32 %v1499_v4  ;;  %v1508_v17 = vadd.f32 1.0, %v3552_v9  ;;  %v4453_v40 = vpop.f32.mrb[13].mxu0  ;;  %5874 = vst [vmem:[#allocation12_spill] sm:$0xff] %v4466_v55  ;;  %5875 = vst [vmem:[#allocation13_spill] sm:$0xff] %v4469_v60  ;;  %v4476_v4 = vadd.f32 %v941_v42, %v4360_v30  ;;  %v4479_v9 = vadd.f32 %v1014_v53, %v4365_v31 }
 0x126   : > { %v3556_v41 = vpop.eup %3555  ;;  %3575 = vrcp.f32 %v1506_v10  ;;  %v1507_v43 = vadd.f32 1.0, %v3554_v16  ;;  %v4461_v48 = vpop.f32.mrb[13].mxu1  ;;  %v4487_v16 = vrot.slane %v4343_v26, %v5823_v56  ;;  %v2894_v53 = vmul.f32 -1.442695, %v4448_v20 }
 0x127   : > { %v4463_v54 = vpop.f32.mrb[14].mxu0  ;;  %v3558_v14 = vpop.eup %3557  ;;  %3577 = vrcp.f32 %v1508_v17  ;;  %v1509_v15 = vadd.f32 1.0, %v3556_v41  ;;  %5876 = vst [vmem:[#allocation14_spill] sm:$0xff] %v4476_v4  ;;  %5877 = vst [vmem:[#allocation15_spill] sm:$0xff] %v4479_v9  ;;  %v4492_v17 = vrot.slane %v4343_v26, %v5824_v57  ;;  %v2896_v41 = vmul.f32 -1.442695, %v4451_v21 }
 0x128   : > { %v4471_v61 = vpop.f32.mrb[14].mxu1  ;;  %v4473_v18 = vpop.f32.mrb[15].mxu0  ;;  %3579 = vrcp.f32 %v1507_v43  ;;  %v1516_v19 = vadd.f32 1.0, %v3558_v14  ;;  %v2895_v43 = vmul.f32 -1.442695, %v4456_v46  ;;  %v4503_v57 = vsub.s32 %v1954_v8, %v4334_v23 }
 0x129   : > { %v3560_v3 = vpop.eup %3559  ;;  %v4481_v10 = vpop.f32.mrb[15].mxu1  ;;  %3581 = vrcp.f32 %v1509_v15  ;;  %v2897_v15 = vmul.f32 -1.442695, %v4459_v47  ;;  %v2904_v37 = vmul.f32 -1.442695, %v4466_v55 }
 0x12a   : > { %v3562_v32 = vpop.eup %3561  ;;  %3583 = vrcp.f32 %v1516_v19  ;;  %v2906_v36 = vmul.f32 -1.442695, %v4469_v60  ;;  %v2905_v26 = vmul.f32 -1.442695, %v4476_v4  ;;  %v2907_v19 = vmul.f32 -1.442695, %v4479_v9 }
 0x12b   : > { %v3564_v42 = vpop.eup %3563  ;;  %3585 = vpow2.f32 %v2886_v11  ;;  %5878 = vst [vmem:[#allocation16_spill] sm:$0xff] %v4503_v57  ;;  %v4505_v25 = vpop.f32.mrb[16].mxu0  ;;  %v1726_v22 = vmul.f32 %v3560_v3, %v4368_v34  ;;  %v4512_v60 = vadd.f32 %v945_v13, %v4351_v28  ;;  %v1728_v8 = vmul.f32 %v3562_v32, %v4371_v35 }
 0x12c   : > { %v3566_v14 = vpop.eup %3565  ;;  %3587 = vpow2.f32 %v2885_v12  ;;  %v4507_v2 = vpop.f32.mrb[16].mxu1  ;;  %v4521_v57 = vadd.f32 %v1018_v7, %v4356_v29  ;;  %v1727_v13 = vmul.f32 %v3564_v42, %v4374_v38 }
 0x12d   : > { %v3568_v56 = vpop.eup %3567  ;;  %3589 = vpow2.f32 %v2887_v33  ;;  %v4514_v12 = vpop.f32.mrb[17].mxu0  ;;  %v1729_v32 = vmul.f32 %v3566_v14, %v4377_v39  ;;  %v2914_v39 = vmul.f32 -1.442695, %v4512_v60 }
 0x12e   : > { %v3570_v11 = vpop.eup %3569  ;;  %v1736_v55 = vmul.f32 %v3568_v56, %v4382_v44  ;;  %v4516_v4 = vpop.f32.mrb[17].mxu1  ;;  %3591 = vpow2.f32 %v2894_v53  ;;  %v2916_v42 = vmul.f32 -1.442695, %v4521_v57 }
 0x12f   : > { %v3572_v9 = vpop.eup %3571  ;;  %v1738_v23 = vmul.f32 %v3570_v11, %v4385_v45  ;;  %v4523_v34 = vpop.f32.mrb[18].mxu0  ;;  %3593 = vpow2.f32 %v2896_v41 }
 0x130   : > { %v4525_v44 = vpop.f32.mrb[18].mxu1  ;;  %v3574_v56 = vpop.eup %3573  ;;  %v1808_v3 = vadd.f32 %v1736_v55, %v1726_v22  ;;  %v1737_v33 = vmul.f32 %v3572_v9, %v4390_v50  ;;  %3595 = vpow2.f32 %v2895_v43  ;;  %v4538_v22 = vadd.f32 %v4453_v40, %v4360_v30 }
 0x131   : > { %v4529_v47 = vpop.f32.mrb[19].mxu0  ;;  %v4531_v35 = vpop.f32.mrb[19].mxu1  ;;  %v1834_v7 = vadd.f32 %v1738_v23, %v1728_v8  ;;  %v1739_v53 = vmul.f32 %v3574_v56, %v4393_v51  ;;  %3597 = vpow2.f32 %v2897_v15  ;;  %v4549_v43 = vadd.f32 %v4461_v48, %v4365_v31  ;;  %v404_v48 = vld [vmem:[%s5815_s2 + $0x8] sm:$0x3] }
 0x132   : > { %v3576_v45 = vpop.eup %3575  ;;  %v1821_v46 = vadd.f32 %v1737_v33, %v1727_v13  ;;  %3599 = vpow2.f32 %v2904_v37 }
 0x133   : > { %v3578_v11 = vpop.eup %3577  ;;  %v1746_v21 = vmul.f32 %v3576_v45, %v4400_v58  ;;  %v1847_v50 = vadd.f32 %v1739_v53, %v1729_v32  ;;  %3601 = vpow2.f32 %v2906_v36  ;;  %v4553_v37 = vpop.f32.mrb[20].mxu1  ;;  %v4560_v36 = vadd.f32 %v4463_v54, %v4351_v28 }
 0x134   : > { %v3580_v38 = vpop.eup %3579  ;;  %v1748_v55 = vmul.f32 %v3578_v11, %v4403_v59  ;;  %3603 = vpow2.f32 %v2905_v26  ;;  %v4551_v59 = vpop.f32.mrb[20].mxu0 }
 0x135   : > { %v3582_v23 = vpop.eup %3581  ;;  %v1809_v9 = vadd.f32 %v1808_v3, %v1746_v21  ;;  %v1747_v51 = vmul.f32 %v3580_v38, %v4406_v62  ;;  %3605 = vpow2.f32 %v2907_v19  ;;  %v4564_v15 = vpop.f32.mrb[21].mxu1  ;;  %v4583_v3 = vadd.f32 %v4473_v18, %v4360_v30 }
 0x136   : > { %v3584_v58 = vpop.eup %3583  ;;  %v4544_v41 = vadd.f32 %v1834_v7, %v1748_v55  ;;  %v1749_v40 = vmul.f32 %v3582_v23, %v4409_v63  ;;  %v4562_v63 = vpop.f32.mrb[21].mxu0  ;;  %3607 = vpow2.f32 %v2914_v39  ;;  %v4594_v7 = vrot.slane %v404_v48, %v4337_v24 }
 0x137   : > { %v3586_v21 = vpop.eup %3585  ;;  %v4555_v14 = vadd.f32 %v1821_v46, %v1747_v51  ;;  %v1756_v62 = vmul.f32 %v3584_v58, %v4414_v5  ;;  %v4573_v5 = vadd.f32 %v4471_v61, %v4356_v29  ;;  %v4575_v19 = vpop.f32.mrb[22].mxu0  ;;  %3609 = vpow2.f32 %v2916_v42 }
 0x138   : > { %v3588_v26 = vpop.eup %3587  ;;  %v4569_v8 = vadd.f32 %v1847_v50, %v1749_v40  ;;  %v1518_v46 = vadd.f32 1.0, %v3586_v21  ;;  %v4577_v28 = vpop.f32.mrb[22].mxu1  ;;  %v4591_v61 = vadd.f32 %v4481_v10, %v4365_v31  ;;  %5879 = vst [vmem:[#allocation17_spill] sm:$0xff] %v4594_v7  ;;  %v4597_v30 = vmul.f32 -1.442695, %v4538_v22 }
 0x139   : > { %v3590_v54 = vpop.eup %3589  ;;  %v4579_v56 = vadd.f32 %v1809_v9, %v1756_v62  ;;  %v1517_v13 = vadd.f32 1.0, %v3588_v26  ;;  %v4585_v33 = vpop.f32.mrb[23].mxu0  ;;  %v4600_v18 = vmul.f32 -1.442695, %v4549_v43  ;;  %v4603_v55 = vmul.f32 -1.442695, %v4560_v36 }
 0x13a   : > { %v4587_v45 = vpop.f32.mrb[23].mxu1  ;;  %v3592_v32 = vpop.eup %3591  ;;  %3611 = vrcp.f32 %v1518_v46  ;;  %v1519_v29 = vadd.f32 1.0, %v3590_v54  ;;  %v4607_v31 = vadd.f32 %v4505_v25, %v4434_v0  ;;  %v4610_v23 = vmul.f32 -1.442695, %v4573_v5 }
 0x13b   : > { %v3594_v53 = vpop.eup %3593  ;;  %3613 = vrcp.f32 %v1517_v13  ;;  %v1526_v11 = vadd.f32 1.0, %v3592_v32  ;;  %v4613_v9 = vmul.f32 -1.442695, %v4583_v3  ;;  %v4616_v58 = vmul.f32 -1.442695, %v4591_v61  ;;  %v4618_v40 = vpop.f32.mrb[24].mxu0 }
 0x13c   : > { %v3596_v38 = vpop.eup %3595  ;;  %3615 = vrcp.f32 %v1519_v29  ;;  %v1528_v50 = vadd.f32 1.0, %v3594_v53  ;;  %5880 = vst [vmem:[#allocation18_spill] sm:$0xff] %v4607_v31  ;;  %v4620_v21 = vpop.f32.mrb[24].mxu1  ;;  %v4623_v25 = vrot.slane %v404_v48, %v4346_v27  ;;  %v4627_v46 = vadd.f32 %v4507_v2, %v4439_v1 }
 0x13d   : > { %v3598_v10 = vpop.eup %3597  ;;  %3617 = vrcp.f32 %v1526_v11  ;;  %v1527_v39 = vadd.f32 1.0, %v3596_v38  ;;  %v4631_v54 = vadd.f32 %v4514_v12, %v4487_v16  ;;  %v4633_v13 = vpop.f32.mrb[25].mxu0  ;;  %v4638_v48 = vmul.f32 -1.442695, %v4607_v31 }
 0x13e   : > { %v3600_v51 = vpop.eup %3599  ;;  %3619 = vrcp.f32 %v1528_v50  ;;  %v1529_v42 = vadd.f32 1.0, %v3598_v10  ;;  %5881 = vst [vmem:[#allocation19_spill] sm:$0xff] %v4623_v25  ;;  %5882 = vst [vmem:[#allocation20_spill] sm:$0xff] %v4627_v46  ;;  %v4635_v32 = vpop.f32.mrb[25].mxu1  ;;  %v4642_v11 = vadd.f32 %v4516_v4, %v4492_v17  ;;  %v4650_v10 = vadd.f32 %v4523_v34, %v4434_v0 }
 0x13f   : > { %v3602_v62 = vpop.eup %3601  ;;  %3621 = vrcp.f32 %v1527_v39  ;;  %v1536_v26 = vadd.f32 1.0, %v3600_v51  ;;  %5883 = vst [vmem:[#allocation21_spill] sm:$0xff] %v4631_v54  ;;  %v4644_v2 = vpop.f32.mrb[26].mxu0  ;;  %v4654_v39 = vadd.f32 %v4525_v44, %v4439_v1  ;;  %v4662_v24 = vadd.f32 %v4529_v47, %v4487_v16 }
 0x140   : > { %v3604_v29 = vpop.eup %3603  ;;  %3623 = vrcp.f32 %v1529_v42  ;;  %v1538_v53 = vadd.f32 1.0, %v3602_v62  ;;  %5884 = vst [vmem:[#allocation22_spill] sm:$0xff] %v4642_v11  ;;  %v4646_v38 = vpop.f32.mrb[26].mxu1  ;;  %5885 = vst [vmem:[#allocation23_spill] sm:$0xff] %v4650_v10  ;;  %v4669_v44 = vmul.f32 -1.442695, %v4627_v46  ;;  %v4679_v47 = vadd.f32 %v4551_v59, %v4434_v0 }
 0x141   : > { %v3606_v12 = vpop.eup %3605  ;;  %3625 = vrcp.f32 %v1536_v26  ;;  %v1537_v50 = vadd.f32 1.0, %v3604_v29  ;;  %5886 = vst [vmem:[#allocation24_spill] sm:$0xff] %v4654_v39  ;;  %v4656_v51 = vpop.f32.mrb[27].mxu0  ;;  %5887 = vst [vmem:[#allocation25_spill] sm:$0xff] %v4662_v24  ;;  %v4666_v26 = vadd.f32 %v4531_v35, %v4492_v17  ;;  %v4672_v27 = vmul.f32 -1.442695, %v4631_v54 }
 0x142   : > { %v4658_v42 = vpop.f32.mrb[27].mxu1  ;;  %v3608_v4 = vpop.eup %3607  ;;  %3627 = vrcp.f32 %v1538_v53  ;;  %v1539_v62 = vadd.f32 1.0, %v3606_v12  ;;  %v4675_v12 = vmul.f32 -1.442695, %v4642_v11  ;;  %5889 = vst [vmem:[#allocation27_spill] sm:$0xff] %v4679_v47 }
 0x143   : > { %5888 = vst [vmem:[#allocation26_spill] sm:$0xff] %v4666_v26  ;;  %v3610_v34 = vpop.eup %3609  ;;  %3629 = vrcp.f32 %v1537_v50  ;;  %v1546_v29 = vadd.f32 1.0, %v3608_v4  ;;  %v4683_v4 = vmul.f32 -1.442695, %v4650_v10  ;;  %v4686_v7 = vmul.f32 -1.442695, %v4654_v39 }
 0x144   : > { %v3612_v25 = vpop.eup %3611  ;;  %3631 = vrcp.f32 %v1539_v62  ;;  %v1548_v53 = vadd.f32 1.0, %v3610_v34  ;;  %v4690_v34 = vmul.f32 -1.442695, %v4662_v24  ;;  %v4693_v59 = vmul.f32 -1.442695, %v4666_v26  ;;  %v4695_v11 = vpop.f32.mrb[28].mxu0 }
 0x145   : > { %v3614_v35 = vpop.eup %3613  ;;  %v1758_v50 = vmul.f32 %v3612_v25, %v4424_v49  ;;  %3633 = vrcp.f32 %v1546_v29  ;;  %v4697_v49 = vpop.f32.mrb[28].mxu1 }
 0x146   : > { %v3616_v54 = vpop.eup %3615  ;;  %v1757_v62 = vmul.f32 %v3614_v35, %v4427_v52  ;;  %3635 = vrcp.f32 %v1548_v53  ;;  %v4704_v52 = vadd.f32 %v4553_v37, %v4439_v1  ;;  %v4706_v53 = vpop.f32.mrb[29].mxu0 }
 0x147   : > { %v3618_v25 = vpop.eup %3617  ;;  %v1836_v29 = vadd.f32 %v4544_v41, %v1758_v50  ;;  %v1759_v39 = vmul.f32 %v3616_v54, %v4442_v6  ;;  %3637 = vpow2.f32 %v4597_v30  ;;  %v4708_v35 = vpop.f32.mrb[29].mxu1  ;;  %v4714_v41 = vmul.f32 -1.442695, %v4679_v47  ;;  %v5890_v50 = vld [vmem:[#allocation9_spill] sm:$0xff]  ;;  %v5893_v47 = vld [vmem:[#allocation10_spill] sm:$0xff] }
 0x148   : > { %v3620_v26 = vpop.eup %3619  ;;  %v1823_v24 = vadd.f32 %v4555_v14, %v1757_v62  ;;  %v1766_v10 = vmul.f32 %v3618_v25, %v4448_v20  ;;  %3639 = vpow2.f32 %v4600_v18  ;;  %v4716_v6 = vpop.f32.mrb[30].mxu0  ;;  %v4725_v14 = vadd.f32 %v4562_v63, %v4487_v16 }
 0x149   : > { %v4718_v30 = vpop.f32.mrb[30].mxu1  ;;  %v3622_v37 = vpop.eup %3621  ;;  %v1849_v54 = vadd.f32 %v4569_v8, %v1759_v39  ;;  %v1768_v46 = vmul.f32 %v3620_v26, %v5890_v50  ;;  %3641 = vpow2.f32 %v4603_v55  ;;  %v4736_v8 = vadd.f32 %v4564_v15, %v4492_v17  ;;  %v5894_v26 = vld [vmem:[#allocation11_spill] sm:$0xff] }
 0x14a   : > { %v4727_v20 = vpop.f32.mrb[31].mxu0  ;;  %v4729_v18 = vpop.f32.mrb[31].mxu1  ;;  %v1811_v25 = vadd.f32 %v4579_v56, %v1766_v10  ;;  %v1767_v31 = vmul.f32 %v3622_v37, %v5893_v47  ;;  %3643 = vpow2.f32 %v4610_v23  ;;  %v4741_v50 = vmul.f32 -1.442695, %v4704_v52  ;;  %v5895_v56 = vld [vmem:[#allocation12_spill] sm:$0xff] }
 0x14b   : > { %5891 = vst [vmem:[#allocation9_spill] sm:$0xff] %v4727_v20  ;;  %5892 = vst [vmem:[#allocation28_spill] sm:$0xff] %v4729_v18  ;;  %v3624_v62 = vpop.eup %3623  ;;  %v1837_v39 = vadd.f32 %v1836_v29, %v1768_v46  ;;  %3645 = vpow2.f32 %v4613_v9  ;;  %v4747_v23 = vadd.f32 %v4575_v19, %v4434_v0  ;;  %v5896_v46 = vld [vmem:[#allocation13_spill] sm:$0xff]  ;;  %v4752_v9 = vmul.f32 -1.442695, %v4725_v14  ;;  %v4759_v19 = vpop.f32.mrb[32].mxu0 }
 0x14c   : > { %v3626_v55 = vpop.eup %3625  ;;  %v1769_v63 = vmul.f32 %v3624_v62, %v5894_v26  ;;  %v1824_v20 = vadd.f32 %v1823_v24, %v1767_v31  ;;  %3647 = vpow2.f32 %v4616_v58  ;;  %v5897_v24 = vld [vmem:[#allocation14_spill] sm:$0xff]  ;;  %v4757_v58 = vmul.f32 -1.442695, %v4736_v8  ;;  %v5898_v26 = vld [vmem:[#allocation15_spill] sm:$0xff] }
 0x14d   : > { %v3628_v18 = vpop.eup %3627  ;;  %v1776_v10 = vmul.f32 %v3626_v55, %v5895_v56  ;;  %3649 = vpow2.f32 %v4638_v48  ;;  %v4765_v48 = vadd.f32 %v4577_v28, %v4439_v1 }
 0x14e   : > { %v3630_v15 = vpop.eup %3629  ;;  %v1850_v47 = vadd.f32 %v1849_v54, %v1769_v63  ;;  %v1778_v29 = vmul.f32 %v3628_v18, %v5896_v46  ;;  %3651 = vpow2.f32 %v4669_v44 }
 0x14f   : > { %v3632_v37 = vpop.eup %3631  ;;  %v1812_v62 = vadd.f32 %v1811_v25, %v1776_v10  ;;  %v1777_v31 = vmul.f32 %v3630_v15, %v5897_v24  ;;  %3653 = vpow2.f32 %v4672_v27  ;;  %v4767_v25 = vpop.f32.mrb[33].mxu0  ;;  %v4774_v10 = vmul.f32 -1.442695, %v4747_v23 }
 0x150   : > { %v3634_v55 = vpop.eup %3633  ;;  %v1838_v54 = vadd.f32 %v1837_v39, %v1778_v29  ;;  %v1779_v18 = vmul.f32 %v3632_v37, %v5898_v26  ;;  %3655 = vpow2.f32 %v4675_v12  ;;  %v4776_v39 = vpop.f32.mrb[34].mxu0 }
 0x151   : > { %v3636_v63 = vpop.eup %3635  ;;  %v4769_v56 = vadd.f32 %v1824_v20, %v1777_v31  ;;  %v1786_v44 = vmul.f32 %v3634_v55, %v4512_v60  ;;  %3657 = vpow2.f32 %v4683_v4  ;;  %v4784_v20 = vadd.f32 %v4585_v33, %v4487_v16  ;;  %v4786_v46 = vpop.f32.mrb[35].mxu0 }
 0x152   : > { %v3638_v15 = vpop.eup %3637  ;;  %v4778_v27 = vadd.f32 %v1850_v47, %v1779_v18  ;;  %v1788_v28 = vmul.f32 %v3636_v63, %v4521_v57  ;;  %3659 = vpow2.f32 %v4686_v7  ;;  %v4793_v47 = vadd.f32 %v4587_v45, %v4492_v17 }
 0x153   : > { %v3640_v60 = vpop.eup %3639  ;;  %v4788_v12 = vadd.f32 %v1812_v62, %v1786_v44  ;;  %v1547_v29 = vadd.f32 1.0, %v3638_v15  ;;  %3661 = vpow2.f32 %v4690_v34  ;;  %v4800_v33 = vadd.f32 %v4618_v40, %v4434_v0  ;;  %v4823_v63 = vpop.f32.mrb[36].mxu0 }
 0x154   : > { %v3642_v37 = vpop.eup %3641  ;;  %v4795_v57 = vadd.f32 %v1838_v54, %v1788_v28  ;;  %v1549_v4 = vadd.f32 1.0, %v3640_v60  ;;  %v4803_v31 = vmul.f32 -1.442695, %v4765_v48  ;;  %v4807_v45 = vadd.f32 %v4620_v21, %v4439_v1  ;;  %v4832_v60 = vpop.f32.mrb[37].mxu0 }
 0x155   : > { %v3644_v24 = vpop.eup %3643  ;;  %3663 = vrcp.f32 %v1547_v29  ;;  %v1556_v62 = vadd.f32 1.0, %v3642_v37  ;;  %v4810_v54 = vmul.f32 -1.442695, %v4784_v20  ;;  %v4814_v40 = vadd.f32 %v4633_v13, %v4487_v16 }
 0x156   : > { %5899 = vst [vmem:[#allocation10_spill] sm:$0xff] %v4807_v45  ;;  %v3646_v7 = vpop.eup %3645  ;;  %3665 = vrcp.f32 %v1549_v4  ;;  %v1558_v55 = vadd.f32 1.0, %v3644_v24  ;;  %v4817_v18 = vmul.f32 -1.442695, %v4793_v47  ;;  %v4821_v21 = vadd.f32 %v4635_v32, %v4492_v17  ;;  %v4841_v24 = vpop.f32.mrb[38].mxu0 }
 0x157   : > { %5900 = vst [vmem:[#allocation11_spill] sm:$0xff] %v4814_v40  ;;  %v3648_v34 = vpop.eup %3647  ;;  %3667 = vrcp.f32 %v1556_v62  ;;  %v1557_v26 = vadd.f32 1.0, %v3646_v7  ;;  %v4826_v28 = vmul.f32 -1.442695, %v4800_v33  ;;  %v4830_v13 = vadd.f32 %v4644_v2, %v4434_v0 }
 0x158   : > { %5901 = vst [vmem:[#allocation12_spill] sm:$0xff] %v4821_v21  ;;  %v3650_v44 = vpop.eup %3649  ;;  %3669 = vrcp.f32 %v1558_v55  ;;  %v1559_v15 = vadd.f32 1.0, %v3648_v34  ;;  %v4835_v32 = vmul.f32 -1.442695, %v4807_v45  ;;  %v4839_v4 = vadd.f32 %v4646_v38, %v4439_v1  ;;  %v4850_v34 = vpop.f32.mrb[39].mxu0 }
 0x159   : > { %5902 = vst [vmem:[#allocation13_spill] sm:$0xff] %v4830_v13  ;;  %v3652_v29 = vpop.eup %3651  ;;  %3671 = vrcp.f32 %v1557_v26  ;;  %v1490_v37 = vadd.f32 1.0, %v3650_v44  ;;  %v4844_v2 = vmul.f32 -1.442695, %v4814_v40  ;;  %v4848_v55 = vadd.f32 %v4656_v51, %v4487_v16  ;;  %5905 = vst [vmem:[#allocation29_spill] sm:$0xff] %v4850_v34 }
 0x15a   : > { %5903 = vst [vmem:[#allocation14_spill] sm:$0xff] %v4839_v4  ;;  %v3654_v62 = vpop.eup %3653  ;;  %3673 = vrcp.f32 %v1559_v15  ;;  %v1492_v7 = vadd.f32 1.0, %v3652_v29  ;;  %v4853_v38 = vmul.f32 -1.442695, %v4821_v21  ;;  %v4857_v45 = vadd.f32 %v4658_v42, %v4492_v17 }
 0x15b   : > { %5904 = vst [vmem:[#allocation15_spill] sm:$0xff] %v4848_v55  ;;  %v3656_v26 = vpop.eup %3655  ;;  %3675 = vrcp.f32 %v1490_v37  ;;  %v1491_v44 = vadd.f32 1.0, %v3654_v62  ;;  %v4860_v40 = vmul.f32 -1.442695, %v4830_v13  ;;  %v4864_v51 = vadd.f32 %v4695_v11, %v4434_v0 }
 0x15c   : > { %5906 = vst [vmem:[#allocation30_spill] sm:$0xff] %v4857_v45  ;;  %v3658_v15 = vpop.eup %3657  ;;  %3677 = vrcp.f32 %v1492_v7  ;;  %v1493_v29 = vadd.f32 1.0, %v3656_v26  ;;  %v4867_v62 = vmul.f32 -1.442695, %v4839_v4  ;;  %v4871_v42 = vadd.f32 %v4697_v49, %v4439_v1  ;;  %v4887_v4 = vpop.f32.mrb[40].mxu0 }
 0x15d   : > { %5907 = vst [vmem:[#allocation31_spill] sm:$0xff] %v4864_v51  ;;  %v3660_v34 = vpop.eup %3659  ;;  %3679 = vrcp.f32 %v1491_v44  ;;  %v1500_v37 = vadd.f32 1.0, %v3658_v15  ;;  %v4874_v26 = vmul.f32 -1.442695, %v4848_v55  ;;  %v4878_v11 = vadd.f32 %v4706_v53, %v4487_v16 }
 0x15e   : > { %5908 = vst [vmem:[#allocation32_spill] sm:$0xff] %v4871_v42  ;;  %v3662_v21 = vpop.eup %3661  ;;  %3681 = vrcp.f32 %v1493_v29  ;;  %v1502_v7 = vadd.f32 1.0, %v3660_v34  ;;  %v4881_v15 = vmul.f32 -1.442695, %v4857_v45  ;;  %v4885_v49 = vadd.f32 %v4708_v35, %v4492_v17 }
 0x15f   : > { %5909 = vst [vmem:[#allocation33_spill] sm:$0xff] %v4878_v11  ;;  %v3664_v13 = vpop.eup %3663  ;;  %3683 = vrcp.f32 %v1500_v37  ;;  %v1501_v44 = vadd.f32 1.0, %v3662_v21  ;;  %v4891_v55 = vmul.f32 -1.442695, %v4864_v51  ;;  %v4895_v53 = vadd.f32 %v4716_v6, %v4434_v0  ;;  %v4897_v21 = vpop.f32.mrb[41].mxu0 }
 0x160   : > { %5910 = vst [vmem:[#allocation34_spill] sm:$0xff] %v4885_v49  ;;  %v3666_v34 = vpop.eup %3665  ;;  %v1787_v29 = vmul.f32 %v3664_v13, %v4538_v22  ;;  %3685 = vrcp.f32 %v1502_v7  ;;  %v4901_v35 = vmul.f32 -1.442695, %v4871_v42  ;;  %v4905_v22 = vadd.f32 %v4718_v30, %v4439_v1  ;;  %v4907_v13 = vpop.f32.mrb[42].mxu0 }
 0x161   : > { %5911 = vst [vmem:[#allocation35_spill] sm:$0xff] %v4895_v53  ;;  %v3668_v37 = vpop.eup %3667  ;;  %v1789_v45 = vmul.f32 %v3666_v34, %v4549_v43  ;;  %3687 = vrcp.f32 %v1501_v44  ;;  %v4913_v6 = vmul.f32 -1.442695, %v4878_v11  ;;  %v4915_v43 = vpop.f32.mrb[43].mxu0  ;;  %v4921_v30 = vmul.f32 -1.442695, %v4885_v49 }
 0x162   : > { %5912 = vst [vmem:[#allocation36_spill] sm:$0xff] %v4905_v22  ;;  %v3670_v7 = vpop.eup %3669  ;;  %v1826_v51 = vadd.f32 %v4769_v56, %v1787_v29  ;;  %v1796_v0 = vmul.f32 %v3668_v37, %v4560_v36  ;;  %3689 = vpow2.f32 %v4693_v59  ;;  %5913 = vst [vmem:[#allocation37_spill] sm:$0xff] %v4915_v43  ;;  %v4927_v29 = vmul.f32 -1.442695, %v4895_v53  ;;  %v5924_v49 = vld [vmem:[#allocation25_spill] sm:$0xff] }
 0x163   : > { %v3672_v44 = vpop.eup %3671  ;;  %v1852_v34 = vadd.f32 %v4778_v27, %v1789_v45  ;;  %v1798_v1 = vmul.f32 %v3670_v7, %v4573_v5  ;;  %3691 = vpow2.f32 %v4714_v41  ;;  %v4933_v41 = vmul.f32 -1.442695, %v4905_v22 }
 0x164   : > { %v3674_v56 = vpop.eup %3673  ;;  %v1814_v36 = vadd.f32 %v4788_v12, %v1796_v0  ;;  %v1797_v59 = vmul.f32 %v3672_v44, %v4583_v3  ;;  %3693 = vpow2.f32 %v4741_v50  ;;  %v5914_v3 = vld [vmem:[#allocation9_spill] sm:$0xff] }
 0x165   : > { %v3676_v37 = vpop.eup %3675  ;;  %v1840_v27 = vadd.f32 %v4795_v57, %v1798_v1  ;;  %v1799_v5 = vmul.f32 %v3674_v56, %v4591_v61  ;;  %3695 = vpow2.f32 %v4752_v9  ;;  %v4938_v50 = vadd.f32 %v5914_v3, %v4487_v16  ;;  %v5915_v57 = vld [vmem:[#allocation18_spill] sm:$0xff]  ;;  %v4942_v61 = vpop.f32.mrb[44].mxu0 }
 0x166   : > { %v3678_v45 = vpop.eup %3677  ;;  %v1815_v7 = vrot.slane %v1814_v36, 4  ;;  %v1827_v12 = vadd.f32 %v1826_v51, %v1797_v59  ;;  %3697 = vpow2.f32 %v4757_v58  ;;  %v1730_v1 = vmul.f32 %v3676_v37, %v5915_v57  ;;  %5916 = vst [vmem:[#allocation9_spill] sm:$0xff] %v4942_v61  ;;  %v5917_v51 = vld [vmem:[#allocation20_spill] sm:$0xff]  ;;  %v4948_v58 = vpop.f32.mrb[45].mxu0 }
 0x167   : > { %v3680_v0 = vpop.eup %3679  ;;  %v1841_v44 = vrot.slane %v1840_v27, 4  ;;  %v1853_v43 = vadd.f32 %v1852_v34, %v1799_v5  ;;  %3699 = vpow2.f32 %v4774_v10  ;;  %v1732_v59 = vmul.f32 %v3678_v45, %v5917_v51  ;;  %5918 = vst [vmem:[#allocation18_spill] sm:$0xff] %v4948_v58  ;;  %v5919_v34 = vld [vmem:[#allocation21_spill] sm:$0xff]  ;;  %v4952_v10 = vpop.f32.mrb[46].mxu0 }
 0x168   : > { %v4944_v9 = vpop.eup %3681  ;;  %v1816_v56 = vadd.f32 %v1815_v7, %v1814_v36  ;;  %v1828_v22 = vrot.slane %v1827_v12, 4  ;;  %3701 = vpow2.f32 %v4803_v31  ;;  %v1731_v5 = vmul.f32 %v3680_v0, %v5919_v34  ;;  %5920 = vst [vmem:[#allocation20_spill] sm:$0xff] %v4952_v10  ;;  %v5921_v36 = vld [vmem:[#allocation23_spill] sm:$0xff]  ;;  %v4956_v45 = vpop.f32.mrb[47].mxu0 }
 0x169   : > { %v3684_v16 = vpop.eup %3683  ;;  %v1842_v3 = vadd.f32 %v1841_v44, %v1840_v27  ;;  %v1854_v53 = vrot.slane %v1853_v43, 4  ;;  %3703 = vpow2.f32 %v4810_v54  ;;  %5922 = vst [vmem:[#allocation21_spill] sm:$0xff] %v4956_v45  ;;  %v5923_v27 = vld [vmem:[#allocation24_spill] sm:$0xff] }
 0x16a   : > { %v3686_v37 = vpop.eup %3685  ;;  %v1817_v57 = vrot.slane %v1816_v56, 2  ;;  %v1829_v61 = vadd.f32 %v1828_v22, %v1827_v12  ;;  %v1740_v7 = vmul.f32 %v3684_v16, %v5921_v36  ;;  %3705 = vpow2.f32 %v4817_v18 }
 0x16b   : > { %v3688_v31 = vpop.eup %3687  ;;  %v1843_v51 = vrot.slane %v1842_v3, 2  ;;  %v1855_v58 = vadd.f32 %v1854_v53, %v1853_v43  ;;  %v1742_v44 = vmul.f32 %v3686_v37, %v5923_v27  ;;  %3707 = vpow2.f32 %v4826_v28 }
 0x16c   : > { %v3690_v0 = vpop.eup %3689  ;;  %v1818_v54 = vadd.f32 %v1817_v57, %v1816_v56  ;;  %v1830_v34 = vrot.slane %v1829_v61, 2  ;;  %v4960_v10 = vadd.f32 %v1740_v7, %v1730_v1  ;;  %v1741_v22 = vmul.f32 %v3688_v31, %v5924_v49 }
 0x16d   : > { %v3692_v12 = vpop.eup %3691  ;;  %v1844_v16 = vadd.f32 %v1843_v51, %v1842_v3  ;;  %v1856_v36 = vrot.slane %v1855_v58, 2  ;;  %v4963_v18 = vadd.f32 %v1742_v44, %v1732_v59  ;;  %v1503_v45 = vadd.f32 1.0, %v3690_v0 }
 0x16e   : > { %v3694_v11 = vpop.eup %3693  ;;  %v1819_v42 = vrot.slane %v1818_v54, 1  ;;  %v1831_v53 = vadd.f32 %v1830_v34, %v1829_v61  ;;  %v4965_v43 = vadd.f32 %v1741_v22, %v1731_v5  ;;  %v1510_v37 = vadd.f32 1.0, %v3692_v12 }
 0x16f   : > { %v3696_v28 = vpop.eup %3695  ;;  %v1845_v27 = vrot.slane %v1844_v16, 1  ;;  %v1857_v56 = vadd.f32 %v1856_v36, %v1855_v58  ;;  %3709 = vrcp.f32 %v1503_v45  ;;  %v1512_v1 = vadd.f32 1.0, %v3694_v11  ;;  %v5925_v11 = vld [vmem:[#allocation28_spill] sm:$0xff] }
 0x170   : > { %v3698_v57 = vpop.eup %3697  ;;  %v1820_v7 = vadd.f32 %v1819_v42, %v1818_v54  ;;  %v1832_v49 = vrot.slane %v1831_v53, 1  ;;  %3711 = vrcp.f32 %v1510_v37  ;;  %v1511_v3 = vadd.f32 1.0, %v3696_v28 }
 0x171   : > { %v3700_v31 = vpop.eup %3699  ;;  %v1846_v59 = vadd.f32 %v1845_v27, %v1844_v16  ;;  %v1858_v51 = vrot.slane %v1857_v56, 1  ;;  %3713 = vrcp.f32 %v1512_v1  ;;  %v1513_v44 = vadd.f32 1.0, %v3698_v57  ;;  %v5926_v16 = vld [vmem:[#allocation17_spill] sm:$0xff]  ;;  %v5927_v27 = vld [vmem:[#allocation19_spill] sm:$0xff]  ;;  %v5928_v1 = vld [vmem:[#allocation16_spill] sm:$0xff] }
 0x172   : > { %v3702_v0 = vpop.eup %3701  ;;  %v1833_v61 = vadd.f32 %v1832_v49, %v1831_v53  ;;  %3715 = vrcp.f32 %v1511_v3  ;;  %v1520_v5 = vadd.f32 1.0, %v3700_v31  ;;  %v4969_v45 = vadd.f32 %v5925_v11, %v4492_v17  ;;  %v2045_v11 = vld [vmem:[%s5816_s3 + $0x80] sm:$0xff] }
 0x173   : > { %v3704_v34 = vpop.eup %3703  ;;  %v1859_v22 = vadd.f32 %v1858_v51, %v1857_v56  ;;  %3717 = vrcp.f32 %v1513_v44  ;;  %v1522_v58 = vadd.f32 1.0, %v3702_v0  ;;  %v4973_v36 = vadd.f32 %v4759_v19, %v5926_v16  ;;  %v2139_v0 = vld [vmem:[%s5816_s3 + $0x370] sm:$0xff] }
 0x174   : > { %v3706_v42 = vpop.eup %3705  ;;  %v1948_v54 = vcombine.low %v1820_v7, %v1833_v61  ;;  %3719 = vrcp.f32 %v1520_v5  ;;  %v1521_v12 = vadd.f32 1.0, %v3704_v34  ;;  %v4977_v56 = vadd.f32 %v4767_v25, %v5927_v27  ;;  %v5932_v5 = vld [vmem:[#allocation22_spill] sm:$0xff] }
 0x175   : > { %v3708_v37 = vpop.eup %3707  ;;  %v1949_v53 = vcombine.low %v1846_v59, %v1859_v22  ;;  %3721 = vrcp.f32 %v1522_v58  ;;  %v1523_v28 = vadd.f32 1.0, %v3706_v42  ;;  %v4984_v7 = vadd.f32 %v4776_v39, %v5926_v16 }
 0x176   : > { %v4980_v57 = vrot.slane %v1948_v54, %v5928_v1  ;;  %3723 = vrcp.f32 %v1521_v12  ;;  %v1530_v17 = vadd.f32 1.0, %v3708_v37  ;;  %v4990_v49 = vmul.f32 -1.442695, %v4938_v50  ;;  %v5934_v54 = vld [vmem:[#allocation27_spill] sm:$0xff] }
 0x177   : > { %v4987_v19 = vrot.slane %v1949_v53, %v5928_v1  ;;  %3725 = vrcp.f32 %v1523_v28  ;;  %v4994_v25 = vadd.f32 %v4786_v46, %v5927_v27  ;;  %v4997_v3 = vmul.f32 -1.442695, %v4969_v45 }
 0x178   : > { %3727 = vrcp.f32 %v1530_v17  ;;  %v5000_v31 = vmul.f32 -1.442695, %v4973_v36  ;;  %v5004_v39 = vadd.f32 %v4823_v63, %v5926_v16  ;;  %v5010_v46 = vmul.f32 -1.442695, %v4977_v56  ;;  %v5933_v63 = vld [vmem:[#allocation26_spill] sm:$0xff] }
 0x179   : > { %v3710_v59 = vpop.eup %3709  ;;  %v1980_v51 = vcombine.low %v4980_v57, %v4987_v19  ;;  %3729 = vpow2.f32 %v4835_v32  ;;  %v5929_v44 = vlaneseq  ;;  %v1733_v34 = vmul.f32 %v4944_v9, %v5932_v5  ;;  %v2046_v9 = vld [vmem:[%s5816_s3 + $0x88] sm:$0xff]  ;;  %v2125_v57 = vld [vmem:[%s5816_s3 + $0x300] sm:$0xff] }
 0x17a   : > { %v3712_v61 = vpop.eup %3711  ;;  %v1743_v22 = vmul.f32 %v3710_v59, %v5933_v63  ;;  %3731 = vpow2.f32 %v4844_v2  ;;  %v5022_v58 = vmul.f32 -1.442695, %v4984_v7  ;;  %v3935_v32 = vmov 0.0   ;;  %v2126_v19 = vld [vmem:[%s5816_s3 + $0x308] sm:$0xff] }
 0x17b   : > { %vm5013_vm0 = vcmp.lt.s32.totalorder %v5929_v44, 256  ;;  %v3714_v42 = vpop.eup %3713  ;;  %v1750_v12 = vmul.f32 %v3712_v61, %v5934_v54  ;;  %3733 = vpow2.f32 %v4853_v38  ;;  %v5036_v2 = vmul.f32 -1.442695, %v4994_v25  ;;  %v2077_v38 = vld [vmem:[%s5816_s3 + $0x180] sm:$0xff]  ;;  %v2078_v44 = vld [vmem:[%s5816_s3 + $0x188] sm:$0xff] }
 0x17c   : > { %314 = vst.msk [vmem:[#allocation2 + $0x8] sm:$0x3] %vm5013_vm0, %v3935_v32  ;;  %v5040_v37 = vadd.f32 %v4832_v60, %v5927_v27  ;;  %v3716_v53 = vpop.eup %3715  ;;  %v1899_v28 = vadd.f32 %v1743_v22, %v1733_v34  ;;  %v1752_v17 = vmul.f32 %v3714_v42, %v4704_v52  ;;  %3735 = vpow2.f32 %v4860_v40  ;;  %v2029_v40 = vld [vmem:[%s5816_s3] sm:$0xff]  ;;  %v2030_v34 = vld [vmem:[%s5816_s3 + $0x8] sm:$0xff] }
 0x17d   : > { %v5045_v59 = vmul.f32 -1.442695, %v5004_v39  ;;  %v3718_v61 = vpop.eup %3717  ;;  %v1861_v60 = vadd.f32 %v4960_v10, %v1750_v12  ;;  %v1751_v5 = vmul.f32 %v3716_v53, %v4725_v14  ;;  %3737 = vpow2.f32 %v4867_v62  ;;  %v2061_v62 = vld [vmem:[%s5816_s3 + $0x100] sm:$0xff]  ;;  %v2062_v10 = vld [vmem:[%s5816_s3 + $0x108] sm:$0xff] }
 0x17e   : > { %v3165_v52 = vpack.c.bf16 %v2046_v9, %v2045_v11  ;;  %v3720_v63 = vpop.eup %3719  ;;  %v1887_v22 = vadd.f32 %v4963_v18, %v1752_v17  ;;  %v1753_v42 = vmul.f32 %v3718_v61, %v4736_v8  ;;  %3739 = vpow2.f32 %v4874_v26  ;;  %v2048_v26 = vld [vmem:[%s5816_s3 + $0x98] sm:$0xff]  ;;  %v2031_v17 = vld [vmem:[%s5816_s3 + $0x10] sm:$0xff] }
 0x17f   : > { %v5067_v14 = vadd.f32 %v4841_v24, %v5926_v16  ;;  %v3722_v11 = vpop.eup %3721  ;;  %v1874_v9 = vadd.f32 %v4965_v43, %v1751_v5  ;;  %v1760_v18 = vmul.f32 %v3720_v63, %v4747_v23  ;;  %3741 = vpow2.f32 %v4881_v15  ;;  %v2047_v24 = vld [vmem:[%s5816_s3 + $0x90] sm:$0xff]  ;;  %v2080_v15 = vld [vmem:[%s5816_s3 + $0x198] sm:$0xff]  ;;  %v2081_v63 = vld [vmem:[%s5816_s3 + $0x1a0] sm:$0xff] }
 0x180   : > { %3166 = vmatprep.subr.bf16.mxu1 %v3165_v52  ;;  %v3197_v8 = vpack.c.bf16 %v2078_v44, %v2077_v38  ;;  %v3724_v54 = vpop.eup %3723  ;;  %v1900_v12 = vadd.f32 %v1899_v28, %v1753_v42  ;;  %v1762_v53 = vmul.f32 %v3722_v11, %v4765_v48  ;;  %3743 = vpow2.f32 %v4891_v55  ;;  %v2079_v23 = vld [vmem:[%s5816_s3 + $0x190] sm:$0xff]  ;;  %v2032_v55 = vld [vmem:[%s5816_s3 + $0x18] sm:$0xff]  ;;  %v2034_v11 = vld [vmem:[%s5816_s3 + $0x28] sm:$0xff] }
 0x181   : > { %v3167_v43 = vpack.c.bf16 %v2030_v34, %v2029_v40  ;;  %v3726_v38 = vpop.eup %3725  ;;  %v1862_v44 = vadd.f32 %v1861_v60, %v1760_v18  ;;  %v1761_v28 = vmul.f32 %v3724_v54, %v4784_v20  ;;  %3745 = vpow2.f32 %v4901_v35  ;;  %v2063_v61 = vld [vmem:[%s5816_s3 + $0x110] sm:$0xff]  ;;  %v2064_v5 = vld [vmem:[%s5816_s3 + $0x118] sm:$0xff]  ;;  %v2049_v40 = vld [vmem:[%s5816_s3 + $0xa0] sm:$0xff] }
 0x182   : > { %3198 = vmatprep.subr.bf16.mxu0 %v3197_v8  ;;  %v3199_v48 = vpack.c.bf16 %v2062_v10, %v2061_v62  ;;  %v3728_v52 = vpop.eup %3727  ;;  %v5106_v60 = vadd.f32 %v1887_v22, %v1762_v53  ;;  %v1763_v20 = vmul.f32 %v3726_v38, %v4793_v47  ;;  %3747 = vpow2.f32 %v4913_v6  ;;  %v2050_v34 = vld [vmem:[%s5816_s3 + $0xa8] sm:$0xff]  ;;  %v2033_v10 = vld [vmem:[%s5816_s3 + $0x20] sm:$0xff] }
 0x183   : > { %3168 = vmatpush3.bf16.msra.mxu1 %v3167_v43  ;;  %v3169_v35 = vpack.c.bf16 %v2048_v26, %v2047_v24  ;;  %v3730_v22 = vpop.eup %3729  ;;  %v5119_v42 = vadd.f32 %v1874_v9, %v1761_v28  ;;  %v1770_v47 = vmul.f32 %v3728_v52, %v4800_v33  ;;  %3749 = vpow2.f32 %v4921_v30  ;;  %v2082_v62 = vld [vmem:[%s5816_s3 + $0x1a8] sm:$0xff]  ;;  %v2065_v8 = vld [vmem:[%s5816_s3 + $0x120] sm:$0xff]  ;;  %v2051_v26 = vld [vmem:[%s5816_s3 + $0xb0] sm:$0xff] }
 0x184   : > { %3200 = vmatpush3.bf16.msra.mxu0 %v3199_v48  ;;  %v3201_v6 = vpack.c.bf16 %v2080_v15, %v2079_v23  ;;  %v3732_v9 = vpop.eup %3731  ;;  %v5132_v18 = vadd.f32 %v1900_v12, %v1763_v20  ;;  %v1532_v33 = vadd.f32 1.0, %v3730_v22  ;;  %3751 = vpow2.f32 %v4927_v29  ;;  %v2066_v24 = vld [vmem:[%s5816_s3 + $0x128] sm:$0xff]  ;;  %v2052_v43 = vld [vmem:[%s5816_s3 + $0xb8] sm:$0xff]  ;;  %v2083_v23 = vld [vmem:[%s5816_s3 + $0x1b0] sm:$0xff] }
 0x185   : > { %3170 = vmatprep.subr.bf16.mxu1 %v3169_v35  ;;  %v3171_v30 = vpack.c.bf16 %v2032_v55, %v2031_v17  ;;  %v3734_v54 = vpop.eup %3733  ;;  %v5144_v12 = vadd.f32 %v1862_v44, %v1770_v47  ;;  %v1531_v53 = vadd.f32 1.0, %v3732_v9  ;;  %3753 = vpow2.f32 %v4933_v41  ;;  %v2084_v15 = vld [vmem:[%s5816_s3 + $0x1b8] sm:$0xff]  ;;  %v2035_v28 = vld [vmem:[%s5816_s3 + $0x30] sm:$0xff]  ;;  %v2053_v47 = vld [vmem:[%s5816_s3 + $0xc0] sm:$0xff] }
 0x186   : > { %3202 = vmatprep.subr.bf16.mxu0 %v3201_v6  ;;  %v3203_v29 = vpack.c.bf16 %v2064_v5, %v2063_v61  ;;  %v3736_v17 = vpop.eup %3735  ;;  %3755 = vrcp.f32 %v1532_v33  ;;  %v1533_v38 = vadd.f32 1.0, %v3734_v54  ;;  %v3173_v44 = vpack.c.bf16 %v2050_v34, %v2049_v40  ;;  %v2036_v52 = vld [vmem:[%s5816_s3 + $0x38] sm:$0xff]  ;;  %v2067_v20 = vld [vmem:[%s5816_s3 + $0x130] sm:$0xff]  ;;  %v2054_v6 = vld [vmem:[%s5816_s3 + $0xc8] sm:$0xff] }
 0x187   : > { %3172 = vmatpush3.bf16.msra.mxu1 %v3171_v30  ;;  %v3205_v41 = vpack.c.bf16 %v2082_v62, %v2081_v63  ;;  %v3738_v48 = vpop.eup %3737  ;;  %3757 = vrcp.f32 %v1531_v53  ;;  %v1540_v55 = vadd.f32 1.0, %v3736_v17  ;;  %v3175_v61 = vpack.c.bf16 %v2034_v11, %v2033_v10  ;;  %v2068_v35 = vld [vmem:[%s5816_s3 + $0x138] sm:$0xff]  ;;  %v2085_v62 = vld [vmem:[%s5816_s3 + $0x1c0] sm:$0xff]  ;;  %v2086_v30 = vld [vmem:[%s5816_s3 + $0x1c8] sm:$0xff] }
 0x188   : > { %3204 = vmatpush3.bf16.msra.mxu0 %v3203_v29  ;;  %v3207_v5 = vpack.c.bf16 %v2066_v24, %v2065_v8  ;;  %v3740_v40 = vpop.eup %3739  ;;  %3759 = vrcp.f32 %v1533_v38  ;;  %v1542_v34 = vadd.f32 1.0, %v3738_v48  ;;  %3174 = vmatprep.subr.bf16.mxu1 %v3173_v44  ;;  %v3177_v63 = vpack.c.bf16 %v2052_v43, %v2051_v26  ;;  %v5935_v26 = vld [vmem:[#allocation29_spill] sm:$0xff] }
 0x189   : > { %3206 = vmatprep.subr.bf16.mxu0 %v3205_v41  ;;  %v3209_v22 = vpack.c.bf16 %v2084_v15, %v2083_v23  ;;  %v3742_v10 = vpop.eup %3741  ;;  %3761 = vrcp.f32 %v1540_v55  ;;  %v1541_v11 = vadd.f32 1.0, %v3740_v40  ;;  %v5178_v9 = vmul.f32 -1.442695, %v5040_v37  ;;  %v2037_v17 = vld [vmem:[%s5816_s3 + $0x40] sm:$0xff]  ;;  %v2038_v38 = vld [vmem:[%s5816_s3 + $0x48] sm:$0xff] }
 0x18a   : > { %v5181_v33 = vmul.f32 -1.442695, %v5067_v14  ;;  %v3744_v8 = vpop.eup %3743  ;;  %3763 = vrcp.f32 %v1542_v34  ;;  %v1543_v24 = vadd.f32 1.0, %v3742_v10  ;;  %v5188_v54 = vadd.f32 %v5935_v26, %v5927_v27  ;;  %v2069_v44 = vld [vmem:[%s5816_s3 + $0x140] sm:$0xff]  ;;  %v2087_v34 = vld [vmem:[%s5816_s3 + $0x1d0] sm:$0xff]  ;;  %v2072_v26 = vld [vmem:[%s5816_s3 + $0x158] sm:$0xff] }
 0x18b   : > { %3176 = vmatpush3.bf16.msra.mxu1 %v3175_v61  ;;  %v3179_v53 = vpack.c.bf16 %v2036_v52, %v2035_v28  ;;  %v3746_v29 = vpop.eup %3745  ;;  %3765 = vrcp.f32 %v1541_v11  ;;  %v1550_v43 = vadd.f32 1.0, %v3744_v8  ;;  %v3211_v23 = vpack.c.bf16 %v2068_v35, %v2067_v20  ;;  %v2070_v61 = vld [vmem:[%s5816_s3 + $0x148] sm:$0xff]  ;;  %v2056_v52 = vld [vmem:[%s5816_s3 + $0xd8] sm:$0xff] }
 0x18c   : > { %3208 = vmatpush3.bf16.msra.mxu0 %v3207_v5  ;;  %3178 = vmatprep.subr.bf16.mxu1 %v3177_v63  ;;  %v3181_v15 = vpack.c.bf16 %v2054_v6, %v2053_v47  ;;  %v3748_v41 = vpop.eup %3747  ;;  %3767 = vrcp.f32 %v1543_v24  ;;  %v1552_v28 = vadd.f32 1.0, %v3746_v29  ;;  %v5201_v48 = vadd.f32 %v4887_v4, %v5926_v16  ;;  %v2055_v5 = vld [vmem:[%s5816_s3 + $0xd0] sm:$0xff]  ;;  %v2088_v63 = vld [vmem:[%s5816_s3 + $0x1d8] sm:$0xff] }
 0x18d   : > { %3210 = vmatprep.subr.bf16.mxu0 %v3209_v22  ;;  %v3213_v55 = vpack.c.bf16 %v2086_v30, %v2085_v62  ;;  %v3750_v20 = vpop.eup %3749  ;;  %3769 = vrcp.f32 %v1550_v43  ;;  %v1551_v35 = vadd.f32 1.0, %v3748_v41  ;;  %v5214_v4 = vadd.f32 %v4897_v21, %v5927_v27  ;;  %v2040_v8 = vld [vmem:[%s5816_s3 + $0x58] sm:$0xff]  ;;  %v2071_v24 = vld [vmem:[%s5816_s3 + $0x150] sm:$0xff] }
 0x18e   : > { %v5218_v40 = vadd.f32 %v4907_v13, %v5926_v16  ;;  %v3752_v22 = vpop.eup %3751  ;;  %3771 = vrcp.f32 %v1552_v28  ;;  %v1553_v47 = vadd.f32 1.0, %v3750_v20  ;;  %v5227_v6 = vmul.f32 -1.442695, %v5188_v54  ;;  %v2039_v13 = vld [vmem:[%s5816_s3 + $0x50] sm:$0xff] }
 0x18f   : > { %3180 = vmatpush3.bf16.msra.mxu1 %v3179_v53  ;;  %v3183_v21 = vpack.c.bf16 %v2038_v38, %v2037_v17  ;;  %v3754_v62 = vpop.eup %3753  ;;  %3773 = vrcp.f32 %v1551_v35  ;;  %v1560_v10 = vadd.f32 1.0, %v3752_v22  ;;  %v3215_v11 = vpack.c.bf16 %v2070_v61, %v2069_v44  ;;  %v2058_v17 = vld [vmem:[%s5816_s3 + $0xe8] sm:$0xff]  ;;  %v5937_v20 = vld [vmem:[#allocation11_spill] sm:$0xff]  ;;  %v2041_v22 = vld [vmem:[%s5816_s3 + $0x60] sm:$0xff] }
 0x190   : > { %3212 = vmatpush3.bf16.msra.mxu0 %v3211_v23  ;;  %3182 = vmatprep.subr.bf16.mxu1 %v3181_v15  ;;  %v3185_v30 = vpack.c.bf16 %v2056_v52, %v2055_v5  ;;  %v3756_v53 = vpop.eup %3755  ;;  %3775 = vrcp.f32 %v1553_v47  ;;  %v1562_v29 = vadd.f32 1.0, %v3754_v62  ;;  %v5242_v43 = vmul.f32 -1.442695, %v5201_v48  ;;  %v2057_v15 = vld [vmem:[%s5816_s3 + $0xe0] sm:$0xff]  ;;  %v5936_v44 = vld [vmem:[#allocation10_spill] sm:$0xff] }
 0x191   : > { %3214 = vmatprep.subr.bf16.mxu0 %v3213_v55  ;;  %v3217_v23 = vpack.c.bf16 %v2088_v63, %v2087_v34  ;;  %v3758_v38 = vpop.eup %3757  ;;  %v1772_v41 = vmul.f32 %v3756_v53, %v5936_v44  ;;  %3777 = vrcp.f32 %v1560_v10  ;;  %v5252_v28 = vmul.f32 -1.442695, %v5214_v4  ;;  %v2089_v55 = vld [vmem:[%s5816_s3 + $0x1e0] sm:$0xff]  ;;  %v2090_v5 = vld [vmem:[%s5816_s3 + $0x1e8] sm:$0xff] }
 0x192   : > { %v5255_v61 = vmul.f32 -1.442695, %v5218_v40  ;;  %v3760_v52 = vpop.eup %3759  ;;  %v1771_v35 = vmul.f32 %v3758_v38, %v5937_v20  ;;  %3779 = vrcp.f32 %v1562_v29  ;;  %v3187_v34 = vpack.c.bf16 %v2040_v8, %v2039_v13  ;;  %v2042_v47 = vld [vmem:[%s5816_s3 + $0x68] sm:$0xff]  ;;  %v5938_v53 = vld [vmem:[#allocation12_spill] sm:$0xff] }
 0x193   : > { %3184 = vmatpush3.bf16.msra.mxu1 %v3183_v21  ;;  %v3219_v63 = vpack.c.bf16 %v2072_v26, %v2071_v24  ;;  %v3762_v62 = vpop.eup %3761  ;;  %v1889_v10 = vadd.f32 %v5106_v60, %v1772_v41  ;;  %v1773_v44 = vmul.f32 %v3760_v52, %v5938_v53  ;;  %3781 = vpow2.f32 %v4990_v49  ;;  %v2073_v13 = vld [vmem:[%s5816_s3 + $0x160] sm:$0xff]  ;;  %v2074_v8 = vld [vmem:[%s5816_s3 + $0x168] sm:$0xff]  ;;  %v5941_v52 = vld [vmem:[#allocation15_spill] sm:$0xff] }
 0x194   : > { %3216 = vmatpush3.bf16.msra.mxu0 %v3215_v11  ;;  %3186 = vmatprep.subr.bf16.mxu1 %v3185_v30  ;;  %v3189_v21 = vpack.c.bf16 %v2058_v17, %v2057_v15  ;;  %v3764_v24 = vpop.eup %3763  ;;  %v1876_v26 = vadd.f32 %v5119_v42, %v1771_v35  ;;  %v5939_v29 = vld [vmem:[#allocation13_spill] sm:$0xff]  ;;  %3783 = vpow2.f32 %v4997_v3  ;;  %v3221_v49 = vpack.c.bf16 %v2090_v5, %v2089_v55  ;;  %v2059_v11 = vld [vmem:[%s5816_s3 + $0xf0] sm:$0xff]  ;;  %v2060_v30 = vld [vmem:[%s5816_s3 + $0xf8] sm:$0xff] }
 0x195   : > { %v1780_v60 = vmul.f32 %v3762_v62, %v5939_v29  ;;  %3218 = vmatprep.subr.bf16.mxu0 %v3217_v23  ;;  %v3766_v15 = vpop.eup %3765  ;;  %v1902_v17 = vadd.f32 %v5132_v18, %v1773_v44  ;;  %v5940_v38 = vld [vmem:[#allocation14_spill] sm:$0xff]  ;;  %3785 = vpow2.f32 %v5000_v31  ;;  %v3191_v42 = vpack.c.bf16 %v2042_v47, %v2041_v22  ;;  %v2092_v23 = vld [vmem:[%s5816_s3 + $0x1f8] sm:$0xff] }
 0x196   : > { %v1782_v41 = vmul.f32 %v3764_v24, %v5940_v38  ;;  %v2091_v3 = vld [vmem:[%s5816_s3 + $0x1f0] sm:$0xff]  ;;  %v3768_v55 = vpop.eup %3767  ;;  %v1781_v20 = vmul.f32 %v3766_v15, %v5941_v52  ;;  %3787 = vpow2.f32 %v5010_v46  ;;  %v3223_v18 = vpack.c.bf16 %v2074_v8, %v2073_v13  ;;  %v2044_v35 = vld [vmem:[%s5816_s3 + $0x78] sm:$0xff]  ;;  %v5945_v38 = vld [vmem:[#allocation33_spill] sm:$0xff] }
 0x197   : > { %v1864_v5 = vadd.f32 %v5144_v12, %v1780_v60  ;;  %3188 = vmatpush3.bf16.msra.mxu1 %v3187_v34  ;;  %v2043_v31 = vld [vmem:[%s5816_s3 + $0x70] sm:$0xff]  ;;  %v3770_v22 = vpop.eup %3769  ;;  %3789 = vpow2.f32 %v5022_v58  ;;  %v3193_v12 = vpack.c.bf16 %v2060_v30, %v2059_v11  ;;  %v2076_v34 = vld [vmem:[%s5816_s3 + $0x178] sm:$0xff]  ;;  %v2109_v58 = vld [vmem:[%s5816_s3 + $0x280] sm:$0xff] }
 0x198   : > { %v1890_v47 = vadd.f32 %v1889_v10, %v1782_v41  ;;  %v5942_v62 = vld [vmem:[#allocation30_spill] sm:$0xff]  ;;  %3220 = vmatpush3.bf16.msra.mxu0 %v3219_v63  ;;  %3190 = vmatprep.subr.bf16.mxu1 %v3189_v21  ;;  %v3772_v44 = vpop.eup %3771  ;;  %v1877_v13 = vadd.f32 %v1876_v26, %v1781_v20  ;;  %v5943_v8 = vld [vmem:[#allocation31_spill] sm:$0xff]  ;;  %3791 = vpow2.f32 %v5036_v2  ;;  %v3225_v10 = vpack.c.bf16 %v2092_v23, %v2091_v3  ;;  %v5944_v60 = vld [vmem:[#allocation32_spill] sm:$0xff] }
 0x199   : > { %v1783_v53 = vmul.f32 %v3768_v55, %v5942_v62  ;;  %v2075_v46 = vld [vmem:[%s5816_s3 + $0x170] sm:$0xff]  ;;  %v1790_v24 = vmul.f32 %v3770_v22, %v5943_v8  ;;  %3222 = vmatprep.subr.bf16.mxu0 %v3221_v49  ;;  %v2110_v63 = vld [vmem:[%s5816_s3 + $0x288] sm:$0xff]  ;;  %v3774_v21 = vpop.eup %3773  ;;  %v1792_v11 = vmul.f32 %v3772_v44, %v5944_v60  ;;  %3793 = vpow2.f32 %v5045_v59  ;;  %v2141_v2 = vld [vmem:[%s5816_s3 + $0x380] sm:$0xff] }
 0x19a   : > { %v3195_v26 = vpack.c.bf16 %v2044_v35, %v2043_v31  ;;  %v2142_v49 = vld [vmem:[%s5816_s3 + $0x388] sm:$0xff]  ;;  %v3776_v30 = vpop.eup %3775  ;;  %v1791_v41 = vmul.f32 %v3774_v21, %v5945_v38  ;;  %3795 = vpow2.f32 %v5178_v9  ;;  %v3229_v52 = vpack.c.bf16 %v2110_v63, %v2109_v58  ;;  %v5947_v35 = vld [vmem:[#allocation35_spill] sm:$0xff] }
 0x19b   : > { %v1903_v29 = vadd.f32 %v1902_v17, %v1783_v53  ;;  %v1865_v15 = vadd.f32 %v1864_v5, %v1790_v24  ;;  %3192 = vmatpush3.bf16.msra.mxu1 %v3191_v42  ;;  %v3227_v17 = vpack.c.bf16 %v2076_v34, %v2075_v46  ;;  %v3778_v3 = vpop.eup %3777  ;;  %v1891_v23 = vadd.f32 %v1890_v47, %v1792_v11  ;;  %v5946_v59 = vld [vmem:[#allocation34_spill] sm:$0xff]  ;;  %v5948_v47 = vld [vmem:[#allocation36_spill] sm:$0xff]  ;;  %v5949_v11 = vld [vmem:[#allocation37_spill] sm:$0xff] }
 0x19c   : > { %v1793_v55 = vmul.f32 %v3776_v30, %v5946_v59  ;;  %3797 = vpow2.f32 %v5181_v33  ;;  %3224 = vmatpush3.bf16.msra.mxu0 %v3223_v18  ;;  %3194 = vmatprep.subr.bf16.mxu1 %v3193_v12  ;;  %v3780_v20 = vpop.eup %3779  ;;  %v5334_v31 = vadd.f32 %v1877_v13, %v1791_v41  ;;  %v1800_v5 = vmul.f32 %v3778_v3, %v5947_v35 }
 0x19d   : > { %3799 = vpow2.f32 %v5227_v6  ;;  %3226 = vmatprep.subr.bf16.mxu0 %v3225_v10  ;;  %v3261_v9 = vpack.c.bf16 %v2142_v49, %v2141_v2  ;;  %v3782_v42 = vpop.eup %3781  ;;  %v1802_v62 = vmul.f32 %v3780_v20, %v5948_v47  ;;  %v5952_v20 = vld [vmem:[#allocation20_spill] sm:$0xff]  ;;  %v5953_v47 = vld [vmem:[#allocation21_spill] sm:$0xff] }
 0x19e   : > { %v5338_v22 = vadd.f32 %v1903_v29, %v1793_v55  ;;  %3801 = vpow2.f32 %v5242_v43  ;;  %v3784_v33 = vpop.eup %3783  ;;  %v1866_v18 = vadd.f32 %v1865_v15, %v1800_v5  ;;  %v1561_v53 = vadd.f32 1.0, %v3782_v42  ;;  %v5950_v15 = vld [vmem:[#allocation9_spill] sm:$0xff] }
 0x19f   : > { %3803 = vpow2.f32 %v5252_v28  ;;  %3196 = vmatpush3.bf16.msra.mxu1 %v3195_v26  ;;  %v3786_v12 = vpop.eup %3785  ;;  %v1892_v46 = vadd.f32 %v1891_v23, %v1802_v62  ;;  %v1563_v34 = vadd.f32 1.0, %v3784_v33  ;;  %v5346_v26 = vadd.f32 %v5949_v11, %v5927_v27  ;;  %v5951_v23 = vld [vmem:[#allocation18_spill] sm:$0xff] }
 0x1a0   : > { %3805 = vpow2.f32 %v5255_v61  ;;  %3228 = vmatpush3.bf16.msra.mxu0 %v3227_v17  ;;  %3230 = vmatprep.subr.bf16.mxu1 %v3229_v52  ;;  %v3788_v6 = vpop.eup %3787  ;;  %v1494_v44 = vadd.f32 1.0, %v3786_v12  ;;  %v1867_v24 = vrot.slane %v1866_v18, 4  ;;  %v5350_v38 = vadd.f32 %v5950_v15, %v5926_v16 }
 0x1a1   : > { %3807 = vrcp.f32 %v1561_v53  ;;  %3262 = vmatprep.subr.bf16.mxu0 %v3261_v9  ;;  %v3790_v13 = vpop.eup %3789  ;;  %v1495_v43 = vadd.f32 1.0, %v3788_v6  ;;  %v1893_v58 = vrot.slane %v1892_v46, 4  ;;  %v5354_v59 = vadd.f32 %v5951_v23, %v5927_v27 }
 0x1a2   : > { %3809 = vrcp.f32 %v1563_v34  ;;  %v3792_v8 = vpop.eup %3791  ;;  %v1504_v10 = vadd.f32 1.0, %v3790_v13  ;;  %v1868_v49 = vadd.f32 %v1867_v24, %v1866_v18  ;;  %v5358_v35 = vadd.f32 %v5952_v20, %v5926_v16 }
 0x1a3   : > { %3811 = vrcp.f32 %v1494_v44  ;;  %v3794_v28 = vpop.eup %3793  ;;  %v1505_v63 = vadd.f32 1.0, %v3792_v8  ;;  %v1894_v17 = vadd.f32 %v1893_v58, %v1892_v46  ;;  %v2913_v42 = vmul.f32 -1.442695, %v5346_v26 }
 0x1a4   : > { %3813 = vrcp.f32 %v1495_v43  ;;  %v3796_v21 = vpop.eup %3795  ;;  %v1514_v61 = vadd.f32 1.0, %v3794_v28  ;;  %v5363_v62 = vadd.f32 %v5953_v47, %v5927_v27  ;;  %v1869_v18 = vrot.slane %v1868_v49, 2 }
 0x1a5   : > { %3815 = vrcp.f32 %v1504_v10  ;;  %v1515_v60 = vadd.f32 1.0, %v3796_v21  ;;  %v2922_v12 = vmul.f32 -1.442695, %v5350_v38  ;;  %v1895_v34 = vrot.slane %v1894_v17, 2 }
 0x1a6   : > { %v3798_v29 = vpop.eup %3797  ;;  %3817 = vrcp.f32 %v1505_v63  ;;  %v2923_v6 = vmul.f32 -1.442695, %v5354_v59  ;;  %v2932_v27 = vmul.f32 -1.442695, %v5358_v35  ;;  %v2933_v10 = vmul.f32 -1.442695, %v5363_v62 }
 0x1a7   : > { %v3800_v2 = vpop.eup %3799  ;;  %3819 = vrcp.f32 %v1514_v61  ;;  %v1524_v30 = vadd.f32 1.0, %v3798_v29  ;;  %v1870_v58 = vadd.f32 %v1869_v18, %v1868_v49  ;;  %v1896_v21 = vadd.f32 %v1895_v34, %v1894_v17 }
 0x1a8   : > { %v3802_v41 = vpop.eup %3801  ;;  %3821 = vrcp.f32 %v1515_v60  ;;  %v1525_v3 = vadd.f32 1.0, %v3800_v2 }
 0x1a9   : > { %v3804_v55 = vpop.eup %3803  ;;  %3823 = vrcp.f32 %v1524_v30  ;;  %v1534_v52 = vadd.f32 1.0, %v3802_v41 }
 0x1aa   : > { %v3806_v5 = vpop.eup %3805  ;;  %3825 = vrcp.f32 %v1525_v3  ;;  %v1535_v9 = vadd.f32 1.0, %v3804_v55  ;;  %v1871_v3 = vrot.slane %v1870_v58, 1 }
 0x1ab   : > { %v3808_v33 = vpop.eup %3807  ;;  %3827 = vrcp.f32 %v1534_v52  ;;  %v1544_v53 = vadd.f32 1.0, %v3806_v5 }
 0x1ac   : > { %v3810_v46 = vpop.eup %3809  ;;  %v1801_v16 = vmul.f32 %v3808_v33, %v4938_v50  ;;  %3829 = vrcp.f32 %v1535_v9  ;;  %v1872_v34 = vadd.f32 %v1871_v3, %v1870_v58 }
 0x1ad   : > { %v3812_v44 = vpop.eup %3811  ;;  %v1803_v13 = vmul.f32 %v3810_v46, %v4969_v45  ;;  %3831 = vrcp.f32 %v1544_v53 }
 0x1ae   : > { %v3814_v43 = vpop.eup %3813  ;;  %v1879_v8 = vadd.f32 %v5334_v31, %v1801_v16  ;;  %v1734_v24 = vmul.f32 %v3812_v44, %v4973_v36  ;;  %3833 = vpow2.f32 %v2913_v42 }
 0x1af   : > { %v3816_v28 = vpop.eup %3815  ;;  %v1905_v50 = vadd.f32 %v5338_v22, %v1803_v13  ;;  %3835 = vpow2.f32 %v2922_v12  ;;  %v1735_v31 = vmul.f32 %v3814_v43, %v4977_v56 }
 0x1b0   : > { %v3818_v63 = vpop.eup %3817  ;;  %v1880_v61 = vrot.slane %v1879_v8, 4  ;;  %v1744_v45 = vmul.f32 %v3816_v28, %v4984_v7  ;;  %3837 = vpow2.f32 %v2923_v6 }
 0x1b1   : > { %v3820_v29 = vpop.eup %3819  ;;  %v1906_v60 = vrot.slane %v1905_v50, 4  ;;  %v1745_v36 = vmul.f32 %v3818_v63, %v4994_v25  ;;  %3839 = vpow2.f32 %v2932_v27  ;;  %v1897_v25 = vrot.slane %v1896_v21, 1 }
 0x1b2   : > { %v3822_v11 = vpop.eup %3821  ;;  %v1881_v2 = vadd.f32 %v1880_v61, %v1879_v8  ;;  %v1912_v30 = vadd.f32 %v1744_v45, %v1734_v24  ;;  %v1754_v49 = vmul.f32 %v3820_v29, %v5004_v39  ;;  %3841 = vpow2.f32 %v2933_v10 }
 0x1b3   : > { %v3824_v22 = vpop.eup %3823  ;;  %v1907_v15 = vadd.f32 %v1906_v60, %v1905_v50  ;;  %v1925_v41 = vadd.f32 %v1745_v36, %v1735_v31  ;;  %v1755_v17 = vmul.f32 %v3822_v11, %v5040_v37  ;;  %v1898_v13 = vadd.f32 %v1897_v25, %v1896_v21 }
 0x1b4   : > { %v3826_v7 = vpop.eup %3825  ;;  %v1882_v23 = vrot.slane %v1881_v2, 2  ;;  %v1913_v55 = vadd.f32 %v1912_v30, %v1754_v49  ;;  %v1764_v56 = vmul.f32 %v3824_v22, %v5067_v14  ;;  %v1988_v31 = vrot.slane %v1980_v51, %v5928_v1  ;;  %v2093_v22 = vld [vmem:[%s5816_s3 + $0x200] sm:$0xff] }
 0x1b5   : > { %v3828_v52 = vpop.eup %3827  ;;  %v1908_v20 = vrot.slane %v1907_v15, 2  ;;  %v1926_v5 = vadd.f32 %v1925_v41, %v1755_v17  ;;  %v1765_v9 = vmul.f32 %v3826_v7, %v5188_v54  ;;  %v2094_v17 = vld [vmem:[%s5816_s3 + $0x208] sm:$0xff] }
 0x1b6   : > { %v3830_v42 = vpop.eup %3829  ;;  %v1883_v39 = vadd.f32 %v1882_v23, %v1881_v2  ;;  %v1914_v47 = vadd.f32 %v1913_v55, %v1764_v56  ;;  %v1774_v33 = vmul.f32 %v3828_v52, %v5201_v48  ;;  %v2111_v56 = vld [vmem:[%s5816_s3 + $0x290] sm:$0xff] }
 0x1b7   : > { %v3832_v18 = vpop.eup %3831  ;;  %v1909_v53 = vadd.f32 %v1908_v20, %v1907_v15  ;;  %v1927_v37 = vadd.f32 %v1926_v5, %v1765_v9  ;;  %v1775_v12 = vmul.f32 %v3830_v42, %v5214_v4  ;;  %v3231_v20 = vpack.c.bf16 %v2094_v17, %v2093_v22  ;;  %v2112_v9 = vld [vmem:[%s5816_s3 + $0x298] sm:$0xff]  ;;  %v2147_v22 = vld [vmem:[%s5816_s3 + $0x3b0] sm:$0xff] }
 0x1b8   : > { %v3834_v46 = vpop.eup %3833  ;;  %v1884_v16 = vrot.slane %v1883_v39, 1  ;;  %v1915_v14 = vadd.f32 %v1914_v47, %v1774_v33  ;;  %v1784_v6 = vmul.f32 %v3832_v18, %v5218_v40  ;;  %v3263_v5 = vpack.c.bf16 %v2126_v19, %v2125_v57  ;;  %v5955_v33 = vld [vmem:[#allocation6_spill] sm:$0xff] }
 0x1b9   : > { %v3836_v44 = vpop.eup %3835  ;;  %v1910_v27 = vrot.slane %v1909_v53, 1  ;;  %v1928_v54 = vadd.f32 %v1927_v37, %v1775_v12  ;;  %v1545_v43 = vadd.f32 1.0, %v3834_v46  ;;  %v2095_v12 = vld [vmem:[%s5816_s3 + $0x210] sm:$0xff]  ;;  %v2096_v46 = vld [vmem:[%s5816_s3 + $0x218] sm:$0xff] }
 0x1ba   : > { %v3838_v8 = vpop.eup %3837  ;;  %v1885_v24 = vadd.f32 %v1884_v16, %v1883_v39  ;;  %v1916_v10 = vadd.f32 %v1915_v14, %v1784_v6  ;;  %v1554_v48 = vadd.f32 1.0, %v3836_v44  ;;  %v5954_v39 = vld [vmem:[#allocation8_spill] sm:$0xff]  ;;  %v5958_v16 = vsub.s32 2, %v5955_v33  ;;  %v2127_v6 = vld [vmem:[%s5816_s3 + $0x310] sm:$0xff] }
 0x1bb   : > { %v3840_v28 = vpop.eup %3839  ;;  %v1911_v50 = vadd.f32 %v1910_v27, %v1909_v53  ;;  %3843 = vrcp.f32 %v1545_v43  ;;  %v1555_v63 = vadd.f32 1.0, %v3838_v8  ;;  %v5957_v53 = vld [vmem:[#allocation7_spill] sm:$0xff]  ;;  %v2114_v8 = vld [vmem:[%s5816_s3 + $0x2a8] sm:$0xff] }
 0x1bc   : > { %v3842_v4 = vpop.eup %3841  ;;  %v1950_v61 = vcombine.low %v1872_v34, %v1885_v24  ;;  %3845 = vrcp.f32 %v1554_v48  ;;  %v1564_v58 = vadd.f32 1.0, %v3840_v28  ;;  %v2128_v44 = vld [vmem:[%s5816_s3 + $0x318] sm:$0xff]  ;;  %v2145_v24 = vld [vmem:[%s5816_s3 + $0x3a0] sm:$0xff]  ;;  %v5959_v28 = vsub.s32 5, %v5955_v33 }
 0x1bd   : > { %v1951_v45 = vcombine.low %v1898_v13, %v1911_v50  ;;  %3847 = vrcp.f32 %v1555_v63  ;;  %v1565_v40 = vadd.f32 1.0, %v3842_v4  ;;  %v2113_v13 = vld [vmem:[%s5816_s3 + $0x2a0] sm:$0xff]  ;;  %v5960_v63 = vsub.s32 7, %v5955_v33 }
 0x1be   : > { %v1972_v21 = vrot.slane %v1950_v61, %v5928_v1  ;;  %3849 = vrcp.f32 %v1564_v58  ;;  %v3235_v58 = vpack.c.bf16 %v2096_v46, %v2095_v12 }
 0x1bf   : > { %v1979_v29 = vrot.slane %v1951_v45, %v5928_v1  ;;  %3851 = vrcp.f32 %v1565_v40  ;;  %v3267_v45 = vpack.c.bf16 %v2128_v44, %v2127_v6  ;;  %v2097_v40 = vld [vmem:[%s5816_s3 + $0x220] sm:$0xff]  ;;  %v2120_v6 = vld [vmem:[%s5816_s3 + $0x2d8] sm:$0xff]  ;;  %v2151_v44 = vld [vmem:[%s5816_s3 + $0x3d0] sm:$0xff] }
 0x1c1   : > { %v1981_v60 = vcombine.low %v1972_v21, %v1979_v29  ;;  %v2098_v21 = vld [vmem:[%s5816_s3 + $0x228] sm:$0xff] }
 0x1c2   : > { %v3239_v57 = vpack.c.bf16 %v2098_v21, %v2097_v40  ;;  %v2154_v40 = vld [vmem:[%s5816_s3 + $0x3e8] sm:$0xff] }
 0x1c3   : > { %v1995_v36 = vrot.slane %v1981_v60, %v5928_v1  ;;  %v3237_v60 = vpack.c.bf16 %v2114_v8, %v2113_v13  ;;  %v2152_v13 = vld [vmem:[%s5816_s3 + $0x3d8] sm:$0xff]  ;;  %v2103_v8 = vld [vmem:[%s5816_s3 + $0x250] sm:$0xff] }
 0x1c5   : > { %v3844_v11 = vpop.eup %3843  ;;  %v1996_v2 = vcombine.low %v1988_v31, %v1995_v36  ;;  %v2129_v36 = vld [vmem:[%s5816_s3 + $0x320] sm:$0xff] }
 0x1c6   : > { %v3846_v30 = vpop.eup %3845  ;;  %v1785_v49 = vmul.f32 %v3844_v11, %v5346_v26  ;;  %v2130_v11 = vld [vmem:[%s5816_s3 + $0x328] sm:$0xff] }
 0x1c7   : > { %v3848_v15 = vpop.eup %3847  ;;  %v1794_v41 = vmul.f32 %v3846_v30, %v5350_v38  ;;  %v5407_v55 = vmul.f32 0.015625, %v1996_v2  ;;  %v2115_v2 = vld [vmem:[%s5816_s3 + $0x2b0] sm:$0xff]  ;;  %v3271_v19 = vpack.c.bf16 %v2130_v11, %v2129_v36  ;;  %v2106_v36 = vld [vmem:[%s5816_s3 + $0x268] sm:$0xff] }
 0x1c8   : > { %v3850_v51 = vpop.eup %3849  ;;  %v1929_v26 = vadd.f32 %v1928_v54, %v1785_v49  ;;  %v1795_v7 = vmul.f32 %v3848_v15, %v5354_v59  ;;  %v2143_v59 = vld [vmem:[%s5816_s3 + $0x390] sm:$0xff]  ;;  %v3233_v54 = vpack.c.bf16 %v2112_v9, %v2111_v56  ;;  %v2116_v49 = vld [vmem:[%s5816_s3 + $0x2b8] sm:$0xff]  ;;  %v2150_v9 = vld [vmem:[%s5816_s3 + $0x3c8] sm:$0xff] }
 0x1c9   : > { %v3852_v3 = vpop.eup %3851  ;;  %v1917_v23 = vadd.f32 %v1916_v10, %v1794_v41  ;;  %v1804_v38 = vmul.f32 %v3850_v51, %v5358_v35  ;;  %v2144_v35 = vld [vmem:[%s5816_s3 + $0x398] sm:$0xff]  ;;  %v2199_v47 = vrot.slane %v5407_v55, %v5954_v39  ;;  %v2195_v37 = vrot.slane %v5407_v55, %v5957_v53  ;;  %v2146_v10 = vld [vmem:[%s5816_s3 + $0x3a8] sm:$0xff]  ;;  %v2099_v51 = vld [vmem:[%s5816_s3 + $0x230] sm:$0xff] }
 0x1ca   : > { %v1930_v52 = vadd.f32 %v1929_v26, %v1795_v7  ;;  %v1805_v25 = vmul.f32 %v3852_v3, %v5363_v62  ;;  %v5956_v62 = vsub.s32 3, %v5955_v33  ;;  %v2203_v14 = vrot.slane %v5407_v55, %v5958_v16  ;;  %v2148_v15 = vld [vmem:[%s5816_s3 + $0x3b8] sm:$0xff]  ;;  %v2134_v16 = vld [vmem:[%s5816_s3 + $0x348] sm:$0xff] }
 0x1cb   : > { %v1918_v42 = vadd.f32 %v1917_v23, %v1804_v38  ;;  %2306 = vmatprep.mubr.f32.mxu1 %v2199_v47  ;;  %v3265_v43 = vpack.c.bf16 %v2144_v35, %v2143_v59  ;;  %v2215_v50 = vrot.slane %v5407_v55, %v5959_v28  ;;  %v2223_v4 = vrot.slane %v5407_v55, %v5960_v63  ;;  %v2100_v26 = vld [vmem:[%s5816_s3 + $0x238] sm:$0xff]  ;;  %v2131_v38 = vld [vmem:[%s5816_s3 + $0x330] sm:$0xff] }
 0x1cc   : > { %v2207_v18 = vrot.slane %v5407_v55, %v5956_v62  ;;  %v1931_v34 = vadd.f32 %v1930_v52, %v1805_v25  ;;  %2307 = vmatmul.mubr.f32.vlgmr.msra.gmra.mrb[32].mxu1 %v2195_v37  ;;  %v3269_v31 = vpack.c.bf16 %v2146_v10, %v2145_v24  ;;  %v3241_v3 = vpack.c.bf16 %v2116_v49, %v2115_v2  ;;  %v2132_v56 = vld [vmem:[%s5816_s3 + $0x338] sm:$0xff]  ;;  %v2117_v52 = vld [vmem:[%s5816_s3 + $0x2c0] sm:$0xff]  ;;  %v2135_v10 = vld [vmem:[%s5816_s3 + $0x350] sm:$0xff] }
 0x1cd   : > { %v1919_v27 = vrot.slane %v1918_v42, 4  ;;  %3232 = vmatpush3.bf16.msra.mxu1 %v3231_v20  ;;  %2446 = vmatprep.mubr.f32.mxu1 %v2215_v50  ;;  %v3273_v23 = vpack.c.bf16 %v2148_v15, %v2147_v22  ;;  %v2118_v20 = vld [vmem:[%s5816_s3 + $0x2c8] sm:$0xff]  ;;  %v3275_v47 = vpack.c.bf16 %v2132_v56, %v2131_v38  ;;  %v2101_v62 = vld [vmem:[%s5816_s3 + $0x240] sm:$0xff]  ;;  %v2104_v24 = vld [vmem:[%s5816_s3 + $0x258] sm:$0xff]  ;;  %v3281_v50 = vpack.c.bf16 %v2152_v13, %v2151_v44 }
 0x1ce   : > { %2376 = vmatprep.mubr.f32.mxu0 %v2207_v18  ;;  %v1932_v48 = vrot.slane %v1931_v34, 4  ;;  %3234 = vmatprep.subr.bf16.mxu1 %v3233_v54  ;;  %v2102_v18 = vld [vmem:[%s5816_s3 + $0x248] sm:$0xff]  ;;  %v3245_v12 = vpack.c.bf16 %v2118_v20, %v2117_v52  ;;  %v2136_v63 = vld [vmem:[%s5816_s3 + $0x358] sm:$0xff]  ;;  %v2123_v22 = vld [vmem:[%s5816_s3 + $0x2f0] sm:$0xff] }
 0x1cf   : > { %2377 = vmatmul.mubr.f32.vlgmr.msra.gmra.mrb[48].mxu0 %v2203_v14  ;;  %v1920_v61 = vadd.f32 %v1919_v27, %v1918_v42  ;;  %v3243_v42 = vpack.c.bf16 %v2100_v26, %v2099_v51  ;;  %v2119_v14 = vld [vmem:[%s5816_s3 + $0x2d0] sm:$0xff]  ;;  %v3247_v54 = vpack.c.bf16 %v2102_v18, %v2101_v62  ;;  %v2138_v49 = vld [vmem:[%s5816_s3 + $0x368] sm:$0xff]  ;;  %v2124_v15 = vld [vmem:[%s5816_s3 + $0x2f8] sm:$0xff]  ;;  %v5961_v18 = vsub.s32 4, %v5955_v33 }
 0x1d0   : > { %3264 = vmatpush3.bf16.msra.mxu0 %v3263_v5  ;;  %v1933_v29 = vadd.f32 %v1932_v48, %v1931_v34  ;;  %2516 = vmatprep.mubr.f32.mxu0 %v2223_v4  ;;  %v2149_v5 = vld [vmem:[%s5816_s3 + $0x3c0] sm:$0xff]  ;;  %v3249_v28 = vpack.c.bf16 %v2120_v6, %v2119_v14  ;;  %v2107_v51 = vld [vmem:[%s5816_s3 + $0x270] sm:$0xff]  ;;  %v3257_v26 = vpack.c.bf16 %v2124_v15, %v2123_v22  ;;  %v2174_v56 = vld [vmem:[%s5816_s3 + $0x488] sm:$0xff] }
 0x1d1   : > { %v1921_v30 = vrot.slane %v1920_v61, 2  ;;  %3266 = vmatprep.subr.bf16.mxu0 %v3265_v43  ;;  %3236 = vmatpush3.bf16.msra.mxu1 %v3235_v58  ;;  %v3277_v46 = vpack.c.bf16 %v2150_v9, %v2149_v5  ;;  %v2133_v34 = vld [vmem:[%s5816_s3 + $0x340] sm:$0xff]  ;;  %v1807_v58 = vld [vmem:[#allocation2 + $0x8] sm:$0x3]  ;;  %v2159_v14 = vld [vmem:[%s5816_s3 + $0x410] sm:$0xff] }
 0x1d2   : > { %v1934_v41 = vrot.slane %v1933_v29, 2  ;;  %3238 = vmatprep.subr.bf16.mxu1 %v3237_v60  ;;  %v3279_v43 = vpack.c.bf16 %v2134_v16, %v2133_v34  ;;  %v2121_v4 = vld [vmem:[%s5816_s3 + $0x2e0] sm:$0xff]  ;;  %v3283_v60 = vpack.c.bf16 %v2136_v63, %v2135_v10  ;;  %v2158_v9 = vld [vmem:[%s5816_s3 + $0x408] sm:$0xff]  ;;  %v2160_v6 = vld [vmem:[%s5816_s3 + $0x418] sm:$0xff] }
 0x1d3   : > { %v1922_v17 = vadd.f32 %v1921_v30, %v1920_v61  ;;  %v2122_v61 = vld [vmem:[%s5816_s3 + $0x2e8] sm:$0xff]  ;;  %v2173_v38 = vld [vmem:[%s5816_s3 + $0x480] sm:$0xff]  ;;  %v2163_v10 = vld [vmem:[%s5816_s3 + $0x430] sm:$0xff] }
 0x1d4   : > { %3268 = vmatpush3.bf16.msra.mxu0 %v3267_v45  ;;  %v1935_v7 = vadd.f32 %v1934_v41, %v1933_v29  ;;  %v2153_v45 = vld [vmem:[%s5816_s3 + $0x3e0] sm:$0xff]  ;;  %v3251_v29 = vpack.c.bf16 %v2104_v24, %v2103_v8  ;;  %v3253_v2 = vpack.c.bf16 %v2122_v61, %v2121_v4  ;;  %v2155_v41 = vld [vmem:[%s5816_s3 + $0x3f0] sm:$0xff]  ;;  %v3293_v20 = vpack.c.bf16 %v2174_v56, %v2173_v38  ;;  %v2188_v15 = vld [vmem:[%s5816_s3 + $0x4f8] sm:$0xff] }
 0x1d5   : > { %3270 = vmatprep.subr.bf16.mxu0 %v3269_v31  ;;  %v1923_v25 = vrot.slane %v1922_v17, 1  ;;  %3240 = vmatpush3.bf16.msra.mxu1 %v3239_v57  ;;  %v2105_v31 = vld [vmem:[%s5816_s3 + $0x260] sm:$0xff]  ;;  %v3285_v30 = vpack.c.bf16 %v2154_v40, %v2153_v45  ;;  %v2183_v45 = vld [vmem:[%s5816_s3 + $0x4d0] sm:$0xff]  ;;  %v2184_v40 = vld [vmem:[%s5816_s3 + $0x4d8] sm:$0xff]  ;;  %v3936_v56 = vmov 0.0|0.0  }
 0x1d6   : > { %v1936_v59 = vrot.slane %v1935_v7, 1  ;;  %3242 = vmatprep.subr.bf16.mxu1 %v3241_v3  ;;  %v3255_v57 = vpack.c.bf16 %v2106_v36, %v2105_v31  ;;  %v2108_v3 = vld [vmem:[%s5816_s3 + $0x278] sm:$0xff]  ;;  %v2157_v5 = vld [vmem:[%s5816_s3 + $0x400] sm:$0xff]  ;;  %v2187_v22 = vld [vmem:[%s5816_s3 + $0x4f0] sm:$0xff] }
 0x1d7   : > { %v1924_v35 = vadd.f32 %v1923_v25, %v1922_v17  ;;  %v2156_v17 = vld [vmem:[%s5816_s3 + $0x3f8] sm:$0xff]  ;;  %v3259_v52 = vpack.c.bf16 %v2108_v3, %v2107_v51  ;;  %v3295_v62 = vpack.c.bf16 %v2158_v9, %v2157_v5  ;;  %v2177_v44 = vld [vmem:[%s5816_s3 + $0x4a0] sm:$0xff]  ;;  %v2593_v3 = vld [vmem:[%s5818_s5 + $0x8] sm:$0xff] }
 0x1d8   : > { %3272 = vmatpush3.bf16.msra.mxu0 %v3271_v19  ;;  %v1937_v37 = vadd.f32 %v1936_v59, %v1935_v7  ;;  %v3289_v7 = vpack.c.bf16 %v2156_v17, %v2155_v41  ;;  %v2161_v13 = vld [vmem:[%s5816_s3 + $0x420] sm:$0xff]  ;;  %v2168_v31 = vld [vmem:[%s5816_s3 + $0x458] sm:$0xff]  ;;  %v3321_v17 = vpack.c.bf16 %v2188_v15, %v2187_v22  ;;  %v2598_v5 = vld [vmem:[%s5818_s5 + $0x30] sm:$0xff] }
 0x1d9   : > { %3274 = vmatprep.subr.bf16.mxu0 %v3273_v23  ;;  %3244 = vmatpush3.bf16.msra.mxu1 %v3243_v42  ;;  %v2140_v23 = vld [vmem:[%s5816_s3 + $0x378] sm:$0xff]  ;;  %v2165_v61 = vld [vmem:[%s5816_s3 + $0x440] sm:$0xff] }
 0x1da   : > { %v1997_v27 = vcombine.low %v1924_v35, %v1937_v37  ;;  %3246 = vmatprep.subr.bf16.mxu1 %v3245_v12  ;;  %v3291_v25 = vpack.c.bf16 %v2140_v23, %v2139_v0  ;;  %v2175_v35 = vld [vmem:[%s5816_s3 + $0x490] sm:$0xff]  ;;  %v2176_v42 = vld [vmem:[%s5816_s3 + $0x498] sm:$0xff]  ;;  %v2211_v37 = vrot.slane %v5407_v55, %v5961_v18  ;;  %v5962_v12 = vsub.s32 6, %v5955_v33  ;;  %v2185_v36 = vld [vmem:[%s5816_s3 + $0x4e0] sm:$0xff] }
 0x1db   : > { %v3297_v16 = vpack.c.bf16 %v2176_v42, %v2175_v35  ;;  %v2594_v23 = vld [vmem:[%s5818_s5 + $0x10] sm:$0xff]  ;;  %v2595_v38 = vld [vmem:[%s5818_s5 + $0x18] sm:$0xff]  ;;  %v2600_v35 = vld [vmem:[%s5818_s5 + $0x40] sm:$0xff] }
 0x1dc   : > { %3276 = vmatpush3.bf16.msra.mxu0 %v3275_v47  ;;  %v2004_v48 = vrot.slane %v1997_v27, %v5928_v1  ;;  %v2162_v27 = vld [vmem:[%s5816_s3 + $0x428] sm:$0xff]  ;;  %v2599_v9 = vld [vmem:[%s5818_s5 + $0x38] sm:$0xff] }
 0x1dd   : > { %3278 = vmatprep.subr.bf16.mxu0 %v3277_v46  ;;  %3248 = vmatpush3.bf16.msra.mxu1 %v3247_v54  ;;  %v2219_v46 = vrot.slane %v5407_v55, %v5962_v12  ;;  %v2178_v55 = vld [vmem:[%s5816_s3 + $0x4a8] sm:$0xff]  ;;  %v2179_v54 = vld [vmem:[%s5816_s3 + $0x4b0] sm:$0xff]  ;;  %v3303_v8 = vpack.c.bf16 %v2162_v27, %v2161_v13  ;;  %v2603_v18 = vld [vmem:[%s5818_s5 + $0x58] sm:$0xff] }
 0x1de   : > { %v2011_v21 = vrot.slane %v2004_v48, %v5928_v1  ;;  %3250 = vmatprep.subr.bf16.mxu1 %v3249_v28  ;;  %v2137_v1 = vld [vmem:[%s5816_s3 + $0x360] sm:$0xff]  ;;  %v3301_v33 = vpack.c.bf16 %v2178_v55, %v2177_v44  ;;  %v2164_v48 = vld [vmem:[%s5816_s3 + $0x438] sm:$0xff]  ;;  %v2601_v42 = vld [vmem:[%s5818_s5 + $0x48] sm:$0xff] }
 0x1df   : > { %v3287_v19 = vpack.c.bf16 %v2138_v49, %v2137_v1  ;;  %v2181_v28 = vld [vmem:[%s5816_s3 + $0x4c0] sm:$0xff]  ;;  %v3307_v63 = vpack.c.bf16 %v2164_v48, %v2163_v10  ;;  %v2170_v49 = vld [vmem:[%s5816_s3 + $0x468] sm:$0xff] }
 0x1e0   : > { %3280 = vmatpush3.bf16.msra.mxu0 %v3279_v43  ;;  %v2015_v11 = vadd.f32 %v2011_v21, %v1807_v58  ;;  %v2180_v43 = vld [vmem:[%s5816_s3 + $0x4b8] sm:$0xff]  ;;  %v2166_v58 = vld [vmem:[%s5816_s3 + $0x448] sm:$0xff]  ;;  %v2169_v1 = vld [vmem:[%s5816_s3 + $0x460] sm:$0xff] }
 0x1e1   : > { %3282 = vmatprep.subr.bf16.mxu0 %v3281_v50  ;;  %3252 = vmatpush3.bf16.msra.mxu1 %v3251_v29  ;;  %v3305_v24 = vpack.c.bf16 %v2180_v43, %v2179_v54  ;;  %v2182_v50 = vld [vmem:[%s5816_s3 + $0x4c8] sm:$0xff]  ;;  %v3311_v21 = vpack.c.bf16 %v2166_v58, %v2165_v61  ;;  %v3313_v29 = vpack.c.bf16 %v2184_v40, %v2183_v45  ;;  %v2604_v12 = vld [vmem:[%s5818_s5 + $0x60] sm:$0xff] }
 0x1e2   : > { %2021 = vst.msk [vmem:[#allocation2 + $0x8] sm:$0x3] %vm5013_vm0, %v2015_v11  ;;  %3254 = vmatprep.subr.bf16.mxu1 %v3253_v2  ;;  %v3309_v4 = vpack.c.bf16 %v2182_v50, %v2181_v28  ;;  %v2186_v11 = vld [vmem:[%s5816_s3 + $0x4e8] sm:$0xff]  ;;  %v3319_v41 = vpack.c.bf16 %v2170_v49, %v2169_v1 }
 0x1e4   : > { %3284 = vmatpush3.bf16.msra.mxu0 %v3283_v60  ;;  %v2167_v60 = vld [vmem:[%s5816_s3 + $0x450] sm:$0xff] }
 0x1e5   : > { %3286 = vmatprep.subr.bf16.mxu0 %v3285_v30  ;;  %3256 = vmatpush3.bf16.msra.mxu1 %v3255_v57  ;;  %v3315_v2 = vpack.c.bf16 %v2168_v31, %v2167_v60  ;;  %v3317_v30 = vpack.c.bf16 %v2186_v11, %v2185_v36  ;;  %v2171_v57 = vld [vmem:[%s5816_s3 + $0x470] sm:$0xff] }
 0x1e6   : > { %3258 = vmatprep.subr.bf16.mxu1 %v3257_v26 }
 0x1e8   : > { %3288 = vmatpush3.bf16.msra.mxu0 %v3287_v19  ;;  %v2172_v19 = vld [vmem:[%s5816_s3 + $0x478] sm:$0xff] }
 0x1e9   : > { %3290 = vmatprep.subr.bf16.mxu0 %v3289_v7  ;;  %v2026_v59 = vld [vmem:[#allocation2 + $0x8] sm:$0x3]  ;;  %3260 = vmatpush3.bf16.msra.mxu1 %v3259_v52  ;;  %v3323_v51 = vpack.c.bf16 %v2172_v19, %v2171_v57  ;;  %v2592_v7 = vld [vmem:[%s5818_s5] sm:$0xff] }
 0x1ea   : > { %v5616_v47 = vmul.f32 0.015625, %v2026_v59  ;;  %3294 = vmatprep.subr.bf16.mxu1 %v3293_v20  ;;  %v3326_v0 = vpack.c.bf16 %v2593_v3, %v2592_v7  ;;  %v2596_v52 = vld [vmem:[%s5818_s5 + $0x20] sm:$0xff]  ;;  %v3335_v59 = vpack.c.bf16 %v2599_v9, %v2598_v5 }
 0x1ec   : > { %3292 = vmatpush3.bf16.msra.mxu0 %v3291_v25  ;;  %v2231_v34 = vrot.slane %v5616_v47, %v5954_v39  ;;  %2447 = vmatmul.mubr.f32.vlgmr.msra.gmra.mrb[34].mxu1 %v2211_v37  ;;  %v3299_v39 = vpack.c.bf16 %v2160_v6, %v2159_v14  ;;  %v2227_v26 = vrot.slane %v5616_v47, %v5957_v53  ;;  %v2597_v25 = vld [vmem:[%s5818_s5 + $0x28] sm:$0xff]  ;;  %v2607_v14 = vld [vmem:[%s5818_s5 + $0x78] sm:$0xff] }
 0x1ed   : > { %3296 = vmatpush3.bf16.msra.mxu1 %v3295_v62  ;;  %3325 = vmatprep.subr.bf16.mxu0 %v3936_v56  ;;  %v3329_v53 = vpack.c.bf16 %v2595_v38, %v2594_v23  ;;  %v3332_v20 = vpack.c.bf16 %v2597_v25, %v2596_v52  ;;  %v3338_v47 = vpack.c.bf16 %v2601_v42, %v2600_v35  ;;  %v2602_v62 = vld [vmem:[%s5818_s5 + $0x50] sm:$0xff] }
 0x1ee   : > { %2586 = vmatprep.mubr.f32.mxu1 %v2231_v34  ;;  %3298 = vmatprep.subr.bf16.mxu1 %v3297_v16  ;;  %v3341_v37 = vpack.c.bf16 %v2603_v18, %v2602_v62  ;;  %v2606_v16 = vld [vmem:[%s5818_s5 + $0x70] sm:$0xff] }
 0x1ef   : > { %2517 = vmatmul.mubr.f32.vlgmr.msra.gmra.mrb[50].mxu0 %v2219_v46  ;;  %v2605_v46 = vld [vmem:[%s5818_s5 + $0x68] sm:$0xff]  ;;  %v3347_v6 = vpack.c.bf16 %v2607_v14, %v2606_v16 }
 0x1f0   : > { %3327 = vmatpush3.bf16.msra.mxu0 %v3326_v0  ;;  %v3344_v34 = vpack.c.bf16 %v2605_v46, %v2604_v12  ;;  %3162 = vmatprep.mubr.msk.f32.mxu0 %vm3937_vm1, %v3935_v32 }
 0x1f1   : > { %3300 = vmatpush3.bf16.msra.mxu1 %v3299_v39  ;;  %3328 = vmatprep.subr.bf16.mxu0 %v3936_v56  ;;  %v2189_v39 = vld [vmem:[%s5817_s4] sm:$0x1] }
 0x1f2   : > { %3302 = vmatprep.subr.bf16.mxu1 %v3301_v33 }
 0x1f4   : > { %3330 = vmatpush3.bf16.msra.mxu0 %v3329_v53 }
 0x1f5   : > { %3304 = vmatpush3.bf16.msra.mxu1 %v3303_v8  ;;  %3331 = vmatprep.subr.bf16.mxu0 %v3936_v56 }
 0x1f6   : > { %3306 = vmatprep.subr.bf16.mxu1 %v3305_v24 }
 0x1f8   : > { %3333 = vmatpush3.bf16.msra.mxu0 %v3332_v20 }
 0x1f9   : > { %3308 = vmatpush3.bf16.msra.mxu1 %v3307_v63  ;;  %3334 = vmatprep.subr.bf16.mxu0 %v3936_v56 }
 0x1fa   : > { %3310 = vmatprep.subr.bf16.mxu1 %v3309_v4 }
 0x1fc   : > { %3336 = vmatpush3.bf16.msra.mxu0 %v3335_v59 }
 0x1fd   : > { %3312 = vmatpush3.bf16.msra.mxu1 %v3311_v21  ;;  %3337 = vmatprep.subr.bf16.mxu0 %v3936_v56  ;;  %v2608_v21 = vld [vmem:[%s5819_s6] sm:$0x1] }
 0x1fe   : > { %3314 = vmatprep.subr.bf16.mxu1 %v3313_v29 }
 0x200   : > { %3339 = vmatpush3.bf16.msra.mxu0 %v3338_v47 }
 0x201   : > { %3316 = vmatpush3.bf16.msra.mxu1 %v3315_v2  ;;  %3340 = vmatprep.subr.bf16.mxu0 %v3936_v56 }
 0x202   : > { %3318 = vmatprep.subr.bf16.mxu1 %v3317_v30 }
 0x204   : > { %3342 = vmatpush3.bf16.msra.mxu0 %v3341_v37 }
 0x205   : > { %3320 = vmatpush3.bf16.msra.mxu1 %v3319_v41  ;;  %3343 = vmatprep.subr.bf16.mxu0 %v3936_v56 }
 0x206   : > { %3322 = vmatprep.subr.bf16.mxu1 %v3321_v17 }
 0x208   : > { %3345 = vmatpush3.bf16.msra.mxu0 %v3344_v34 }
 0x209   : > { %3324 = vmatpush3.bf16.msra.mxu1 %v3323_v51  ;;  %3346 = vmatprep.subr.bf16.mxu0 %v3936_v56 }
 0x20c   : > { %2587 = vmatmul.mubr.f32.vlgmr.msra.gmra.mrb[36].mxu1 %v2227_v26  ;;  %3348 = vmatpush3.bf16.msra.mxu0 %v3347_v6 }
 0x29f   : > { %v2970_v44 = vpop.f32.mrb[32].mxu1 }
 0x2a0   : > { %v2971_v33 = vpop.f32.mrb[33].mxu1 }
 0x2a1   : > { %v2972_v27 = vadd.f32 %v2971_v33, %v2970_v44 }
 0x2a2   : > { %v3005_v55 = vpop.f32.mrb[48].mxu0 }
 0x2a3   : > { %v3006_v13 = vpop.f32.mrb[49].mxu0  ;;  %v2309_v43 = vadd.f32 %v2972_v27, %v2189_v39 }
 0x2a4   : > { %v3007_v54 = vadd.f32 %v3006_v13, %v3005_v55 }
 0x2a6   : > { %v2379_v8 = vadd.f32 %v3007_v54, %v2309_v43 }
 0x2bf   : > { %v3040_v24 = vpop.f32.mrb[34].mxu1 }
 0x2c0   : > { %v3041_v48 = vpop.f32.mrb[35].mxu1 }
 0x2c1   : > { %v3042_v50 = vadd.f32 %v3041_v48, %v3040_v24 }
 0x2c2   : > { %v3075_v10 = vpop.f32.mrb[50].mxu0 }
 0x2c3   : > { %v3076_v28 = vpop.f32.mrb[51].mxu0  ;;  %v2449_v63 = vadd.f32 %v3042_v50, %v2379_v8 }
 0x2c4   : > { %v3077_v32 = vadd.f32 %v3076_v28, %v3075_v10 }
 0x2c6   : > { %v2519_v4 = vadd.f32 %v3077_v32, %v2449_v63 }
 0x2df   : > { %v3110_v61 = vpop.f32.mrb[36].mxu1 }
 0x2e0   : > { %v3111_v58 = vpop.f32.mrb[37].mxu1 }
 0x2e1   : > { %v3112_v45 = vadd.f32 %v3111_v58, %v3110_v61 }
 0x2e3   : > { %v2589_v40 = vadd.f32 %v3112_v45, %v2519_v4 }
 0x2e5   : > { %3163 = vmatmul.mubr.f32.vlgmr.msra.gmra.mrb[52].mxu0 %v2589_v40 }
 0x3b8   : > { %v2675_v29 = vpop.f32.mrb[52].mxu0 }
 0x3b9   : > { %v2676_v60 = vadd.f32 %v2675_v29, %v2608_v21  ;;  %v3164_v31 = vpop.f32.mrb[53].mxu0 }
 0x3bb   : > { %2680 = vst.msk [vmem:[%s293_s15] sm:$0x1] %vm2679_vm2, %v2676_v60 }
 0x3bc   : > { %3866 = shalt.err (!%p3863_p5)
}
 0x3bd   : > { %s3867_s30 = scalar_lea.hbm %s5766_s19, 16  ;;  %s3871_s12 = scalar_lea.hbm %s5820_s7, 32 }
 0x3be   : > { %p3868_p6 = scmp.ne.s32.totalorder %s5766_s19, %s3867_s30  ;;  %p3872_p10 = scmp.lt.u32.totalorder %s5766_s19, %s5820_s7 }
 0x3bf   : > { %p3873_p11 = scmp.lt.u32.totalorder %s3871_s12, %s3867_s30  ;;  %p3875_p13 = scmp.lt.u32.totalorder %s3867_s30, %s5766_s19 }
 0x3c0   : > { %p3869_p7 = pnand %p3868_p6, %p4019_p4 }
 0x3c1   : > { %p3874_p12 = por %p3873_p11, %p3872_p10 }
 0x3c2   : > { %p3870_p9 = pneg %p3869_p7 }
 0x3c3   : > { %p3876_p0 = por %p3875_p13, %p3874_p12 }
 0x3c5   : > { %p3877_p1 = pnand %p3876_p0, %p3870_p9 }
 0x3c7   : > { %3880 = shalt.err (!%p3877_p1)
}
 0x3c8   : > { %3349 = dma.vmem_to_hbm [thread:$0]  (%p4019_p4), %s5768_s16, 16, %s5766_s19, %s2682_s18  }
 0x3c9 PF: > { %p3355_p2 = scmp.ge.s32.totalorder %s3931_s29, 2  ;;  %s2706_s8 = sand.u32 1, %s3911_s24  }
 0x3ca   : > { %s2707_s20 = scalar_lea.sflag [#allocation4], %s2706_s8 }
 0x3cb   : > { %p3352_p3 = pnand %p3355_p2, %p4026_p8 }
 0x3cd   : > { %3906 = dma.done.wait (!%p3352_p3), %s2707_s20, 16  }
 0x3ce   : > { %3908 = vsyncadd (!%p3352_p3), %s2707_s20, 4294967280  ;;  %s20_s29 = sadd.s32 1, %s3931_s29   ;;  %s5963_s24 = smov %s3915_s25 }
 0x3cf   : > { %p17_p5 = scmp.ge.s32.totalorder %s20_s29, 4   ;;  %s5964_s25 = smov %s3919_s26 }
 0x3d0   : > { %s5965_s26 = smov %s4032_s14  ;;  %s5966_s27 = smov %s3927_s28 }
 0x3d1   : > { %s5967_s28 = smov %s5969_s9  ;;  %19 = sbr.rel (!%p17_p5) target bundleno = 4 (0x4), region = 91 }
 0x3d8   :  { %2711 = vsyncpa [#allocation4], 1 }
 0x3d9   :  { %2713 = vsyncpa [#allocation4 + $0x1], 1 }

</bundles_post_ra>
